<compile_context>
chip_gen: v6e
topology: v6e:2x2x1
jax: 0.10.0
libtpu: 0.0.40
codegen_flags: <defaults>
</compile_context>

<pallas_src>
import functools

import jax
import jax.numpy as jnp
import numpy as np
from jax.experimental import pallas as pl
from jax.experimental.pallas import tpu as pltpu


# ----------------------------------------------------------------------------
# Fused GhostConv kernel: one (N, H-band) grid step does
#   DMA x band (+halo)  ->  1x1 conv (MXU) + BN + SiLU  ->  5x5 depthwise (VPU)
#   + BN + SiLU  ->  write [y, cv2(y)] output block.
# ----------------------------------------------------------------------------
def _ghost_kernel(x_hbm, w1_ref, s1_ref, b1_ref, w2_ref, s2_ref, b2_ref,
                  o_ref, xband, ybuf, sems):
    # x_hbm : (N*H*W, C1)  raw HBM ref (ANY), bf16
    # w1_ref: (C1, C_) bf16     s1/b1/s2/b2: (1, C_) f32   w2_ref: (5, 5, C_) f32
    # o_ref : (1, th, W, 2*C_) output block (f32)
    # xband : ((th+4)*W, C1) bf16 VMEM       ybuf: (th+4, W+4, C_) f32 VMEM
    th = o_ref.shape[1]
    W = o_ref.shape[2]
    C_ = w1_ref.shape[1]

    n = pl.program_id(0)
    j = pl.program_id(1)
    nb = pl.num_programs(1)
    H = th * nb
    r0 = j * th                      # first output row of this band
    img_base = n * H * W             # row offset of image n in the flattened x

    # ---- manual DMA: x band + valid halo rows (HBM -> VMEM) ----------------
    def core_copy():
        return pltpu.make_async_copy(
            x_hbm.at[pl.ds(img_base + r0 * W, th * W)],
            xband.at[pl.ds(2 * W, th * W)], sems.at[0])

    def top_copy():
        src = img_base + (jnp.maximum(r0, 2) - 2) * W
        return pltpu.make_async_copy(
            x_hbm.at[pl.ds(src, 2 * W)], xband.at[pl.ds(0, 2 * W)], sems.at[1])

    def bot_copy():
        src = img_base + jnp.minimum(r0 + th, H - 2) * W
        return pltpu.make_async_copy(
            x_hbm.at[pl.ds(src, 2 * W)],
            xband.at[pl.ds((th + 2) * W, 2 * W)], sems.at[2])

    core_copy().start()

    @pl.when(j > 0)
    def _():
        top_copy().start()

    @pl.when(j < nb - 1)
    def _():
        bot_copy().start()

    core_copy().wait()

    @pl.when(j > 0)
    def _():
        top_copy().wait()

    @pl.when(j < nb - 1)
    def _():
        bot_copy().wait()

    # ---- cv1: 1x1 conv as MXU matmul (bf16 x bf16 -> f32) + BN + SiLU ------
    y = jnp.dot(xband[...], w1_ref[...], preferred_element_type=jnp.float32)
    y = y * s1_ref[...] + b1_ref[...]
    y = y * jax.nn.sigmoid(y)                          # SiLU (f32)
    ybuf[:, 2:2 + W, :] = y.reshape(th + 4, W, C_)

    # Zero cv2's 'same' padding halo of y (image borders only; band-interior
    # halo rows hold real cv1 values computed from the DMA'd x halo).
    zcol = jnp.zeros((th + 4, 2, C_), jnp.float32)
    ybuf[:, 0:2, :] = zcol
    ybuf[:, 2 + W:4 + W, :] = zcol

    @pl.when(j == 0)
    def _():
        ybuf[0:2, :, :] = jnp.zeros((2, W + 4, C_), jnp.float32)

    @pl.when(j == nb - 1)
    def _():
        ybuf[th + 2:th + 4, :, :] = jnp.zeros((2, W + 4, C_), jnp.float32)

    # ---- cv2: 5x5 depthwise conv (static 25-tap VPU loop) + BN + SiLU ------
    w2v = w2_ref[...]
    acc = jnp.zeros((th, W, C_), jnp.float32)
    for kh in range(5):
        for kw in range(5):
            acc = acc + ybuf[kh:kh + th, kw:kw + W, :] * w2v[kh, kw]
    y2 = acc * s2_ref[...] + b2_ref[...]
    y2 = y2 * jax.nn.sigmoid(y2)                       # SiLU (f32)

    # ---- fused concat: write both channel halves in one lane-dense store ---
    y1 = ybuf[2:2 + th, 2:2 + W, :]
    o_ref[0] = jnp.concatenate([y1, y2], axis=-1).astype(o_ref.dtype)


def _pick_band_rows(H, target=64):
    """Largest divisor of H that is <= target (keeps the band VMEM-sized)."""
    if H <= target:
        return H
    for th in range(target, 0, -1):
        if H % th == 0:
            return th
    return H


# ----------------------------------------------------------------------------
# GhostConv forward wrapper (NCHW in / NCHW out)
# ----------------------------------------------------------------------------
@functools.partial(jax.jit, static_argnames=("band_rows",))
def ghost_conv_forward(x_nchw, w1, s1, b1, w2, s2, b2, *, band_rows=None):
    N, C1, H, W = x_nchw.shape
    C_ = w1.shape[1]
    th = _pick_band_rows(H) if band_rows is None else band_rows
    assert H % th == 0, f"band_rows={th} must divide H={H}"
    nb = H // th

    # NHWC with spatial rows flattened; bf16 feed for the MXU.
    x = jnp.transpose(x_nchw, (0, 2, 3, 1)).reshape(N * H * W, C1)
    x = x.astype(jnp.bfloat16)
    w1b = w1.astype(jnp.bfloat16)

    out = pl.pallas_call(
        _ghost_kernel,
        out_shape=jax.ShapeDtypeStruct((N, H, W, 2 * C_), jnp.float32),
        grid=(N, nb),
        in_specs=[
            pl.BlockSpec(memory_space=pl.ANY),                   # x (manual DMA)
            pl.BlockSpec((C1, C_), lambda n, j: (0, 0)),         # w1
            pl.BlockSpec((1, C_), lambda n, j: (0, 0)),          # s1
            pl.BlockSpec((1, C_), lambda n, j: (0, 0)),          # b1
            pl.BlockSpec((5, 5, C_), lambda n, j: (0, 0, 0)),    # w2
            pl.BlockSpec((1, C_), lambda n, j: (0, 0)),          # s2
            pl.BlockSpec((1, C_), lambda n, j: (0, 0)),          # b2
        ],
        out_specs=pl.BlockSpec((1, th, W, 2 * C_), lambda n, j: (n, j, 0, 0)),
        scratch_shapes=[
            pltpu.VMEM(((th + 4) * W, C1), jnp.bfloat16),        # x band (+halo)
            pltpu.VMEM((th + 4, W + 4, C_), jnp.float32),        # cv1 activation
            pltpu.SemaphoreType.DMA((3,)),
        ],
        compiler_params=pltpu.CompilerParams(
            dimension_semantics=("parallel", "parallel")),
    )(x, w1b, s1, b1, w2, s2, b2)

    return jnp.transpose(out, (0, 3, 1, 2))


# ----------------------------------------------------------------------------
# Pure-JAX reference (lax.conv) for validation (same bf16 feed for cv1 inputs)
# ----------------------------------------------------------------------------
def reference_forward(x_nchw, w1, s1, b1, w2, s2, b2):
    C_ = w1.shape[1]
    x = jnp.transpose(x_nchw, (0, 2, 3, 1))
    xb = x.astype(jnp.bfloat16).astype(jnp.float32)
    w1b = w1.astype(jnp.bfloat16).astype(jnp.float32)
    y = jnp.einsum("nhwc,cd->nhwd", xb, w1b, precision=jax.lax.Precision.HIGHEST)
    y = jax.nn.silu(y * s1 + b1)
    w2_hwio = w2.reshape(5, 5, 1, C_)
    y2 = jax.lax.conv_general_dilated(
        y, w2_hwio, window_strides=(1, 1), padding=[(2, 2), (2, 2)],
        dimension_numbers=("NHWC", "HWIO", "NHWC"), feature_group_count=C_,
        precision=jax.lax.Precision.HIGHEST)
    y2 = jax.nn.silu(y2 * s2 + b2)
    out = jnp.concatenate([y, y2], axis=-1)
    return jnp.transpose(out, (0, 3, 1, 2))


def fold_bn(gamma, beta, mean, var, eps=1e-5):
    scale = gamma / jnp.sqrt(var + eps)
    bias = beta - mean * scale
    return scale[None, :], bias[None, :]   # (1, C) for in-kernel broadcast


if __name__ == "__main__":
    # Small deterministic config: GhostConv(c1=4, c2=8) on x of shape (2,4,16,16)
    N, C1, H, W = 2, 4, 16, 16
    C2 = 8
    C_ = C2 // 2

    key = jax.random.PRNGKey(0)
    ks = jax.random.split(key, 11)

    x = jax.random.normal(ks[0], (N, C1, H, W), jnp.float32)

    # cv1: pointwise weight (PyTorch (c_, c1, 1, 1)) stored as (c1, c_)
    w1 = jax.random.normal(ks[1], (C1, C_), jnp.float32) * 0.2
    g1 = jax.random.uniform(ks[2], (C_,), jnp.float32, 0.5, 1.5)
    be1 = jax.random.normal(ks[3], (C_,), jnp.float32) * 0.1
    mu1 = jax.random.normal(ks[4], (C_,), jnp.float32) * 0.1
    var1 = jax.random.uniform(ks[5], (C_,), jnp.float32, 0.5, 1.5)
    s1, b1 = fold_bn(g1, be1, mu1, var1)

    # cv2: depthwise weight (PyTorch (c_, 1, 5, 5)) stored as (5, 5, c_)
    w2 = jax.random.normal(ks[6], (5, 5, C_), jnp.float32) * 0.2
    g2 = jax.random.uniform(ks[7], (C_,), jnp.float32, 0.5, 1.5)
    be2 = jax.random.normal(ks[8], (C_,), jnp.float32) * 0.1
    mu2 = jax.random.normal(ks[9], (C_,), jnp.float32) * 0.1
    var2 = jax.random.uniform(ks[10], (C_,), jnp.float32, 0.5, 1.5)
    s2, b2 = fold_bn(g2, be2, mu2, var2)

    ref = reference_forward(x, w1, s1, b1, w2, s2, b2)

    # Multi-band path (2 row bands per image -> exercises the halo DMAs).
    out_banded = ghost_conv_forward(x, w1, s1, b1, w2, s2, b2, band_rows=8)
    out_banded = jax.block_until_ready(out_banded)
    assert out_banded.shape == (N, C2, H, W), out_banded.shape
    np.testing.assert_allclose(np.asarray(out_banded), np.asarray(ref),
                               rtol=1e-4, atol=1e-5)

    # Single-band path (whole image per grid step).
    out_single = ghost_conv_forward(x, w1, s1, b1, w2, s2, b2)
    out_single = jax.block_until_ready(out_single)
    np.testing.assert_allclose(np.asarray(out_single), np.asarray(ref),
                               rtol=1e-4, atol=1e-5)

    print("KERNEL_OK")
</pallas_src>

<mosaic_0001>
module attributes {stable_mosaic.version = 11 : i64} {
  func.func @_ghost_kernel(%arg0: i32, %arg1: i32, %arg2: memref<512x4xbf16, #tpu.memory_space<any>>, %arg3: memref<4x4xbf16, #tpu.memory_space<vmem>>, %arg4: memref<1x4xf32, #tpu.memory_space<vmem>>, %arg5: memref<1x4xf32, #tpu.memory_space<vmem>>, %arg6: memref<5x5x4xf32, #tpu.memory_space<vmem>>, %arg7: memref<1x4xf32, #tpu.memory_space<vmem>>, %arg8: memref<1x4xf32, #tpu.memory_space<vmem>>, %arg9: memref<1x8x16x8xf32, #tpu.memory_space<vmem>>, %arg10: memref<192x4xbf16, #tpu.memory_space<vmem>>, %arg11: memref<12x20x4xf32, #tpu.memory_space<vmem>>, %arg12: memref<3x!tpu.dma_semaphore, #tpu.memory_space<semaphore_mem>>) attributes {dimension_semantics = [#tpu.dimension_semantics<parallel>, #tpu.dimension_semantics<parallel>], iteration_bounds = array<i64: 2, 2>, scalar_prefetch = 0 : i64, scratch_operands = 3 : i64, tpu.core_type = #tpu.core_type<tc>, window_params = [{}, {pipeline_mode = #tpu.pipeline_mode<synchronous>, transform_indices = @transform_1, window_bounds = array<i64: 4, 4>}, {pipeline_mode = #tpu.pipeline_mode<synchronous>, transform_indices = @transform_2, window_bounds = array<i64: 1, 4>}, {pipeline_mode = #tpu.pipeline_mode<synchronous>, transform_indices = @transform_3, window_bounds = array<i64: 1, 4>}, {pipeline_mode = #tpu.pipeline_mode<synchronous>, transform_indices = @transform_4, window_bounds = array<i64: 5, 5, 4>}, {pipeline_mode = #tpu.pipeline_mode<synchronous>, transform_indices = @transform_5, window_bounds = array<i64: 1, 4>}, {pipeline_mode = #tpu.pipeline_mode<synchronous>, transform_indices = @transform_6, window_bounds = array<i64: 1, 4>}, {transform_indices = @transform_7, window_bounds = array<i64: 1, 8, 16, 8>}]} {
    %c8_i32 = arith.constant 8 : i32
    %0 = arith.muli %arg1, %c8_i32 : i32
    %c16_i32 = arith.constant 16 : i32
    %1 = arith.muli %arg0, %c16_i32 : i32
    %c16_i32_0 = arith.constant 16 : i32
    %2 = arith.muli %1, %c16_i32_0 : i32
    %c16_i32_1 = arith.constant 16 : i32
    %3 = arith.muli %0, %c16_i32_1 : i32
    %4 = arith.addi %2, %3 : i32
    %c0_i32 = arith.constant 0 : i32
    %c0_i32_2 = arith.constant 0 : i32
    %5 = tpu.memref_slice %arg2[%4, %c0_i32_2] : memref<512x4xbf16, #tpu.memory_space<any>> -> memref<128x4xbf16, #tpu.memory_space<any>>
    %c32_i32 = arith.constant 32 : i32
    %c0_i32_3 = arith.constant 0 : i32
    %6 = tpu.memref_slice %arg10[%c32_i32, %c0_i32_3] : memref<192x4xbf16, #tpu.memory_space<vmem>> -> memref<128x4xbf16, #tpu.memory_space<vmem>>
    %7 = tpu.memref_slice %arg12[%c0_i32] : memref<3x!tpu.dma_semaphore, #tpu.memory_space<semaphore_mem>> -> memref<1x!tpu.dma_semaphore, #tpu.memory_space<semaphore_mem>>
    %8 = tpu.memref_squeeze %7 : memref<1x!tpu.dma_semaphore, #tpu.memory_space<semaphore_mem>> -> memref<!tpu.dma_semaphore, #tpu.memory_space<semaphore_mem>>
    tpu.enqueue_dma source(%5 : memref<128x4xbf16, #tpu.memory_space<any>>) target(%6 : memref<128x4xbf16, #tpu.memory_space<vmem>>) target_semaphore(%8 : memref<!tpu.dma_semaphore, #tpu.memory_space<semaphore_mem>>)
    %c0_i32_4 = arith.constant 0 : i32
    %9 = arith.cmpi sgt, %arg1, %c0_i32_4 : i32
    %10 = arith.extui %9 : i1 to i32
    %c0_i32_5 = arith.constant 0 : i32
    %11 = arith.cmpi ne, %10, %c0_i32_5 : i32
    scf.if %11 {
      %c2_i32 = arith.constant 2 : i32
      %249 = arith.maxsi %0, %c2_i32 : i32
      %c2_i32_124 = arith.constant 2 : i32
      %250 = arith.subi %249, %c2_i32_124 : i32
      %c16_i32_125 = arith.constant 16 : i32
      %251 = arith.muli %250, %c16_i32_125 : i32
      %252 = arith.addi %2, %251 : i32
      %c1_i32_126 = arith.constant 1 : i32
      %c0_i32_127 = arith.constant 0 : i32
      %253 = tpu.memref_slice %arg2[%252, %c0_i32_127] : memref<512x4xbf16, #tpu.memory_space<any>> -> memref<32x4xbf16, #tpu.memory_space<any>>
      %c0_i32_128 = arith.constant 0 : i32
      %c0_i32_129 = arith.constant 0 : i32
      %254 = tpu.memref_slice %arg10[%c0_i32_128, %c0_i32_129] : memref<192x4xbf16, #tpu.memory_space<vmem>> -> memref<32x4xbf16, #tpu.memory_space<vmem>>
      %255 = tpu.memref_slice %arg12[%c1_i32_126] : memref<3x!tpu.dma_semaphore, #tpu.memory_space<semaphore_mem>> -> memref<1x!tpu.dma_semaphore, #tpu.memory_space<semaphore_mem>>
      %256 = tpu.memref_squeeze %255 : memref<1x!tpu.dma_semaphore, #tpu.memory_space<semaphore_mem>> -> memref<!tpu.dma_semaphore, #tpu.memory_space<semaphore_mem>>
      tpu.enqueue_dma source(%253 : memref<32x4xbf16, #tpu.memory_space<any>>) target(%254 : memref<32x4xbf16, #tpu.memory_space<vmem>>) target_semaphore(%256 : memref<!tpu.dma_semaphore, #tpu.memory_space<semaphore_mem>>)
    } else {
    }
    %c1_i32 = arith.constant 1 : i32
    %12 = arith.cmpi slt, %arg1, %c1_i32 : i32
    %13 = arith.extui %12 : i1 to i32
    %c0_i32_6 = arith.constant 0 : i32
    %14 = arith.cmpi ne, %13, %c0_i32_6 : i32
    scf.if %14 {
      %c8_i32_124 = arith.constant 8 : i32
      %249 = arith.addi %0, %c8_i32_124 : i32
      %c14_i32 = arith.constant 14 : i32
      %250 = arith.minsi %249, %c14_i32 : i32
      %c16_i32_125 = arith.constant 16 : i32
      %251 = arith.muli %250, %c16_i32_125 : i32
      %252 = arith.addi %2, %251 : i32
      %c2_i32 = arith.constant 2 : i32
      %c0_i32_126 = arith.constant 0 : i32
      %253 = tpu.memref_slice %arg2[%252, %c0_i32_126] : memref<512x4xbf16, #tpu.memory_space<any>> -> memref<32x4xbf16, #tpu.memory_space<any>>
      %c160_i32 = arith.constant 160 : i32
      %c0_i32_127 = arith.constant 0 : i32
      %254 = tpu.memref_slice %arg10[%c160_i32, %c0_i32_127] : memref<192x4xbf16, #tpu.memory_space<vmem>> -> memref<32x4xbf16, #tpu.memory_space<vmem>>
      %255 = tpu.memref_slice %arg12[%c2_i32] : memref<3x!tpu.dma_semaphore, #tpu.memory_space<semaphore_mem>> -> memref<1x!tpu.dma_semaphore, #tpu.memory_space<semaphore_mem>>
      %256 = tpu.memref_squeeze %255 : memref<1x!tpu.dma_semaphore, #tpu.memory_space<semaphore_mem>> -> memref<!tpu.dma_semaphore, #tpu.memory_space<semaphore_mem>>
      tpu.enqueue_dma source(%253 : memref<32x4xbf16, #tpu.memory_space<any>>) target(%254 : memref<32x4xbf16, #tpu.memory_space<vmem>>) target_semaphore(%256 : memref<!tpu.dma_semaphore, #tpu.memory_space<semaphore_mem>>)
    } else {
    }
    %c16_i32_7 = arith.constant 16 : i32
    %15 = arith.muli %0, %c16_i32_7 : i32
    %16 = arith.addi %2, %15 : i32
    %c0_i32_8 = arith.constant 0 : i32
    %c0_i32_9 = arith.constant 0 : i32
    %17 = tpu.memref_slice %arg2[%16, %c0_i32_9] : memref<512x4xbf16, #tpu.memory_space<any>> -> memref<128x4xbf16, #tpu.memory_space<any>>
    %c32_i32_10 = arith.constant 32 : i32
    %c0_i32_11 = arith.constant 0 : i32
    %18 = tpu.memref_slice %arg10[%c32_i32_10, %c0_i32_11] : memref<192x4xbf16, #tpu.memory_space<vmem>> -> memref<128x4xbf16, #tpu.memory_space<vmem>>
    %19 = tpu.memref_slice %arg12[%c0_i32_8] : memref<3x!tpu.dma_semaphore, #tpu.memory_space<semaphore_mem>> -> memref<1x!tpu.dma_semaphore, #tpu.memory_space<semaphore_mem>>
    %20 = tpu.memref_squeeze %19 : memref<1x!tpu.dma_semaphore, #tpu.memory_space<semaphore_mem>> -> memref<!tpu.dma_semaphore, #tpu.memory_space<semaphore_mem>>
    tpu.wait_dma2 semaphore(%20 : memref<!tpu.dma_semaphore, #tpu.memory_space<semaphore_mem>>) src(%17 : memref<128x4xbf16, #tpu.memory_space<any>>) dst(%18 : memref<128x4xbf16, #tpu.memory_space<vmem>>)
    %c0_i32_12 = arith.constant 0 : i32
    %21 = arith.cmpi sgt, %arg1, %c0_i32_12 : i32
    %22 = arith.extui %21 : i1 to i32
    %c0_i32_13 = arith.constant 0 : i32
    %23 = arith.cmpi ne, %22, %c0_i32_13 : i32
    scf.if %23 {
      %c2_i32 = arith.constant 2 : i32
      %249 = arith.maxsi %0, %c2_i32 : i32
      %c2_i32_124 = arith.constant 2 : i32
      %250 = arith.subi %249, %c2_i32_124 : i32
      %c16_i32_125 = arith.constant 16 : i32
      %251 = arith.muli %250, %c16_i32_125 : i32
      %252 = arith.addi %2, %251 : i32
      %c1_i32_126 = arith.constant 1 : i32
      %c0_i32_127 = arith.constant 0 : i32
      %253 = tpu.memref_slice %arg2[%252, %c0_i32_127] : memref<512x4xbf16, #tpu.memory_space<any>> -> memref<32x4xbf16, #tpu.memory_space<any>>
      %c0_i32_128 = arith.constant 0 : i32
      %c0_i32_129 = arith.constant 0 : i32
      %254 = tpu.memref_slice %arg10[%c0_i32_128, %c0_i32_129] : memref<192x4xbf16, #tpu.memory_space<vmem>> -> memref<32x4xbf16, #tpu.memory_space<vmem>>
      %255 = tpu.memref_slice %arg12[%c1_i32_126] : memref<3x!tpu.dma_semaphore, #tpu.memory_space<semaphore_mem>> -> memref<1x!tpu.dma_semaphore, #tpu.memory_space<semaphore_mem>>
      %256 = tpu.memref_squeeze %255 : memref<1x!tpu.dma_semaphore, #tpu.memory_space<semaphore_mem>> -> memref<!tpu.dma_semaphore, #tpu.memory_space<semaphore_mem>>
      tpu.wait_dma2 semaphore(%256 : memref<!tpu.dma_semaphore, #tpu.memory_space<semaphore_mem>>) src(%253 : memref<32x4xbf16, #tpu.memory_space<any>>) dst(%254 : memref<32x4xbf16, #tpu.memory_space<vmem>>)
    } else {
    }
    %c1_i32_14 = arith.constant 1 : i32
    %24 = arith.cmpi slt, %arg1, %c1_i32_14 : i32
    %25 = arith.extui %24 : i1 to i32
    %c0_i32_15 = arith.constant 0 : i32
    %26 = arith.cmpi ne, %25, %c0_i32_15 : i32
    scf.if %26 {
      %c8_i32_124 = arith.constant 8 : i32
      %249 = arith.addi %0, %c8_i32_124 : i32
      %c14_i32 = arith.constant 14 : i32
      %250 = arith.minsi %249, %c14_i32 : i32
      %c16_i32_125 = arith.constant 16 : i32
      %251 = arith.muli %250, %c16_i32_125 : i32
      %252 = arith.addi %2, %251 : i32
      %c2_i32 = arith.constant 2 : i32
      %c0_i32_126 = arith.constant 0 : i32
      %253 = tpu.memref_slice %arg2[%252, %c0_i32_126] : memref<512x4xbf16, #tpu.memory_space<any>> -> memref<32x4xbf16, #tpu.memory_space<any>>
      %c160_i32 = arith.constant 160 : i32
      %c0_i32_127 = arith.constant 0 : i32
      %254 = tpu.memref_slice %arg10[%c160_i32, %c0_i32_127] : memref<192x4xbf16, #tpu.memory_space<vmem>> -> memref<32x4xbf16, #tpu.memory_space<vmem>>
      %255 = tpu.memref_slice %arg12[%c2_i32] : memref<3x!tpu.dma_semaphore, #tpu.memory_space<semaphore_mem>> -> memref<1x!tpu.dma_semaphore, #tpu.memory_space<semaphore_mem>>
      %256 = tpu.memref_squeeze %255 : memref<1x!tpu.dma_semaphore, #tpu.memory_space<semaphore_mem>> -> memref<!tpu.dma_semaphore, #tpu.memory_space<semaphore_mem>>
      tpu.wait_dma2 semaphore(%256 : memref<!tpu.dma_semaphore, #tpu.memory_space<semaphore_mem>>) src(%253 : memref<32x4xbf16, #tpu.memory_space<any>>) dst(%254 : memref<32x4xbf16, #tpu.memory_space<vmem>>)
    } else {
    }
    %c0 = arith.constant 0 : index
    %c0_16 = arith.constant 0 : index
    %27 = vector.load %arg10[%c0, %c0_16] : memref<192x4xbf16, #tpu.memory_space<vmem>>, vector<192x4xbf16>
    %c0_17 = arith.constant 0 : index
    %c0_18 = arith.constant 0 : index
    %28 = vector.load %arg3[%c0_17, %c0_18] : memref<4x4xbf16, #tpu.memory_space<vmem>>, vector<4x4xbf16>
    %cst = arith.constant dense<0.000000e+00> : vector<192x4xf32>
    %29 = tpu.matmul %27, %28, %cst {dimension_numbers = #tpu.dot_dimension_numbers<[1], [0], [0], [1], [0, 0, 1, 1], [], []>} : vector<192x4xbf16>, vector<4x4xbf16>, vector<192x4xf32> -> vector<192x4xf32>
    %c0_19 = arith.constant 0 : index
    %c0_20 = arith.constant 0 : index
    %30 = vector.load %arg4[%c0_19, %c0_20] : memref<1x4xf32, #tpu.memory_space<vmem>>, vector<1x4xf32>
    %31 = vector.broadcast %30 : vector<1x4xf32> to vector<192x4xf32>
    %32 = arith.mulf %29, %31 : vector<192x4xf32>
    %c0_21 = arith.constant 0 : index
    %c0_22 = arith.constant 0 : index
    %33 = vector.load %arg5[%c0_21, %c0_22] : memref<1x4xf32, #tpu.memory_space<vmem>>, vector<1x4xf32>
    %34 = vector.broadcast %33 : vector<1x4xf32> to vector<192x4xf32>
    %35 = arith.addf %32, %34 : vector<192x4xf32>
    %36 = arith.negf %35 : vector<192x4xf32>
    %37 = math.exp %36 : vector<192x4xf32>
    %cst_23 = arith.constant 1.000000e+00 : f32
    %38 = vector.broadcast %cst_23 : f32 to vector<192x4xf32>
    %39 = arith.addf %38, %37 : vector<192x4xf32>
    %40 = arith.divf %38, %39 : vector<192x4xf32>
    %41 = arith.mulf %35, %40 : vector<192x4xf32>
    %42 = vector.shape_cast %41 : vector<192x4xf32> to vector<12x16x4xf32>
    %c0_24 = arith.constant 0 : index
    %c2 = arith.constant 2 : index
    %c0_25 = arith.constant 0 : index
    %43 = vector.load %arg11[%c0_24, %c2, %c0_25] : memref<12x20x4xf32, #tpu.memory_space<vmem>>, vector<12x16x4xf32>
    tpu.vector_store %arg11[%c0_24, %c2, %c0_25], %42 {strides = array<i32>} : memref<12x20x4xf32, #tpu.memory_space<vmem>>, vector<12x16x4xf32>,
    %cst_26 = arith.constant 0.000000e+00 : f32
    %44 = vector.broadcast %cst_26 : f32 to vector<12x2x4xf32>
    %c0_27 = arith.constant 0 : index
    %c0_28 = arith.constant 0 : index
    %c0_29 = arith.constant 0 : index
    %45 = vector.load %arg11[%c0_27, %c0_28, %c0_29] : memref<12x20x4xf32, #tpu.memory_space<vmem>>, vector<12x2x4xf32>
    tpu.vector_store %arg11[%c0_27, %c0_28, %c0_29], %44 {strides = array<i32>} : memref<12x20x4xf32, #tpu.memory_space<vmem>>, vector<12x2x4xf32>,
    %c0_30 = arith.constant 0 : index
    %c18 = arith.constant 18 : index
    %c0_31 = arith.constant 0 : index
    %46 = vector.load %arg11[%c0_30, %c18, %c0_31] : memref<12x20x4xf32, #tpu.memory_space<vmem>>, vector<12x2x4xf32>
    tpu.vector_store %arg11[%c0_30, %c18, %c0_31], %44 {strides = array<i32>} : memref<12x20x4xf32, #tpu.memory_space<vmem>>, vector<12x2x4xf32>,
    %c0_i32_32 = arith.constant 0 : i32
    %47 = arith.cmpi eq, %arg1, %c0_i32_32 : i32
    %48 = arith.extui %47 : i1 to i32
    %c0_i32_33 = arith.constant 0 : i32
    %49 = arith.cmpi ne, %48, %c0_i32_33 : i32
    scf.if %49 {
      %cst_124 = arith.constant 0.000000e+00 : f32
      %249 = vector.broadcast %cst_124 : f32 to vector<2x20x4xf32>
      %c0_125 = arith.constant 0 : index
      %c0_126 = arith.constant 0 : index
      %c0_127 = arith.constant 0 : index
      %250 = vector.load %arg11[%c0_125, %c0_126, %c0_127] : memref<12x20x4xf32, #tpu.memory_space<vmem>>, vector<2x20x4xf32>
      tpu.vector_store %arg11[%c0_125, %c0_126, %c0_127], %249 {strides = array<i32>} : memref<12x20x4xf32, #tpu.memory_space<vmem>>, vector<2x20x4xf32>,
    } else {
    }
    %c1_i32_34 = arith.constant 1 : i32
    %50 = arith.cmpi eq, %arg1, %c1_i32_34 : i32
    %51 = arith.extui %50 : i1 to i32
    %c0_i32_35 = arith.constant 0 : i32
    %52 = arith.cmpi ne, %51, %c0_i32_35 : i32
    scf.if %52 {
      %cst_124 = arith.constant 0.000000e+00 : f32
      %249 = vector.broadcast %cst_124 : f32 to vector<2x20x4xf32>
      %c10 = arith.constant 10 : index
      %c0_125 = arith.constant 0 : index
      %c0_126 = arith.constant 0 : index
      %250 = vector.load %arg11[%c10, %c0_125, %c0_126] : memref<12x20x4xf32, #tpu.memory_space<vmem>>, vector<2x20x4xf32>
      tpu.vector_store %arg11[%c10, %c0_125, %c0_126], %249 {strides = array<i32>} : memref<12x20x4xf32, #tpu.memory_space<vmem>>, vector<2x20x4xf32>,
    } else {
    }
    %c0_36 = arith.constant 0 : index
    %c0_37 = arith.constant 0 : index
    %c0_38 = arith.constant 0 : index
    %53 = vector.load %arg6[%c0_36, %c0_37, %c0_38] : memref<5x5x4xf32, #tpu.memory_space<vmem>>, vector<5x5x4xf32>
    %cst_39 = arith.constant 0.000000e+00 : f32
    %54 = vector.broadcast %cst_39 : f32 to vector<8x16x4xf32>
    %c0_40 = arith.constant 0 : index
    %c0_41 = arith.constant 0 : index
    %c0_42 = arith.constant 0 : index
    %55 = vector.load %arg11[%c0_40, %c0_41, %c0_42] : memref<12x20x4xf32, #tpu.memory_space<vmem>>, vector<8x16x4xf32>
    %56 = vector.extract_strided_slice %53 {offsets = [0, 0, 0], sizes = [1, 1, 4], strides = [1, 1, 1]} : vector<5x5x4xf32> to vector<1x1x4xf32>
    %57 = vector.shape_cast %56 : vector<1x1x4xf32> to vector<4xf32>
    %58 = vector.shape_cast %57 : vector<4xf32> to vector<1x1x4xf32>
    %59 = vector.broadcast %58 : vector<1x1x4xf32> to vector<8x16x4xf32>
    %60 = arith.mulf %55, %59 : vector<8x16x4xf32>
    %61 = arith.addf %54, %60 : vector<8x16x4xf32>
    %c0_43 = arith.constant 0 : index
    %c1 = arith.constant 1 : index
    %c0_44 = arith.constant 0 : index
    %62 = vector.load %arg11[%c0_43, %c1, %c0_44] : memref<12x20x4xf32, #tpu.memory_space<vmem>>, vector<8x16x4xf32>
    %63 = vector.extract_strided_slice %53 {offsets = [0, 1, 0], sizes = [1, 1, 4], strides = [1, 1, 1]} : vector<5x5x4xf32> to vector<1x1x4xf32>
    %64 = vector.shape_cast %63 : vector<1x1x4xf32> to vector<4xf32>
    %65 = vector.shape_cast %64 : vector<4xf32> to vector<1x1x4xf32>
    %66 = vector.broadcast %65 : vector<1x1x4xf32> to vector<8x16x4xf32>
    %67 = arith.mulf %62, %66 : vector<8x16x4xf32>
    %68 = arith.addf %61, %67 : vector<8x16x4xf32>
    %c0_45 = arith.constant 0 : index
    %c2_46 = arith.constant 2 : index
    %c0_47 = arith.constant 0 : index
    %69 = vector.load %arg11[%c0_45, %c2_46, %c0_47] : memref<12x20x4xf32, #tpu.memory_space<vmem>>, vector<8x16x4xf32>
    %70 = vector.extract_strided_slice %53 {offsets = [0, 2, 0], sizes = [1, 1, 4], strides = [1, 1, 1]} : vector<5x5x4xf32> to vector<1x1x4xf32>
    %71 = vector.shape_cast %70 : vector<1x1x4xf32> to vector<4xf32>
    %72 = vector.shape_cast %71 : vector<4xf32> to vector<1x1x4xf32>
    %73 = vector.broadcast %72 : vector<1x1x4xf32> to vector<8x16x4xf32>
    %74 = arith.mulf %69, %73 : vector<8x16x4xf32>
    %75 = arith.addf %68, %74 : vector<8x16x4xf32>
    %c0_48 = arith.constant 0 : index
    %c3 = arith.constant 3 : index
    %c0_49 = arith.constant 0 : index
    %76 = vector.load %arg11[%c0_48, %c3, %c0_49] : memref<12x20x4xf32, #tpu.memory_space<vmem>>, vector<8x16x4xf32>
    %77 = vector.extract_strided_slice %53 {offsets = [0, 3, 0], sizes = [1, 1, 4], strides = [1, 1, 1]} : vector<5x5x4xf32> to vector<1x1x4xf32>
    %78 = vector.shape_cast %77 : vector<1x1x4xf32> to vector<4xf32>
    %79 = vector.shape_cast %78 : vector<4xf32> to vector<1x1x4xf32>
    %80 = vector.broadcast %79 : vector<1x1x4xf32> to vector<8x16x4xf32>
    %81 = arith.mulf %76, %80 : vector<8x16x4xf32>
    %82 = arith.addf %75, %81 : vector<8x16x4xf32>
    %c0_50 = arith.constant 0 : index
    %c4 = arith.constant 4 : index
    %c0_51 = arith.constant 0 : index
    %83 = vector.load %arg11[%c0_50, %c4, %c0_51] : memref<12x20x4xf32, #tpu.memory_space<vmem>>, vector<8x16x4xf32>
    %84 = vector.extract_strided_slice %53 {offsets = [0, 4, 0], sizes = [1, 1, 4], strides = [1, 1, 1]} : vector<5x5x4xf32> to vector<1x1x4xf32>
    %85 = vector.shape_cast %84 : vector<1x1x4xf32> to vector<4xf32>
    %86 = vector.shape_cast %85 : vector<4xf32> to vector<1x1x4xf32>
    %87 = vector.broadcast %86 : vector<1x1x4xf32> to vector<8x16x4xf32>
    %88 = arith.mulf %83, %87 : vector<8x16x4xf32>
    %89 = arith.addf %82, %88 : vector<8x16x4xf32>
    %c1_52 = arith.constant 1 : index
    %c0_53 = arith.constant 0 : index
    %c0_54 = arith.constant 0 : index
    %90 = vector.load %arg11[%c1_52, %c0_53, %c0_54] : memref<12x20x4xf32, #tpu.memory_space<vmem>>, vector<8x16x4xf32>
    %91 = vector.extract_strided_slice %53 {offsets = [1, 0, 0], sizes = [1, 1, 4], strides = [1, 1, 1]} : vector<5x5x4xf32> to vector<1x1x4xf32>
    %92 = vector.shape_cast %91 : vector<1x1x4xf32> to vector<4xf32>
    %93 = vector.shape_cast %92 : vector<4xf32> to vector<1x1x4xf32>
    %94 = vector.broadcast %93 : vector<1x1x4xf32> to vector<8x16x4xf32>
    %95 = arith.mulf %90, %94 : vector<8x16x4xf32>
    %96 = arith.addf %89, %95 : vector<8x16x4xf32>
    %c1_55 = arith.constant 1 : index
    %c1_56 = arith.constant 1 : index
    %c0_57 = arith.constant 0 : index
    %97 = vector.load %arg11[%c1_55, %c1_56, %c0_57] : memref<12x20x4xf32, #tpu.memory_space<vmem>>, vector<8x16x4xf32>
    %98 = vector.extract_strided_slice %53 {offsets = [1, 1, 0], sizes = [1, 1, 4], strides = [1, 1, 1]} : vector<5x5x4xf32> to vector<1x1x4xf32>
    %99 = vector.shape_cast %98 : vector<1x1x4xf32> to vector<4xf32>
    %100 = vector.shape_cast %99 : vector<4xf32> to vector<1x1x4xf32>
    %101 = vector.broadcast %100 : vector<1x1x4xf32> to vector<8x16x4xf32>
    %102 = arith.mulf %97, %101 : vector<8x16x4xf32>
    %103 = arith.addf %96, %102 : vector<8x16x4xf32>
    %c1_58 = arith.constant 1 : index
    %c2_59 = arith.constant 2 : index
    %c0_60 = arith.constant 0 : index
    %104 = vector.load %arg11[%c1_58, %c2_59, %c0_60] : memref<12x20x4xf32, #tpu.memory_space<vmem>>, vector<8x16x4xf32>
    %105 = vector.extract_strided_slice %53 {offsets = [1, 2, 0], sizes = [1, 1, 4], strides = [1, 1, 1]} : vector<5x5x4xf32> to vector<1x1x4xf32>
    %106 = vector.shape_cast %105 : vector<1x1x4xf32> to vector<4xf32>
    %107 = vector.shape_cast %106 : vector<4xf32> to vector<1x1x4xf32>
    %108 = vector.broadcast %107 : vector<1x1x4xf32> to vector<8x16x4xf32>
    %109 = arith.mulf %104, %108 : vector<8x16x4xf32>
    %110 = arith.addf %103, %109 : vector<8x16x4xf32>
    %c1_61 = arith.constant 1 : index
    %c3_62 = arith.constant 3 : index
    %c0_63 = arith.constant 0 : index
    %111 = vector.load %arg11[%c1_61, %c3_62, %c0_63] : memref<12x20x4xf32, #tpu.memory_space<vmem>>, vector<8x16x4xf32>
    %112 = vector.extract_strided_slice %53 {offsets = [1, 3, 0], sizes = [1, 1, 4], strides = [1, 1, 1]} : vector<5x5x4xf32> to vector<1x1x4xf32>
    %113 = vector.shape_cast %112 : vector<1x1x4xf32> to vector<4xf32>
    %114 = vector.shape_cast %113 : vector<4xf32> to vector<1x1x4xf32>
    %115 = vector.broadcast %114 : vector<1x1x4xf32> to vector<8x16x4xf32>
    %116 = arith.mulf %111, %115 : vector<8x16x4xf32>
    %117 = arith.addf %110, %116 : vector<8x16x4xf32>
    %c1_64 = arith.constant 1 : index
    %c4_65 = arith.constant 4 : index
    %c0_66 = arith.constant 0 : index
    %118 = vector.load %arg11[%c1_64, %c4_65, %c0_66] : memref<12x20x4xf32, #tpu.memory_space<vmem>>, vector<8x16x4xf32>
    %119 = vector.extract_strided_slice %53 {offsets = [1, 4, 0], sizes = [1, 1, 4], strides = [1, 1, 1]} : vector<5x5x4xf32> to vector<1x1x4xf32>
    %120 = vector.shape_cast %119 : vector<1x1x4xf32> to vector<4xf32>
    %121 = vector.shape_cast %120 : vector<4xf32> to vector<1x1x4xf32>
    %122 = vector.broadcast %121 : vector<1x1x4xf32> to vector<8x16x4xf32>
    %123 = arith.mulf %118, %122 : vector<8x16x4xf32>
    %124 = arith.addf %117, %123 : vector<8x16x4xf32>
    %c2_67 = arith.constant 2 : index
    %c0_68 = arith.constant 0 : index
    %c0_69 = arith.constant 0 : index
    %125 = vector.load %arg11[%c2_67, %c0_68, %c0_69] : memref<12x20x4xf32, #tpu.memory_space<vmem>>, vector<8x16x4xf32>
    %126 = vector.extract_strided_slice %53 {offsets = [2, 0, 0], sizes = [1, 1, 4], strides = [1, 1, 1]} : vector<5x5x4xf32> to vector<1x1x4xf32>
    %127 = vector.shape_cast %126 : vector<1x1x4xf32> to vector<4xf32>
    %128 = vector.shape_cast %127 : vector<4xf32> to vector<1x1x4xf32>
    %129 = vector.broadcast %128 : vector<1x1x4xf32> to vector<8x16x4xf32>
    %130 = arith.mulf %125, %129 : vector<8x16x4xf32>
    %131 = arith.addf %124, %130 : vector<8x16x4xf32>
    %c2_70 = arith.constant 2 : index
    %c1_71 = arith.constant 1 : index
    %c0_72 = arith.constant 0 : index
    %132 = vector.load %arg11[%c2_70, %c1_71, %c0_72] : memref<12x20x4xf32, #tpu.memory_space<vmem>>, vector<8x16x4xf32>
    %133 = vector.extract_strided_slice %53 {offsets = [2, 1, 0], sizes = [1, 1, 4], strides = [1, 1, 1]} : vector<5x5x4xf32> to vector<1x1x4xf32>
    %134 = vector.shape_cast %133 : vector<1x1x4xf32> to vector<4xf32>
    %135 = vector.shape_cast %134 : vector<4xf32> to vector<1x1x4xf32>
    %136 = vector.broadcast %135 : vector<1x1x4xf32> to vector<8x16x4xf32>
    %137 = arith.mulf %132, %136 : vector<8x16x4xf32>
    %138 = arith.addf %131, %137 : vector<8x16x4xf32>
    %c2_73 = arith.constant 2 : index
    %c2_74 = arith.constant 2 : index
    %c0_75 = arith.constant 0 : index
    %139 = vector.load %arg11[%c2_73, %c2_74, %c0_75] : memref<12x20x4xf32, #tpu.memory_space<vmem>>, vector<8x16x4xf32>
    %140 = vector.extract_strided_slice %53 {offsets = [2, 2, 0], sizes = [1, 1, 4], strides = [1, 1, 1]} : vector<5x5x4xf32> to vector<1x1x4xf32>
    %141 = vector.shape_cast %140 : vector<1x1x4xf32> to vector<4xf32>
    %142 = vector.shape_cast %141 : vector<4xf32> to vector<1x1x4xf32>
    %143 = vector.broadcast %142 : vector<1x1x4xf32> to vector<8x16x4xf32>
    %144 = arith.mulf %139, %143 : vector<8x16x4xf32>
    %145 = arith.addf %138, %144 : vector<8x16x4xf32>
    %c2_76 = arith.constant 2 : index
    %c3_77 = arith.constant 3 : index
    %c0_78 = arith.constant 0 : index
    %146 = vector.load %arg11[%c2_76, %c3_77, %c0_78] : memref<12x20x4xf32, #tpu.memory_space<vmem>>, vector<8x16x4xf32>
    %147 = vector.extract_strided_slice %53 {offsets = [2, 3, 0], sizes = [1, 1, 4], strides = [1, 1, 1]} : vector<5x5x4xf32> to vector<1x1x4xf32>
    %148 = vector.shape_cast %147 : vector<1x1x4xf32> to vector<4xf32>
    %149 = vector.shape_cast %148 : vector<4xf32> to vector<1x1x4xf32>
    %150 = vector.broadcast %149 : vector<1x1x4xf32> to vector<8x16x4xf32>
    %151 = arith.mulf %146, %150 : vector<8x16x4xf32>
    %152 = arith.addf %145, %151 : vector<8x16x4xf32>
    %c2_79 = arith.constant 2 : index
    %c4_80 = arith.constant 4 : index
    %c0_81 = arith.constant 0 : index
    %153 = vector.load %arg11[%c2_79, %c4_80, %c0_81] : memref<12x20x4xf32, #tpu.memory_space<vmem>>, vector<8x16x4xf32>
    %154 = vector.extract_strided_slice %53 {offsets = [2, 4, 0], sizes = [1, 1, 4], strides = [1, 1, 1]} : vector<5x5x4xf32> to vector<1x1x4xf32>
    %155 = vector.shape_cast %154 : vector<1x1x4xf32> to vector<4xf32>
    %156 = vector.shape_cast %155 : vector<4xf32> to vector<1x1x4xf32>
    %157 = vector.broadcast %156 : vector<1x1x4xf32> to vector<8x16x4xf32>
    %158 = arith.mulf %153, %157 : vector<8x16x4xf32>
    %159 = arith.addf %152, %158 : vector<8x16x4xf32>
    %c3_82 = arith.constant 3 : index
    %c0_83 = arith.constant 0 : index
    %c0_84 = arith.constant 0 : index
    %160 = vector.load %arg11[%c3_82, %c0_83, %c0_84] : memref<12x20x4xf32, #tpu.memory_space<vmem>>, vector<8x16x4xf32>
    %161 = vector.extract_strided_slice %53 {offsets = [3, 0, 0], sizes = [1, 1, 4], strides = [1, 1, 1]} : vector<5x5x4xf32> to vector<1x1x4xf32>
    %162 = vector.shape_cast %161 : vector<1x1x4xf32> to vector<4xf32>
    %163 = vector.shape_cast %162 : vector<4xf32> to vector<1x1x4xf32>
    %164 = vector.broadcast %163 : vector<1x1x4xf32> to vector<8x16x4xf32>
    %165 = arith.mulf %160, %164 : vector<8x16x4xf32>
    %166 = arith.addf %159, %165 : vector<8x16x4xf32>
    %c3_85 = arith.constant 3 : index
    %c1_86 = arith.constant 1 : index
    %c0_87 = arith.constant 0 : index
    %167 = vector.load %arg11[%c3_85, %c1_86, %c0_87] : memref<12x20x4xf32, #tpu.memory_space<vmem>>, vector<8x16x4xf32>
    %168 = vector.extract_strided_slice %53 {offsets = [3, 1, 0], sizes = [1, 1, 4], strides = [1, 1, 1]} : vector<5x5x4xf32> to vector<1x1x4xf32>
    %169 = vector.shape_cast %168 : vector<1x1x4xf32> to vector<4xf32>
    %170 = vector.shape_cast %169 : vector<4xf32> to vector<1x1x4xf32>
    %171 = vector.broadcast %170 : vector<1x1x4xf32> to vector<8x16x4xf32>
    %172 = arith.mulf %167, %171 : vector<8x16x4xf32>
    %173 = arith.addf %166, %172 : vector<8x16x4xf32>
    %c3_88 = arith.constant 3 : index
    %c2_89 = arith.constant 2 : index
    %c0_90 = arith.constant 0 : index
    %174 = vector.load %arg11[%c3_88, %c2_89, %c0_90] : memref<12x20x4xf32, #tpu.memory_space<vmem>>, vector<8x16x4xf32>
    %175 = vector.extract_strided_slice %53 {offsets = [3, 2, 0], sizes = [1, 1, 4], strides = [1, 1, 1]} : vector<5x5x4xf32> to vector<1x1x4xf32>
    %176 = vector.shape_cast %175 : vector<1x1x4xf32> to vector<4xf32>
    %177 = vector.shape_cast %176 : vector<4xf32> to vector<1x1x4xf32>
    %178 = vector.broadcast %177 : vector<1x1x4xf32> to vector<8x16x4xf32>
    %179 = arith.mulf %174, %178 : vector<8x16x4xf32>
    %180 = arith.addf %173, %179 : vector<8x16x4xf32>
    %c3_91 = arith.constant 3 : index
    %c3_92 = arith.constant 3 : index
    %c0_93 = arith.constant 0 : index
    %181 = vector.load %arg11[%c3_91, %c3_92, %c0_93] : memref<12x20x4xf32, #tpu.memory_space<vmem>>, vector<8x16x4xf32>
    %182 = vector.extract_strided_slice %53 {offsets = [3, 3, 0], sizes = [1, 1, 4], strides = [1, 1, 1]} : vector<5x5x4xf32> to vector<1x1x4xf32>
    %183 = vector.shape_cast %182 : vector<1x1x4xf32> to vector<4xf32>
    %184 = vector.shape_cast %183 : vector<4xf32> to vector<1x1x4xf32>
    %185 = vector.broadcast %184 : vector<1x1x4xf32> to vector<8x16x4xf32>
    %186 = arith.mulf %181, %185 : vector<8x16x4xf32>
    %187 = arith.addf %180, %186 : vector<8x16x4xf32>
    %c3_94 = arith.constant 3 : index
    %c4_95 = arith.constant 4 : index
    %c0_96 = arith.constant 0 : index
    %188 = vector.load %arg11[%c3_94, %c4_95, %c0_96] : memref<12x20x4xf32, #tpu.memory_space<vmem>>, vector<8x16x4xf32>
    %189 = vector.extract_strided_slice %53 {offsets = [3, 4, 0], sizes = [1, 1, 4], strides = [1, 1, 1]} : vector<5x5x4xf32> to vector<1x1x4xf32>
    %190 = vector.shape_cast %189 : vector<1x1x4xf32> to vector<4xf32>
    %191 = vector.shape_cast %190 : vector<4xf32> to vector<1x1x4xf32>
    %192 = vector.broadcast %191 : vector<1x1x4xf32> to vector<8x16x4xf32>
    %193 = arith.mulf %188, %192 : vector<8x16x4xf32>
    %194 = arith.addf %187, %193 : vector<8x16x4xf32>
    %c4_97 = arith.constant 4 : index
    %c0_98 = arith.constant 0 : index
    %c0_99 = arith.constant 0 : index
    %195 = vector.load %arg11[%c4_97, %c0_98, %c0_99] : memref<12x20x4xf32, #tpu.memory_space<vmem>>, vector<8x16x4xf32>
    %196 = vector.extract_strided_slice %53 {offsets = [4, 0, 0], sizes = [1, 1, 4], strides = [1, 1, 1]} : vector<5x5x4xf32> to vector<1x1x4xf32>
    %197 = vector.shape_cast %196 : vector<1x1x4xf32> to vector<4xf32>
    %198 = vector.shape_cast %197 : vector<4xf32> to vector<1x1x4xf32>
    %199 = vector.broadcast %198 : vector<1x1x4xf32> to vector<8x16x4xf32>
    %200 = arith.mulf %195, %199 : vector<8x16x4xf32>
    %201 = arith.addf %194, %200 : vector<8x16x4xf32>
    %c4_100 = arith.constant 4 : index
    %c1_101 = arith.constant 1 : index
    %c0_102 = arith.constant 0 : index
    %202 = vector.load %arg11[%c4_100, %c1_101, %c0_102] : memref<12x20x4xf32, #tpu.memory_space<vmem>>, vector<8x16x4xf32>
    %203 = vector.extract_strided_slice %53 {offsets = [4, 1, 0], sizes = [1, 1, 4], strides = [1, 1, 1]} : vector<5x5x4xf32> to vector<1x1x4xf32>
    %204 = vector.shape_cast %203 : vector<1x1x4xf32> to vector<4xf32>
    %205 = vector.shape_cast %204 : vector<4xf32> to vector<1x1x4xf32>
    %206 = vector.broadcast %205 : vector<1x1x4xf32> to vector<8x16x4xf32>
    %207 = arith.mulf %202, %206 : vector<8x16x4xf32>
    %208 = arith.addf %201, %207 : vector<8x16x4xf32>
    %c4_103 = arith.constant 4 : index
    %c2_104 = arith.constant 2 : index
    %c0_105 = arith.constant 0 : index
    %209 = vector.load %arg11[%c4_103, %c2_104, %c0_105] : memref<12x20x4xf32, #tpu.memory_space<vmem>>, vector<8x16x4xf32>
    %210 = vector.extract_strided_slice %53 {offsets = [4, 2, 0], sizes = [1, 1, 4], strides = [1, 1, 1]} : vector<5x5x4xf32> to vector<1x1x4xf32>
    %211 = vector.shape_cast %210 : vector<1x1x4xf32> to vector<4xf32>
    %212 = vector.shape_cast %211 : vector<4xf32> to vector<1x1x4xf32>
    %213 = vector.broadcast %212 : vector<1x1x4xf32> to vector<8x16x4xf32>
    %214 = arith.mulf %209, %213 : vector<8x16x4xf32>
    %215 = arith.addf %208, %214 : vector<8x16x4xf32>
    %c4_106 = arith.constant 4 : index
    %c3_107 = arith.constant 3 : index
    %c0_108 = arith.constant 0 : index
    %216 = vector.load %arg11[%c4_106, %c3_107, %c0_108] : memref<12x20x4xf32, #tpu.memory_space<vmem>>, vector<8x16x4xf32>
    %217 = vector.extract_strided_slice %53 {offsets = [4, 3, 0], sizes = [1, 1, 4], strides = [1, 1, 1]} : vector<5x5x4xf32> to vector<1x1x4xf32>
    %218 = vector.shape_cast %217 : vector<1x1x4xf32> to vector<4xf32>
    %219 = vector.shape_cast %218 : vector<4xf32> to vector<1x1x4xf32>
    %220 = vector.broadcast %219 : vector<1x1x4xf32> to vector<8x16x4xf32>
    %221 = arith.mulf %216, %220 : vector<8x16x4xf32>
    %222 = arith.addf %215, %221 : vector<8x16x4xf32>
    %c4_109 = arith.constant 4 : index
    %c4_110 = arith.constant 4 : index
    %c0_111 = arith.constant 0 : index
    %223 = vector.load %arg11[%c4_109, %c4_110, %c0_111] : memref<12x20x4xf32, #tpu.memory_space<vmem>>, vector<8x16x4xf32>
    %224 = vector.extract_strided_slice %53 {offsets = [4, 4, 0], sizes = [1, 1, 4], strides = [1, 1, 1]} : vector<5x5x4xf32> to vector<1x1x4xf32>
    %225 = vector.shape_cast %224 : vector<1x1x4xf32> to vector<4xf32>
    %226 = vector.shape_cast %225 : vector<4xf32> to vector<1x1x4xf32>
    %227 = vector.broadcast %226 : vector<1x1x4xf32> to vector<8x16x4xf32>
    %228 = arith.mulf %223, %227 : vector<8x16x4xf32>
    %229 = arith.addf %222, %228 : vector<8x16x4xf32>
    %c0_112 = arith.constant 0 : index
    %c0_113 = arith.constant 0 : index
    %230 = vector.load %arg7[%c0_112, %c0_113] : memref<1x4xf32, #tpu.memory_space<vmem>>, vector<1x4xf32>
    %231 = vector.shape_cast %230 : vector<1x4xf32> to vector<1x1x4xf32>
    %232 = vector.broadcast %231 : vector<1x1x4xf32> to vector<8x16x4xf32>
    %233 = arith.mulf %229, %232 : vector<8x16x4xf32>
    %c0_114 = arith.constant 0 : index
    %c0_115 = arith.constant 0 : index
    %234 = vector.load %arg8[%c0_114, %c0_115] : memref<1x4xf32, #tpu.memory_space<vmem>>, vector<1x4xf32>
    %235 = vector.shape_cast %234 : vector<1x4xf32> to vector<1x1x4xf32>
    %236 = vector.broadcast %235 : vector<1x1x4xf32> to vector<8x16x4xf32>
    %237 = arith.addf %233, %236 : vector<8x16x4xf32>
    %238 = arith.negf %237 : vector<8x16x4xf32>
    %239 = math.exp %238 : vector<8x16x4xf32>
    %cst_116 = arith.constant 1.000000e+00 : f32
    %240 = vector.broadcast %cst_116 : f32 to vector<8x16x4xf32>
    %241 = arith.addf %240, %239 : vector<8x16x4xf32>
    %242 = arith.divf %240, %241 : vector<8x16x4xf32>
    %243 = arith.mulf %237, %242 : vector<8x16x4xf32>
    %c2_117 = arith.constant 2 : index
    %c2_118 = arith.constant 2 : index
    %c0_119 = arith.constant 0 : index
    %244 = vector.load %arg11[%c2_117, %c2_118, %c0_119] : memref<12x20x4xf32, #tpu.memory_space<vmem>>, vector<8x16x4xf32>
    %245 = tpu.concatenate %244, %243 in 2 : vector<8x16x4xf32>, vector<8x16x4xf32> -> vector<8x16x8xf32>
    %c0_120 = arith.constant 0 : index
    %c0_121 = arith.constant 0 : index
    %c0_122 = arith.constant 0 : index
    %c0_123 = arith.constant 0 : index
    %246 = vector.load %arg9[%c0_120, %c0_121, %c0_122, %c0_123] : memref<1x8x16x8xf32, #tpu.memory_space<vmem>>, vector<1x8x16x8xf32>
    %247 = vector.shape_cast %246 : vector<1x8x16x8xf32> to vector<8x16x8xf32>
    %248 = vector.shape_cast %245 : vector<8x16x8xf32> to vector<1x8x16x8xf32>
    tpu.vector_store %arg9[%c0_120, %c0_121, %c0_122, %c0_123], %248 {strides = array<i32>} : memref<1x8x16x8xf32, #tpu.memory_space<vmem>>, vector<1x8x16x8xf32>,
    return
  }
  func.func @transform_1(%arg0: i32, %arg1: i32) -> (i32, i32) {
    %c0_i32 = arith.constant 0 : i32
    %c0_i32_0 = arith.constant 0 : i32
    %c0_i32_1 = arith.constant 0 : i32
    return %c0_i32, %c0_i32_0 : i32, i32
  }
  func.func @transform_2(%arg0: i32, %arg1: i32) -> (i32, i32) {
    %c0_i32 = arith.constant 0 : i32
    %c0_i32_0 = arith.constant 0 : i32
    %c0_i32_1 = arith.constant 0 : i32
    return %c0_i32, %c0_i32_0 : i32, i32
  }
  func.func @transform_3(%arg0: i32, %arg1: i32) -> (i32, i32) {
    %c0_i32 = arith.constant 0 : i32
    %c0_i32_0 = arith.constant 0 : i32
    %c0_i32_1 = arith.constant 0 : i32
    return %c0_i32, %c0_i32_0 : i32, i32
  }
  func.func @transform_4(%arg0: i32, %arg1: i32) -> (i32, i32, i32) {
    %c0_i32 = arith.constant 0 : i32
    %c0_i32_0 = arith.constant 0 : i32
    %c0_i32_1 = arith.constant 0 : i32
    %c0_i32_2 = arith.constant 0 : i32
    return %c0_i32, %c0_i32_0, %c0_i32_1 : i32, i32, i32
  }
  func.func @transform_5(%arg0: i32, %arg1: i32) -> (i32, i32) {
    %c0_i32 = arith.constant 0 : i32
    %c0_i32_0 = arith.constant 0 : i32
    %c0_i32_1 = arith.constant 0 : i32
    return %c0_i32, %c0_i32_0 : i32, i32
  }
  func.func @transform_6(%arg0: i32, %arg1: i32) -> (i32, i32) {
    %c0_i32 = arith.constant 0 : i32
    %c0_i32_0 = arith.constant 0 : i32
    %c0_i32_1 = arith.constant 0 : i32
    return %c0_i32, %c0_i32_0 : i32, i32
  }
  func.func @transform_7(%arg0: i32, %arg1: i32) -> (i32, i32, i32, i32) {
    %c0_i32 = arith.constant 0 : i32
    %c0_i32_0 = arith.constant 0 : i32
    %c0_i32_1 = arith.constant 0 : i32
    return %arg0, %arg1, %c0_i32, %c0_i32_0 : i32, i32, i32, i32
  }
}

</mosaic_0001>

<bundles_post_ra>
// kernel: ghost_conv_forward.1
= control target key start
LH: loop header
LB: loop body
LE: loop exit
PB: predicated region body
PF: predicated region fallthrough
CT: control target
= control target key end

     0   :  { %s3183_s24 = smov 0   ;;  %s3185_s25 = smov 0   ;;  %s4854_s0 = inlined_call_operand.vmem [shape: bf16[512,4], index: 0, kind: input, shape index: {}]   ;;  %s4855_s1 = inlined_call_operand.vmem [shape: bf16[4,4], index: 1, kind: input, shape index: {}]   ;;  %s4856_s2 = inlined_call_operand.vmem [shape: f32[1,4], index: 2, kind: input, shape index: {}]   ;;  %s4857_s3 = inlined_call_operand.vmem [shape: f32[1,4], index: 3, kind: input, shape index: {}]   ;;  %s4858_s4 = inlined_call_operand.vmem [shape: f32[5,5,4], index: 4, kind: input, shape index: {}]   ;;  %s4859_s5 = inlined_call_operand.vmem [shape: f32[1,4], index: 5, kind: input, shape index: {}]   ;;  %s4860_s6 = inlined_call_operand.vmem [shape: f32[1,4], index: 6, kind: input, shape index: {}]   ;;  %s4861_s7 = inlined_call_operand.vmem [shape: f32[2,16,16,8], index: 7, kind: output, shape index: {}]  }
   0x1   :  { %s3187_s26 = smov 0   ;;  %s3189_s27 = smov 0  }
   0x2   :  { %s3191_s28 = smov 0  }
   0x3 LB: > { %s26_s29 = sadd.s32 1, %s3129_s26  ;;  %s29_s30 = sadd.s32 1, %s3133_s27  ;;  %s3137_s28 = sphi %s3191_s28, %s17_s28   ;;  %s3133_s27 = sphi %s3189_s27, %s5380_s27   ;;  %s3129_s26 = sphi %s3187_s26, %s5379_s26   ;;  %s3125_s25 = sphi %s3185_s25, %s5378_s25   ;;  %s3121_s24 = sphi %s3183_s24, %s5377_s24  }
   0x4   : > { %p27_p0 = scmp.ge.s32.totalorder %s26_s29, 2  ;;  %p2716_p1 = scmp.ge.s32.totalorder %s3137_s28, 1 }
   0x5   : > { %p217_p2 = scmp.lt.s32.totalorder %s3137_s28, 5 }
   0x6   : > { %s5382_s29 = smov (%p27_p0, %s26_s29), 0  ;;  %s5384_s30 = smov (!%p27_p0, %s29_s30), %s3133_s27 }
   0x7   : > { %p218_p3 = pnand %p2716_p1, %p217_p2  ;;  %p31_p4 = scmp.ge.s32.totalorder %s5384_s30, 2 }
   0x9   : > { %s5386_s30 = smov (%p31_p4, %s5384_s30), 0  ;;  %221 = sbr.rel (%p218_p3) target bundleno = 775 (0x307), region = 44 }
   0xa   : > { %5057 = sst [smem:[#allocation11_spill]] %s5386_s30 }
   0xe   : > { %s3216_s8 = sshll.u32 %s3121_s24, 3  ;;  %p248_p5 = scmp.lt.s32.totalorder %s3125_s25, 1 }
   0xf   : > { %p250_p6 = scmp.lt.s32.totalorder %s3216_s8, 15  ;;  %s3219_s9 = sshll.u32 %s3125_s25, 8 }
  0x10   : > { %s5388_s25 = smov (!%p248_p5, %s3125_s25), 1  ;;  %s2723_s12 = sshll.u32 %s3121_s24, 7 }
  0x11   : > { %s251_s10 = scalar_select %p250_p6, %s3216_s8, 15 }
  0x12   : > { %s2719_s11 = sshll.u32 %s5388_s25, 5  ;;  %s262_s14 = sadd.s32 %s2723_s12, %s3219_s9 }
  0x13   : > { %s2718_s13 = sshll.u32 %s251_s10, 1  ;;  %s263_s16 = sshra.s32 %s262_s14, 3 }
  0x14   : > { %s254_s15 = sadd.s32 %s2719_s11, %s2718_s13  ;;  %s2724_s18 = sshll.u32 %s263_s16, 2 }
  0x15   : > { %s2720_s17 = sshll.u32 %s254_s15, 3  ;;  %s266_s30 = scalar_lea.vmem %s4854_s0, %s2724_s18 }
  0x16   : > { %s3227_s21 = scalar_lea.vmem %s4861_s7, %s2720_s17  ;;  %v301_v0 = vld [vmem:[%s266_s30] sm:$0xff]  ;;  %v303_v1 = vld [vmem:[%s266_s30 + $0x8] sm:$0xff]  ;;  %v305_v2 = vld [vmem:[%s266_s30 + $0x10] sm:$0xff] }
  0x17   : > { %302 = vst [vmem:[#allocation2 + $0x10] sm:$0xff] %v301_v0  ;;  %304 = vst [vmem:[#allocation2 + $0x18] sm:$0xff] %v303_v1  ;;  %v307_v3 = vld [vmem:[%s266_s30 + $0x18] sm:$0xff]  ;;  %v309_v4 = vld [vmem:[%s266_s30 + $0x20] sm:$0xff] }
  0x18   : > { %306 = vst [vmem:[#allocation2 + $0x20] sm:$0xff] %v305_v2  ;;  %v311_v5 = vld [vmem:[%s266_s30 + $0x28] sm:$0xff]  ;;  %308 = vst [vmem:[#allocation2 + $0x28] sm:$0xff] %v307_v3  ;;  %v313_v6 = vld [vmem:[%s266_s30 + $0x30] sm:$0xff] }
  0x19   : > { %310 = vst [vmem:[#allocation2 + $0x30] sm:$0xff] %v309_v4  ;;  %312 = vst [vmem:[#allocation2 + $0x38] sm:$0xff] %v311_v5  ;;  %v315_v7 = vld [vmem:[%s266_s30 + $0x38] sm:$0xff] }
  0x1a   : > { %314 = vst [vmem:[#allocation2 + $0x40] sm:$0xff] %v313_v6  ;;  %316 = vst [vmem:[#allocation2 + $0x48] sm:$0xff] %v315_v7 }
  0x1b   : > { %324 = vsyncadd [#allocation4], 1024  ;;  %p2725_p7 = scmp.le.s32.totalorder %s3121_s24, 0 }
  0x1c   : > { %p329_p8 = scmp.gt.s32.totalorder (!%p2725_p7), %s3216_s8, 2 }
  0x1d   : > { %328 = sbr.rel (%p2725_p7) target bundleno = 45 (0x2d), region = 82 }
  0x22   : > { %s330_s25 = scalar_select %p329_p8, %s3216_s8, 2 }
  0x24   : > { %s2726_s10 = sadd.s32 4294967294, %s330_s25 }
  0x25   : > { %s2727_s11 = sshll.u32 %s2726_s10, 4 }
  0x26   : > { %s333_s12 = sadd.s32 %s2727_s11, %s3219_s9 }
  0x27   : > { %s334_s13 = sshra.s32 %s333_s12, 3 }
  0x28   : > { %s2728_s14 = sshll.u32 %s334_s13, 2 }
  0x29   : > { %s337_s30 = scalar_lea.vmem %s4854_s0, %s2728_s14 }
  0x2a   : > { %v372_v8 = vld [vmem:[%s337_s30] sm:$0xff]  ;;  %v374_v9 = vld [vmem:[%s337_s30 + $0x8] sm:$0xff] }
  0x2b   : > { %373 = vst [vmem:[#allocation2] sm:$0xff] %v372_v8  ;;  %375 = vst [vmem:[#allocation2 + $0x8] sm:$0xff] %v374_v9 }
  0x2c   : > { %383 = vsyncadd [#allocation4 + $0x1], 256 }
  0x2d PF: > { %p2729_p9 = scmp.ge.s32.totalorder %s3121_s24, 1 }
  0x2e   : > { %s388_s17 = sadd.s32 (!%p2729_p9), 8, %s3216_s8 }
  0x2f   : > { %387 = sbr.rel (%p2729_p9) target bundleno = 61 (0x3d), region = 120  ;;  %p389_p10 = scmp.lt.s32.totalorder (!%p2729_p9), %s388_s17, 14 }
  0x34   : > { %s5390_s17 = smov (!%p389_p10, %s388_s17), 14 }
  0x35   : > { %s2730_s18 = sshll.u32 %s5390_s17, 4 }
  0x36   : > { %s392_s19 = sadd.s32 %s2730_s18, %s3219_s9 }
  0x37   : > { %s393_s20 = sshra.s32 %s392_s19, 3 }
  0x38   : > { %s2731_s22 = sshll.u32 %s393_s20, 2 }
  0x39   : > { %s396_s10 = scalar_lea.vmem %s4854_s0, %s2731_s22 }
  0x3a   : > { %v432_v10 = vld [vmem:[%s396_s10] sm:$0xff]  ;;  %v434_v11 = vld [vmem:[%s396_s10 + $0x8] sm:$0xff] }
  0x3b   : > { %433 = vst [vmem:[#allocation2 + $0x50] sm:$0xff] %v432_v10  ;;  %435 = vst [vmem:[#allocation2 + $0x58] sm:$0xff] %v434_v11 }
  0x3c   : > { %443 = vsyncadd [#allocation4 + $0x2], 256 }
  0x3d PF: > { %3109 = dma.done.wait [#allocation4], 1024 }
  0x3e   : > { %3110 = vsyncadd [#allocation4], 4294966272  ;;  %p2856_p11 = scmp.gt.s32.totalorder %s3121_s24, 0 }
  0x40   : > { %3112 = dma.done.wait (%p2856_p11), [#allocation4 + $0x1], 256 }
  0x41   : > { %3114 = vsyncadd (%p2856_p11), [#allocation4 + $0x1], 4294967040  ;;  %p2857_p12 = scmp.lt.s32.totalorder %s3121_s24, 1 }
  0x43   : > { %3116 = dma.done.wait (%p2857_p12), [#allocation4 + $0x2], 256 }
  0x44   : > { %3118 = vsyncadd (%p2857_p12), [#allocation4 + $0x2], 4294967040  ;;  %vm973_vm0 = vcmask 25600   ;;  %v3139_v12 = vmov 0.0   ;;  %vm586_vm1 = vcmask 1041408   ;;  %vm549_vm2 = vcmask 31744  }
  0x45   : > { %974 = vst.msk [vmem:[#allocation3] sm:$0x3] %vm973_vm0, %v3139_v12  ;;  %975 = vst.msk [vmem:[#allocation3 + $0x18] sm:$0x3] %vm973_vm0, %v3139_v12  ;;  %v488_v13 = vld [vmem:[%s4855_s1] sm:$0x3] }
  0x46   : > { %976 = vst.msk [vmem:[#allocation3 + $0x30] sm:$0x3] %vm973_vm0, %v3139_v12  ;;  %977 = vst.msk [vmem:[#allocation3 + $0x48] sm:$0x3] %vm973_vm0, %v3139_v12  ;;  %2850 = vmatprep.subr.msk.bf16.mxu0 %vm586_vm1, %v488_v13  ;;  %2851 = vmatprep.subr.msk.bf16.mxu1 %vm586_vm1, %v488_v13  ;;  %v588_v14 = vsel %vm586_vm1, %v488_v13, 0  ;;  %v2902_v15 = vld [vmem:[#allocation2] sm:$0xff]  }
  0x47   : > { %978 = vst.msk [vmem:[#allocation3 + $0x60] sm:$0x3] %vm973_vm0, %v3139_v12  ;;  %979 = vst.msk [vmem:[#allocation3 + $0x78] sm:$0x3] %vm973_vm0, %v3139_v12  ;;  %2823 = vmatpush3.bf16.msra.mxu0 %v588_v14  ;;  %2849 = vmatpush3.bf16.msra.mxu1 %v588_v14  ;;  %v2903_v16 = vld [vmem:[#allocation2 + $0x30] sm:$0xff]   ;;  %v2904_v17 = vld [vmem:[#allocation2 + $0x8] sm:$0xff]  }
  0x48   : > { %980 = vst.msk [vmem:[#allocation3 + $0x90] sm:$0x3] %vm973_vm0, %v3139_v12  ;;  %981 = vst.msk [vmem:[#allocation3 + $0xa8] sm:$0x3] %vm973_vm0, %v3139_v12  ;;  %2824 = vmatprep.mubr.msk.bf16.mxu0 %vm549_vm2, %v2902_v15  ;;  %2836 = vmatprep.mubr.msk.bf16.mxu1 %vm549_vm2, %v2903_v16  ;;  %v2905_v18 = vld [vmem:[#allocation2 + $0x38] sm:$0xff]   ;;  %v2906_v19 = vld [vmem:[#allocation2 + $0x10] sm:$0xff]  }
  0x49   : > { %982 = vst.msk [vmem:[#allocation3 + $0xc0] sm:$0x3] %vm973_vm0, %v3139_v12  ;;  %983 = vst.msk [vmem:[#allocation3 + $0xd8] sm:$0x3] %vm973_vm0, %v3139_v12  ;;  %v2907_v20 = vld [vmem:[#allocation2 + $0x40] sm:$0xff]   ;;  %v2908_v21 = vld [vmem:[#allocation2 + $0x18] sm:$0xff]  }
  0x4a   : > { %984 = vst.msk [vmem:[#allocation3 + $0xf0] sm:$0x3] %vm973_vm0, %v3139_v12  ;;  %985 = vst.msk [vmem:[#allocation3 + $0x108] sm:$0x3] %vm973_vm0, %v3139_v12  ;;  %2825 = vmatmul.mubr.msk.bf16.vlgmr.msra.gmra.mxu0 %vm549_vm2, %v2904_v17  ;;  %2837 = vmatmul.mubr.msk.bf16.vlgmr.msra.gmra.mxu1 %vm549_vm2, %v2905_v18  ;;  %v2909_v22 = vld [vmem:[#allocation2 + $0x48] sm:$0xff]   ;;  %v2910_v23 = vld [vmem:[#allocation2 + $0x20] sm:$0xff]  }
  0x4b   : > { %986 = vst.msk [vmem:[#allocation3 + $0x12] sm:$0x3] %vm973_vm0, %v3139_v12  ;;  %987 = vst.msk [vmem:[#allocation3 + $0x2a] sm:$0x3] %vm973_vm0, %v3139_v12  ;;  %2828 = vmatprep.mubr.msk.bf16.mxu0 %vm549_vm2, %v2906_v19  ;;  %2840 = vmatprep.mubr.msk.bf16.mxu1 %vm549_vm2, %v2907_v20  ;;  %v2911_v24 = vld [vmem:[#allocation2 + $0x50] sm:$0xff]   ;;  %v2912_v25 = vld [vmem:[#allocation2 + $0x28] sm:$0xff]  }
  0x4c   : > { %988 = vst.msk [vmem:[#allocation3 + $0x42] sm:$0x3] %vm973_vm0, %v3139_v12  ;;  %989 = vst.msk [vmem:[#allocation3 + $0x5a] sm:$0x3] %vm973_vm0, %v3139_v12  ;;  %v2913_v26 = vld [vmem:[#allocation2 + $0x58] sm:$0xff]   ;;  %p2784_p13 = scmp.ne.s32.totalorder %s3121_s24, 0 }
  0x4d   : > { %990 = vst.msk [vmem:[#allocation3 + $0x72] sm:$0x3] %vm973_vm0, %v3139_v12  ;;  %991 = vst.msk [vmem:[#allocation3 + $0x8a] sm:$0x3] %vm973_vm0, %v3139_v12  ;;  %v3289_v27 = vld [vmem:[%s4856_s2] ss:$0 sm:$0xff] }
  0x4e   : > { %992 = vst.msk [vmem:[#allocation3 + $0xa2] sm:$0x3] %vm973_vm0, %v3139_v12  ;;  %993 = vst.msk [vmem:[#allocation3 + $0xba] sm:$0x3] %vm973_vm0, %v3139_v12  ;;  %v3294_v29 = vld [vmem:[%s4857_s3] ss:$0 sm:$0xff] }
  0x4f   : > { %994 = vst.msk [vmem:[#allocation3 + $0xd2] sm:$0x3] %vm973_vm0, %v3139_v12  ;;  %995 = vst.msk [vmem:[#allocation3 + $0xea] sm:$0x3] %vm973_vm0, %v3139_v12 }
  0x50   : > { %996 = vst.msk [vmem:[#allocation3 + $0x102] sm:$0x3] %vm973_vm0, %v3139_v12  ;;  %997 = vst.msk [vmem:[#allocation3 + $0x11a] sm:$0x3] %vm973_vm0, %v3139_v12 }
  0x52   : > { %2829 = vmatmul.mubr.msk.bf16.gmra.mxu0 %vm549_vm2, %v2908_v21  ;;  %2841 = vmatmul.mubr.msk.bf16.gmra.mxu1 %vm549_vm2, %v2909_v22 }
  0x53   : > { %2832 = vmatprep.mubr.msk.bf16.mxu0 %vm549_vm2, %v2910_v23  ;;  %2844 = vmatprep.mubr.msk.bf16.mxu1 %vm549_vm2, %v2911_v24 }
  0x5a   : > { %2833 = vmatmul.mubr.msk.bf16.gmra.mxu0 %vm549_vm2, %v2912_v25  ;;  %2845 = vmatmul.mubr.msk.bf16.gmra.mxu1 %vm549_vm2, %v2913_v26 }
 0x10a   : > { %v2826_v28 = vpop.f32.mrf.mxu0  ;;  %v2838_v31 = vpop.f32.mrf.mxu1 }
 0x10b   : > { %v728_v30 = vmul.f32 %v2826_v28, %v3289_v27  ;;  %v740_v32 = vmul.f32 %v2838_v31, %v3289_v27 }
 0x10c   : > { %v624_v33 = vpop.f32.mrf.mxu0  ;;  %v672_v36 = vpop.f32.mrf.mxu1 }
 0x10d   : > { %v3299_v34 = vadd.f32 %v3294_v29, %v728_v30  ;;  %v726_v35 = vmul.f32 %v3289_v27, %v624_v33  ;;  %v3303_v37 = vadd.f32 %v3294_v29, %v740_v32  ;;  %v738_v38 = vmul.f32 %v3289_v27, %v672_v36 }
 0x10e   : > { %v2827_v39 = vpop.f32.mrf.mxu0  ;;  %v2839_v43 = vpop.f32.mrf.mxu1 }
 0x10f   : > { %v2762_v40 = vmul.f32 -1.442695, %v3299_v34  ;;  %v3308_v41 = vadd.f32 %v3294_v29, %v726_v35  ;;  %v729_v42 = vmul.f32 %v2827_v39, %v3289_v27  ;;  %v2774_v44 = vmul.f32 -1.442695, %v3303_v37 }
 0x110   : > { %v3313_v45 = vadd.f32 %v3294_v29, %v738_v38  ;;  %v741_v46 = vmul.f32 %v2839_v43, %v3289_v27  ;;  %v627_v47 = vpop.f32.mrf.mxu0  ;;  %v675_v51 = vpop.f32.mrf.mxu1 }
 0x111   : > { %2914 = vpow2.f32 %v2762_v40  ;;  %v2760_v48 = vmul.f32 -1.442695, %v3308_v41  ;;  %v3318_v49 = vadd.f32 %v3294_v29, %v729_v42  ;;  %v727_v50 = vmul.f32 %v3289_v27, %v627_v47 }
 0x112   : > { %2916 = vpow2.f32 %v2774_v44  ;;  %v2772_v52 = vmul.f32 -1.442695, %v3313_v45  ;;  %v3323_v53 = vadd.f32 %v3294_v29, %v741_v46  ;;  %v739_v54 = vmul.f32 %v3289_v27, %v675_v51  ;;  %v2830_v55 = vpop.f32.mrf.mxu0  ;;  %v2842_v59 = vpop.f32.mrf.mxu1 }
 0x113   : > { %2918 = vpow2.f32 %v2760_v48  ;;  %v2763_v56 = vmul.f32 -1.442695, %v3318_v49  ;;  %v3328_v57 = vadd.f32 %v3294_v29, %v727_v50  ;;  %v732_v58 = vmul.f32 %v2830_v55, %v3289_v27 }
 0x114   : > { %2920 = vpow2.f32 %v2772_v52  ;;  %v2775_v60 = vmul.f32 -1.442695, %v3323_v53  ;;  %v3333_v61 = vadd.f32 %v3294_v29, %v739_v54  ;;  %v744_v62 = vmul.f32 %v2842_v59, %v3289_v27  ;;  %v640_v63 = vpop.f32.mrf.mxu0  ;;  %v688_v3 = vpop.f32.mrf.mxu1 }
 0x115   : > { %2922 = vpow2.f32 %v2763_v56  ;;  %v2761_v0 = vmul.f32 -1.442695, %v3328_v57  ;;  %v3338_v1 = vadd.f32 %v3294_v29, %v732_v58  ;;  %v730_v2 = vmul.f32 %v3289_v27, %v640_v63 }
 0x116   : > { %2924 = vpow2.f32 %v2775_v60  ;;  %v2773_v4 = vmul.f32 -1.442695, %v3333_v61  ;;  %v3343_v5 = vadd.f32 %v3294_v29, %v744_v62  ;;  %v742_v6 = vmul.f32 %v3289_v27, %v688_v3  ;;  %v2831_v7 = vpop.f32.mrf.mxu0  ;;  %v2843_v11 = vpop.f32.mrf.mxu1 }
 0x117   : > { %2926 = vpow2.f32 %v2761_v0  ;;  %v2766_v8 = vmul.f32 -1.442695, %v3338_v1  ;;  %v3348_v9 = vadd.f32 %v3294_v29, %v730_v2  ;;  %v733_v10 = vmul.f32 %v2831_v7, %v3289_v27 }
 0x118   : > { %2928 = vpow2.f32 %v2773_v4  ;;  %v2778_v12 = vmul.f32 -1.442695, %v3343_v5  ;;  %v3353_v13 = vadd.f32 %v3294_v29, %v742_v6  ;;  %v745_v14 = vmul.f32 %v2843_v11, %v3289_v27  ;;  %v643_v15 = vpop.f32.mrf.mxu0  ;;  %v691_v19 = vpop.f32.mrf.mxu1 }
 0x119   : > { %2930 = vpow2.f32 %v2766_v8  ;;  %v2764_v16 = vmul.f32 -1.442695, %v3348_v9  ;;  %v3358_v17 = vadd.f32 %v3294_v29, %v733_v10  ;;  %v731_v18 = vmul.f32 %v3289_v27, %v643_v15 }
 0x11a   : > { %2932 = vpow2.f32 %v2778_v12  ;;  %v2776_v20 = vmul.f32 -1.442695, %v3353_v13  ;;  %v3363_v21 = vadd.f32 %v3294_v29, %v745_v14  ;;  %v743_v22 = vmul.f32 %v3289_v27, %v691_v19  ;;  %v2834_v28 = vpop.f32.mrf.mxu0  ;;  %v2846_v31 = vpop.f32.mrf.mxu1 }
 0x11b   : > { %2934 = vpow2.f32 %v2764_v16  ;;  %v2767_v23 = vmul.f32 -1.442695, %v3358_v17  ;;  %v3368_v24 = vadd.f32 %v3294_v29, %v731_v18  ;;  %v736_v58 = vmul.f32 %v2834_v28, %v3289_v27 }
 0x11c   : > { %2936 = vpow2.f32 %v2776_v20  ;;  %v2779_v25 = vmul.f32 -1.442695, %v3363_v21  ;;  %v3372_v26 = vadd.f32 %v3294_v29, %v743_v22  ;;  %v656_v40 = vpop.f32.mrf.mxu0  ;;  %v704_v44 = vpop.f32.mrf.mxu1  ;;  %v748_v63 = vmul.f32 %v2846_v31, %v3289_v27 }
 0x11d   : > { %2938 = vpow2.f32 %v2767_v23  ;;  %v2765_v30 = vmul.f32 -1.442695, %v3368_v24  ;;  %v734_v3 = vmul.f32 %v3289_v27, %v656_v40  ;;  %v746_v7 = vmul.f32 %v3289_v27, %v704_v44 }
 0x11e   : > { %v2915_v32 = vpop.eup %2914  ;;  %2940 = vpow2.f32 %v2779_v25  ;;  %v2777_v33 = vmul.f32 -1.442695, %v3372_v26  ;;  %v2835_v54 = vpop.f32.mrf.mxu0  ;;  %v3381_v12 = vadd.f32 %v3294_v29, %v736_v58  ;;  %v3385_v19 = vadd.f32 %v3294_v29, %v748_v63 }
 0x11f   : > { %v2917_v35 = vpop.eup %2916  ;;  %v855_v36 = vadd.f32 1.0, %v2915_v32  ;;  %2942 = vpow2.f32 %v2765_v30  ;;  %v2847_v59 = vpop.f32.mrf.mxu1  ;;  %v737_v14 = vmul.f32 %v2835_v54, %v3289_v27  ;;  %v3389_v25 = vadd.f32 %v3294_v29, %v734_v3 }
 0x120   : > { %v2919_v38 = vpop.eup %2918  ;;  %v867_v39 = vadd.f32 1.0, %v2917_v35  ;;  %2944 = vpow2.f32 %v2777_v33  ;;  %v659_v8 = vpop.f32.mrf.mxu0  ;;  %v749_v20 = vmul.f32 %v2847_v59, %v3289_v27  ;;  %v3393_v32 = vadd.f32 %v3294_v29, %v746_v7 }
 0x121   : > { %v2921_v42 = vpop.eup %2920  ;;  %2946 = vrcp.f32 %v855_v36  ;;  %v853_v43 = vadd.f32 1.0, %v2919_v38  ;;  %v707_v15 = vpop.f32.mrf.mxu1  ;;  %v735_v28 = vmul.f32 %v3289_v27, %v659_v8  ;;  %v2770_v38 = vmul.f32 -1.442695, %v3381_v12 }
 0x122   : > { %v2923_v46 = vpop.eup %2922  ;;  %2948 = vrcp.f32 %v867_v39  ;;  %v865_v47 = vadd.f32 1.0, %v2921_v42  ;;  %v747_v33 = vmul.f32 %v3289_v27, %v707_v15  ;;  %v3398_v39 = vadd.f32 %v3294_v29, %v737_v14 }
 0x123   : > { %v2925_v48 = vpop.eup %2924  ;;  %2950 = vrcp.f32 %v853_v43  ;;  %v856_v50 = vadd.f32 1.0, %v2923_v46  ;;  %v2782_v43 = vmul.f32 -1.442695, %v3385_v19  ;;  %v3402_v44 = vadd.f32 %v3294_v29, %v749_v20 }
 0x124   : > { %v2927_v51 = vpop.eup %2926  ;;  %2952 = vrcp.f32 %v865_v47  ;;  %v868_v52 = vadd.f32 1.0, %v2925_v48  ;;  %v2768_v27 = vmul.f32 -1.442695, %v3389_v25  ;;  %v3407_v48 = vadd.f32 %v3294_v29, %v735_v28 }
 0x125   : > { %v2929_v55 = vpop.eup %2928  ;;  %2954 = vrcp.f32 %v856_v50  ;;  %v854_v56 = vadd.f32 1.0, %v2927_v51  ;;  %v3412_v54 = vadd.f32 %v3294_v29, %v747_v33 }
 0x126   : > { %v2931_v60 = vpop.eup %2930  ;;  %2956 = vrcp.f32 %v868_v52  ;;  %v866_v62 = vadd.f32 1.0, %v2929_v55  ;;  %v2780_v52 = vmul.f32 -1.442695, %v3393_v32 }
 0x127   : > { %v2933_v0 = vpop.eup %2932  ;;  %2958 = vrcp.f32 %v854_v56  ;;  %v859_v2 = vadd.f32 1.0, %v2931_v60  ;;  %v2771_v56 = vmul.f32 -1.442695, %v3398_v39 }
 0x128   : > { %v2935_v4 = vpop.eup %2934  ;;  %2960 = vrcp.f32 %v866_v62  ;;  %v871_v6 = vadd.f32 1.0, %v2933_v0  ;;  %v2769_v62 = vmul.f32 -1.442695, %v3407_v48  ;;  %v2781_v0 = vmul.f32 -1.442695, %v3412_v54 }
 0x129   : > { %v2937_v10 = vpop.eup %2936  ;;  %2962 = vrcp.f32 %v859_v2  ;;  %v857_v11 = vadd.f32 1.0, %v2935_v4 }
 0x12a   : > { %v2939_v16 = vpop.eup %2938  ;;  %2964 = vrcp.f32 %v871_v6  ;;  %v869_v18 = vadd.f32 1.0, %v2937_v10 }
 0x12b   : > { %v2941_v22 = vpop.eup %2940  ;;  %2966 = vrcp.f32 %v857_v11  ;;  %v860_v23 = vadd.f32 1.0, %v2939_v16 }
 0x12c   : > { %v2943_v30 = vpop.eup %2942  ;;  %2968 = vrcp.f32 %v869_v18  ;;  %v872_v31 = vadd.f32 1.0, %v2941_v22 }
 0x12d   : > { %v2945_v35 = vpop.eup %2944  ;;  %2970 = vrcp.f32 %v860_v23  ;;  %v858_v36 = vadd.f32 1.0, %v2943_v30 }
 0x12e   : > { %v2947_v40 = vpop.eup %2946  ;;  %2972 = vrcp.f32 %v872_v31  ;;  %v870_v42 = vadd.f32 1.0, %v2945_v35 }
 0x12f   : > { %v2949_v46 = vpop.eup %2948  ;;  %v927_v47 = vmul.f32 %v2947_v40, %v3299_v34  ;;  %2974 = vrcp.f32 %v858_v36 }
 0x130   : > { %v2951_v50 = vpop.eup %2950  ;;  %v939_v51 = vmul.f32 %v2949_v46, %v3303_v37  ;;  %2976 = vrcp.f32 %v870_v42  ;;  %v2783_v37 = vmul.f32 -1.442695, %v3402_v44 }
 0x131   : > { %v2953_v55 = vpop.eup %2952  ;;  %951 = vst.msk [vmem:[#allocation3 + $0x1a] sm:$0xff] %vm549_vm2, %v927_v47  ;;  %v925_v34 = vmul.f32 %v2951_v50, %v3308_v41  ;;  %2978 = vpow2.f32 %v2770_v38 }
 0x132   : > { %v2955_v58 = vpop.eup %2954  ;;  %963 = vst.msk [vmem:[#allocation3 + $0xaa] sm:$0xff] %vm549_vm2, %v939_v51  ;;  %v937_v59 = vmul.f32 %v2953_v55, %v3313_v45  ;;  %2980 = vpow2.f32 %v2782_v43 }
 0x133   : > { %v2957_v60 = vpop.eup %2956  ;;  %949 = vst.msk [vmem:[#allocation3 + $0x2] sm:$0xff] %vm549_vm2, %v925_v34  ;;  %v928_v29 = vmul.f32 %v2955_v58, %v3318_v49  ;;  %2982 = vpow2.f32 %v2768_v27 }
 0x134   : > { %v2959_v41 = vpop.eup %2958  ;;  %961 = vst.msk [vmem:[#allocation3 + $0x92] sm:$0xff] %vm549_vm2, %v937_v59  ;;  %v940_v63 = vmul.f32 %v2957_v60, %v3323_v53  ;;  %2984 = vpow2.f32 %v2780_v52 }
 0x135   : > { %v2961_v45 = vpop.eup %2960  ;;  %952 = vst.msk [vmem:[#allocation3 + $0x22] sm:$0xff] %vm549_vm2, %v928_v29  ;;  %v926_v2 = vmul.f32 %v2959_v41, %v3328_v57  ;;  %2986 = vpow2.f32 %v2771_v56 }
 0x136   : > { %v2963_v3 = vpop.eup %2962  ;;  %964 = vst.msk [vmem:[#allocation3 + $0xb2] sm:$0xff] %vm549_vm2, %v940_v63  ;;  %v938_v49 = vmul.f32 %v2961_v45, %v3333_v61  ;;  %2988 = vpow2.f32 %v2783_v37 }
 0x137   : > { %v2965_v4 = vpop.eup %2964  ;;  %950 = vst.msk [vmem:[#allocation3 + $0xa] sm:$0xff] %vm549_vm2, %v926_v2  ;;  %v931_v53 = vmul.f32 %v2963_v3, %v3338_v1  ;;  %2990 = vpow2.f32 %v2769_v62 }
 0x138   : > { %v2967_v6 = vpop.eup %2966  ;;  %962 = vst.msk [vmem:[#allocation3 + $0x9a] sm:$0xff] %vm549_vm2, %v938_v49  ;;  %v943_v7 = vmul.f32 %v2965_v4, %v3343_v5  ;;  %2992 = vpow2.f32 %v2781_v0 }
 0x139   : > { %v2969_v57 = vpop.eup %2968  ;;  %955 = vst.msk [vmem:[#allocation3 + $0x4a] sm:$0xff] %vm549_vm2, %v931_v53  ;;  %v929_v8 = vmul.f32 %v2967_v6, %v3348_v9 }
 0x13a   : > { %v2971_v10 = vpop.eup %2970  ;;  %967 = vst.msk [vmem:[#allocation3 + $0xda] sm:$0xff] %vm549_vm2, %v943_v7  ;;  %v941_v61 = vmul.f32 %v2969_v57, %v3353_v13 }
 0x13b   : > { %v2973_v11 = vpop.eup %2972  ;;  %953 = vst.msk [vmem:[#allocation3 + $0x32] sm:$0xff] %vm549_vm2, %v929_v8  ;;  %v932_v1 = vmul.f32 %v2971_v10, %v3358_v17 }
 0x13c   : > { %v2975_v14 = vpop.eup %2974  ;;  %965 = vst.msk [vmem:[#allocation3 + $0xc2] sm:$0xff] %vm549_vm2, %v941_v61  ;;  %v944_v5 = vmul.f32 %v2973_v11, %v3363_v21 }
 0x13d   : > { %v2977_v15 = vpop.eup %2976  ;;  %956 = vst.msk [vmem:[#allocation3 + $0x52] sm:$0xff] %vm549_vm2, %v932_v1  ;;  %v930_v9 = vmul.f32 %v2975_v14, %v3368_v24 }
 0x13e   : > { %v2979_v16 = vpop.eup %2978  ;;  %968 = vst.msk [vmem:[#allocation3 + $0xe2] sm:$0xff] %vm549_vm2, %v944_v5  ;;  %v942_v13 = vmul.f32 %v2977_v15, %v3372_v26 }
 0x13f   : > { %v2981_v18 = vpop.eup %2980  ;;  %954 = vst.msk [vmem:[#allocation3 + $0x3a] sm:$0xff] %vm549_vm2, %v930_v9  ;;  %v863_v20 = vadd.f32 1.0, %v2979_v16 }
 0x140   : > { %v2983_v17 = vpop.eup %2982  ;;  %966 = vst.msk [vmem:[#allocation3 + $0xca] sm:$0xff] %vm549_vm2, %v942_v13  ;;  %v875_v22 = vadd.f32 1.0, %v2981_v18 }
 0x141   : > { %v2985_v23 = vpop.eup %2984  ;;  %2994 = vrcp.f32 %v863_v20  ;;  %v861_v21 = vadd.f32 1.0, %v2983_v17 }
 0x142   : > { %v2987_v28 = vpop.eup %2986  ;;  %2996 = vrcp.f32 %v875_v22  ;;  %v873_v30 = vadd.f32 1.0, %v2985_v23 }
 0x143   : > { %v2989_v24 = vpop.eup %2988  ;;  %2998 = vrcp.f32 %v861_v21  ;;  %v864_v31 = vadd.f32 1.0, %v2987_v28 }
 0x144   : > { %v2991_v33 = vpop.eup %2990  ;;  %3000 = vrcp.f32 %v873_v30  ;;  %v876_v26 = vadd.f32 1.0, %v2989_v24 }
 0x145   : > { %v2993_v35 = vpop.eup %2992  ;;  %3002 = vrcp.f32 %v864_v31  ;;  %v862_v36 = vadd.f32 1.0, %v2991_v33 }
 0x146   : > { %3004 = vrcp.f32 %v876_v26  ;;  %v874_v38 = vadd.f32 1.0, %v2993_v35 }
 0x147   : > { %3006 = vrcp.f32 %v862_v36 }
 0x148   : > { %3008 = vrcp.f32 %v874_v38 }
 0x14e   : > { %v2995_v40 = vpop.eup %2994 }
 0x14f   : > { %v2997_v42 = vpop.eup %2996  ;;  %v935_v43 = vmul.f32 %v2995_v40, %v3381_v12 }
 0x150   : > { %v2999_v46 = vpop.eup %2998  ;;  %v947_v47 = vmul.f32 %v2997_v42, %v3385_v19 }
 0x151   : > { %v3001_v27 = vpop.eup %3000  ;;  %959 = vst.msk [vmem:[#allocation3 + $0x7a] sm:$0xff] %vm549_vm2, %v935_v43  ;;  %v933_v50 = vmul.f32 %v2999_v46, %v3389_v25 }
 0x152   : > { %v3003_v51 = vpop.eup %3002  ;;  %971 = vst.msk [vmem:[#allocation3 + $0x10a] sm:$0xff] %vm549_vm2, %v947_v47  ;;  %v945_v52 = vmul.f32 %v3001_v27, %v3393_v32 }
 0x153   : > { %v3005_v55 = vpop.eup %3004  ;;  %957 = vst.msk [vmem:[#allocation3 + $0x62] sm:$0xff] %vm549_vm2, %v933_v50  ;;  %v936_v34 = vmul.f32 %v3003_v51, %v3398_v39 }
 0x154   : > { %v3007_v56 = vpop.eup %3006  ;;  %969 = vst.msk [vmem:[#allocation3 + $0xf2] sm:$0xff] %vm549_vm2, %v945_v52  ;;  %v948_v12 = vmul.f32 %v3005_v55, %v3402_v44  ;;  %1001 = sbr.rel (%p2784_p13) target bundleno = 349 (0x15d), region = 166 }
 0x155   : > { %v3009_v19 = vpop.eup %3008  ;;  %960 = vst.msk [vmem:[#allocation3 + $0x82] sm:$0xff] %vm549_vm2, %v936_v34  ;;  %v934_v25 = vmul.f32 %v3007_v56, %v3407_v48 }
 0x156   : > { %972 = vst.msk [vmem:[#allocation3 + $0x112] sm:$0xff] %vm549_vm2, %v948_v12  ;;  %v946_v58 = vmul.f32 %v3009_v19, %v3412_v54 }
 0x157   : > { %958 = vst.msk [vmem:[#allocation3 + $0x6a] sm:$0xff] %vm549_vm2, %v934_v25 }
 0x158   : > { %970 = vst.msk [vmem:[#allocation3 + $0xfa] sm:$0xff] %vm549_vm2, %v946_v58 }
 0x159   : > { %vm1004_vm3 = vcmask 27648   ;;  %v3140_v32 = vmov 0.0  }
 0x15a   : > { %1002 = vst.msk [vmem:[#allocation3] sm:$0xff] %vm549_vm2, %v3140_v32  ;;  %1003 = vst.msk [vmem:[#allocation3 + $0x8] sm:$0xff] %vm549_vm2, %v3140_v32 }
 0x15b   : > { %1006 = vst.msk [vmem:[#allocation3 + $0x18] sm:$0xff] %vm549_vm2, %v3140_v32  ;;  %1007 = vst.msk [vmem:[#allocation3 + $0x20] sm:$0xff] %vm549_vm2, %v3140_v32 }
 0x15c   : > { %1005 = vst.msk [vmem:[#allocation3 + $0x10] sm:$0xf] %vm1004_vm3, %v3140_v32  ;;  %1008 = vst.msk [vmem:[#allocation3 + $0x28] sm:$0xf] %vm1004_vm3, %v3140_v32 }
 0x15d PF: > { %p2785_p0 = scmp.ne.s32.totalorder %s3121_s24, 1 }
 0x15f   : > { %1012 = sbr.rel (%p2785_p0) target bundleno = 360 (0x168), region = 170 }
 0x164   : > { %vm1016_vm4 = vcmask 27648   ;;  %v3141_v39 = vmov 0.0  }
 0x165   : > { %1014 = vst.msk [vmem:[#allocation3 + $0xf0] sm:$0xff] %vm549_vm2, %v3141_v39  ;;  %1015 = vst.msk [vmem:[#allocation3 + $0xf8] sm:$0xff] %vm549_vm2, %v3141_v39 }
 0x166   : > { %1018 = vst.msk [vmem:[#allocation3 + $0x108] sm:$0xff] %vm549_vm2, %v3141_v39  ;;  %1019 = vst.msk [vmem:[#allocation3 + $0x110] sm:$0xff] %vm549_vm2, %v3141_v39 }
 0x167   : > { %1017 = vst.msk [vmem:[#allocation3 + $0x100] sm:$0xf] %vm1016_vm4, %v3141_v39  ;;  %1020 = vst.msk [vmem:[#allocation3 + $0x118] sm:$0xf] %vm1016_vm4, %v3141_v39 }
 0x168 PF: > { %v1042_v44 = vlaneseq  ;;  %v1021_v54 = vld [vmem:[%s4858_s4] sm:$0x1f]  ;;  %v3485_v62 = vld [vmem:[#allocation3 + $0x18] sm:$0xff]  ;;  %v1022_v45 = vld [vmem:[%s4858_s4 + $0x8] sm:$0x1f]  ;;  %s3142_s11 = smov 4  }
 0x169   : > { %v3487_v41 = vld [vmem:[#allocation3 + $0x19] sm:$0xff]  ;;  %v3526_v14 = vld [vmem:[#allocation3 + $0x30] sm:$0xff]  ;;  %v1078_v38 = vld [vmem:[#allocation3 + $0x1] sm:$0xff]  ;;  %vm2568_vm5 = vcmask 64512  }
 0x16a   : > { %v1043_v48 = vshrl.u32 %v1042_v44, 7  ;;  %v3489_v63 = vld [vmem:[#allocation3 + $0x1a] sm:$0xff]  ;;  %5061 = vst [vmem:[#allocation15_spill] sm:$0xff] %v3526_v14  ;;  %v1023_v5 = vld [vmem:[%s4858_s4 + $0x10] sm:$0x1f]  ;;  %v1130_v40 = vld [vmem:[#allocation3 + $0x2] sm:$0xff] }
 0x16b   : > { %v3508_v53 = vld [vmem:[#allocation3 + $0x1b] sm:$0xff]  ;;  %v3556_v30 = vld [vmem:[#allocation3 + $0x31] sm:$0xff]  ;;  %v3573_v47 = vld [vmem:[#allocation3 + $0x48] sm:$0xff] }
 0x16c   : > { %v3477_v59 = vsub.s32 0, %v1043_v48  ;;  %v3479_v37 = vsub.s32 1, %v1043_v48  ;;  %v3481_v60 = vsub.s32 2, %v1043_v48  ;;  %v3483_v29 = vsub.s32 3, %v1043_v48  ;;  %v3519_v10 = vld [vmem:[#allocation3 + $0x1c] sm:$0xff]  ;;  %5067 = vst [vmem:[#allocation21_spill] sm:$0xff] %v3556_v30 }
 0x16d   : > { %v3491_v0 = vsub.s32 4, %v1043_v48  ;;  %v1024_v28 = vld [vmem:[%s4858_s4 + $0x18] sm:$0x1f]  ;;  %v1026_v36 = vld [vmem:[#allocation3] sm:$0xff]  ;;  %5071 = vst [vmem:[#allocation25_spill] sm:$0xff] %v3573_v47  ;;  %v3575_v27 = vld [vmem:[#allocation3 + $0x49] sm:$0xff] }
 0x16e   : > { %v3497_v2 = vrot.slane %v1021_v54, %v3477_v59  ;;  %v3500_v3 = vrot.slane %v1021_v54, %v3479_v37  ;;  %v3503_v49 = vrot.slane %v1021_v54, %v3481_v60  ;;  %v3506_v4 = vrot.slane %v1021_v54, %v3483_v29  ;;  %v3558_v24 = vld [vmem:[#allocation3 + $0x32] sm:$0xff]  ;;  %5072 = vst [vmem:[#allocation26_spill] sm:$0xff] %v3575_v27  ;;  %v3591_v12 = vld [vmem:[#allocation3 + $0x4a] sm:$0xff]  ;;  %v1025_v25 = vld [vmem:[%s4858_s4 + $0x20] sm:$0x1f] }
 0x16f   : > { %v3517_v8 = vrot.slane %v1021_v54, %v3491_v0  ;;  %v3522_v61 = vrot.slane %v1022_v45, %v3477_v59  ;;  %v3534_v16 = vrot.slane %v1022_v45, %v3479_v37  ;;  %v3539_v18 = vrot.slane %v1022_v45, %v3481_v60  ;;  %5068 = vst [vmem:[#allocation22_spill] sm:$0xff] %v3558_v24  ;;  %v3560_v31 = vld [vmem:[#allocation3 + $0x33] sm:$0xff]  ;;  %v1182_v19 = vld [vmem:[#allocation3 + $0x3] sm:$0xff]  ;;  %v3603_v54 = vld [vmem:[#allocation3 + $0x4b] sm:$0xff] }
 0x170   : > { %5058 = vst [vmem:[#allocation12_spill] sm:$0xff] %v3497_v2  ;;  %5059 = vst [vmem:[#allocation13_spill] sm:$0xff] %v3500_v3  ;;  %v1048_v6 = vmul.f32 %v3497_v2, %v3485_v62  ;;  %v1100_v7 = vmul.f32 %v3500_v3, %v3487_v41  ;;  %v1152_v57 = vmul.f32 %v3503_v49, %v3489_v63  ;;  %v3571_v46 = vld [vmem:[#allocation3 + $0x34] sm:$0xff] }
 0x171   : > { %5060 = vst [vmem:[#allocation14_spill] sm:$0xff] %v3503_v49  ;;  %v1204_v1 = vmul.f32 %v3506_v4, %v3508_v53  ;;  %v1256_v9 = vmul.f32 %v3517_v8, %v3519_v10  ;;  %v1309_v13 = vmul.f32 %v3522_v61, %v3526_v14  ;;  %5062 = vst [vmem:[#allocation16_spill] sm:$0xff] %v3539_v18 }
 0x172   : > { %v1116_v11 = vadd.f32 %v1100_v7, %v1048_v6  ;;  %v3542_v20 = vrot.slane %v1022_v45, %v3483_v29  ;;  %v3545_v22 = vrot.slane %v1022_v45, %v3491_v0  ;;  %v3548_v23 = vrot.slane %v1023_v5, %v3477_v59  ;;  %5069 = vst [vmem:[#allocation23_spill] sm:$0xff] %v3560_v31  ;;  %v3605_v45 = vld [vmem:[#allocation3 + $0x4c] sm:$0xff] }
 0x173   : > { %v3551_v21 = vrot.slane %v1023_v5, %v3479_v37  ;;  %v3563_v33 = vrot.slane %v1023_v5, %v3481_v60  ;;  %v1361_v35 = vmul.f32 %v3534_v16, %v3556_v30  ;;  %v1413_v42 = vmul.f32 %v3539_v18, %v3558_v24  ;;  %5070 = vst [vmem:[#allocation24_spill] sm:$0xff] %v3571_v46 }
 0x174   : > { %v1168_v15 = vadd.f32 %v1152_v57, %v1116_v11  ;;  %5063 = vst [vmem:[#allocation17_spill] sm:$0xff] %v3542_v20  ;;  %5064 = vst [vmem:[#allocation18_spill] sm:$0xff] %v3545_v22  ;;  %v1465_v43 = vmul.f32 %v3542_v20, %v3560_v31  ;;  %v3578_v50 = vrot.slane %v1023_v5, %v3483_v29  ;;  %v1234_v11 = vld [vmem:[#allocation3 + $0x4] sm:$0xff] }
 0x175   : > { %5065 = vst [vmem:[#allocation19_spill] sm:$0xff] %v3548_v23  ;;  %5066 = vst [vmem:[#allocation20_spill] sm:$0xff] %v3551_v21  ;;  %v3581_v51 = vrot.slane %v1023_v5, %v3491_v0  ;;  %v1517_v55 = vmul.f32 %v3545_v22, %v3571_v46  ;;  %v1570_v34 = vmul.f32 %v3548_v23, %v3573_v47 }
 0x176   : > { %v1220_v17 = vadd.f32 %v1204_v1, %v1168_v15  ;;  %v3589_v56 = vmul.f32 %v3551_v21, %v3575_v27  ;;  %5073 = vst [vmem:[#allocation27_spill] sm:$0xff] %v3591_v12  ;;  %v3598_v58 = vmul.f32 %v3563_v33, %v3591_v12  ;;  %v1046_v32 = vmul.f32 %v3497_v2, %v1026_v36  ;;  %v3634_v36 = vld [vmem:[#allocation3 + $0x60] sm:$0xff] }
 0x177   : > { %v1098_v39 = vmul.f32 %v3500_v3, %v1078_v38  ;;  %v1150_v44 = vmul.f32 %v3503_v49, %v1130_v40  ;;  %5074 = vst [vmem:[#allocation28_spill] sm:$0xff] %v3603_v54  ;;  %5075 = vst [vmem:[#allocation29_spill] sm:$0xff] %v3605_v45  ;;  %v3608_v6 = vrot.slane %v1024_v28, %v3477_v59  ;;  %v3636_v38 = vld [vmem:[#allocation3 + $0x61] sm:$0xff] }
 0x178   : > { %v1272_v26 = vadd.f32 %v1256_v9, %v1220_v17  ;;  %v3611_v7 = vrot.slane %v1024_v28, %v3479_v37  ;;  %v3614_v57 = vrot.slane %v1024_v28, %v3481_v60  ;;  %v3618_v1 = vmul.f32 %v3578_v50, %v3603_v54  ;;  %5081 = vst [vmem:[#allocation35_spill] sm:$0xff] %v3634_v36  ;;  %v3638_v40 = vld [vmem:[#allocation3 + $0x62] sm:$0xff] }
 0x179   : > { %v3622_v5 = vmul.f32 %v3581_v51, %v3605_v45  ;;  %v1114_v15 = vadd.f32 %v1098_v39, %v1046_v32  ;;  %v1202_v9 = vmul.f32 %v3506_v4, %v1182_v19  ;;  %v3626_v17 = vrot.slane %v1024_v28, %v3483_v29  ;;  %5082 = vst [vmem:[#allocation36_spill] sm:$0xff] %v3636_v38 }
 0x17a   : > { %v1325_v52 = vadd.f32 %v1309_v13, %v1272_v26  ;;  %5076 = vst [vmem:[#allocation30_spill] sm:$0xff] %v3611_v7  ;;  %5077 = vst [vmem:[#allocation31_spill] sm:$0xff] %v3614_v57  ;;  %v3629_v26 = vrot.slane %v1024_v28, %v3491_v0  ;;  %v1254_v32 = vmul.f32 %v3517_v8, %v1234_v11 }
 0x17b   : > { %5078 = vst [vmem:[#allocation32_spill] sm:$0xff] %v3626_v17  ;;  %5083 = vst [vmem:[#allocation37_spill] sm:$0xff] %v3638_v40  ;;  %v1166_v19 = vadd.f32 %v1150_v44, %v1114_v15  ;;  %v3653_v39 = vmul.f32 %v3611_v7, %v3636_v38  ;;  %v3663_v44 = vld [vmem:[#allocation3 + $0x78] sm:$0xff]  ;;  %v3669_v11 = vrot.slane %v1025_v25, %v3491_v0 }
 0x17c   : > { %v1377_v48 = vadd.f32 %v1361_v35, %v1325_v52  ;;  %5079 = vst [vmem:[#allocation33_spill] sm:$0xff] %v3629_v26  ;;  %v3632_v35 = vrot.slane %v1025_v25, %v3477_v59  ;;  %v3641_v52 = vrot.slane %v1025_v25, %v3479_v37  ;;  %v3649_v59 = vmul.f32 %v3608_v6, %v3634_v36  ;;  %v3659_v37 = vld [vmem:[#allocation3 + $0x63] sm:$0xff] }
 0x17d   : > { %5086 = vst [vmem:[#allocation40_spill] sm:$0xff] %v3653_v39  ;;  %5088 = vst [vmem:[#allocation42_spill] sm:$0xff] %v3659_v37  ;;  %v1218_v15 = vadd.f32 %v1202_v9, %v1166_v19  ;;  %v3673_v39 = vld [vmem:[#allocation3 + $0x20] sm:$0xff]  ;;  %v3681_v38 = vmul.f32 %v3626_v17, %v3659_v37 }
 0x17e   : > { %v1429_v13 = vadd.f32 %v1413_v42, %v1377_v48  ;;  %5080 = vst [vmem:[#allocation34_spill] sm:$0xff] %v3632_v35  ;;  %5084 = vst [vmem:[#allocation38_spill] sm:$0xff] %v3641_v52  ;;  %v3644_v42 = vrot.slane %v1025_v25, %v3481_v60  ;;  %v3657_v48 = vmul.f32 %v3614_v57, %v3638_v40  ;;  %v3661_v60 = vld [vmem:[#allocation3 + $0x64] sm:$0xff] }
 0x17f   : > { %5085 = vst [vmem:[#allocation39_spill] sm:$0xff] %v3649_v59  ;;  %5089 = vst [vmem:[#allocation43_spill] sm:$0xff] %v3661_v60  ;;  %v3675_v40 = vld [vmem:[#allocation3 + $0x21] sm:$0xff]  ;;  %v3689_v0 = vmul.f32 %v3632_v35, %v3663_v44  ;;  %v1270_v19 = vadd.f32 %v1254_v32, %v1218_v15 }
 0x180   : > { %v1481_v28 = vadd.f32 %v1465_v43, %v1429_v13  ;;  %5087 = vst [vmem:[#allocation41_spill] sm:$0xff] %v3657_v48  ;;  %5090 = vst [vmem:[#allocation44_spill] sm:$0xff] %v3663_v44  ;;  %v3666_v43 = vrot.slane %v1025_v25, %v3483_v29  ;;  %v1307_v13 = vmul.f32 %v3522_v61, %v3485_v62  ;;  %v3677_v48 = vld [vmem:[#allocation3 + $0x22] sm:$0xff]  ;;  %v3691_v62 = vld [vmem:[#allocation3 + $0x79] sm:$0xff] }
 0x181   : > { %5092 = vst [vmem:[#allocation46_spill] sm:$0xff] %v3669_v11  ;;  %5093 = vst [vmem:[#allocation47_spill] sm:$0xff] %v3677_v48  ;;  %v3685_v29 = vmul.f32 %v3629_v26, %v3661_v60  ;;  %v3693_v25 = vld [vmem:[#allocation3 + $0x7a] sm:$0xff]  ;;  %v3697_v9 = vmul.f32 %v3641_v52, %v3691_v62  ;;  %v1049_v60 = vmul.f32 %v3497_v2, %v3673_v39  ;;  %v3727_v15 = vld [vmem:[#allocation3 + $0x24] sm:$0xff] }
 0x182   : > { %5091 = vst [vmem:[#allocation45_spill] sm:$0xff] %v3666_v43  ;;  %v1533_v59 = vadd.f32 %v1517_v55, %v1481_v28  ;;  %5094 = vst [vmem:[#allocation48_spill] sm:$0xff] %v3681_v38  ;;  %v3701_v55 = vmul.f32 %v3644_v42, %v3693_v25  ;;  %v1359_v28 = vmul.f32 %v3534_v16, %v3487_v41  ;;  %v3709_v38 = vld [vmem:[#allocation3 + $0x7c] sm:$0xff] }
 0x183   : > { %5095 = vst [vmem:[#allocation49_spill] sm:$0xff] %v3685_v29  ;;  %5096 = vst [vmem:[#allocation50_spill] sm:$0xff] %v3689_v0  ;;  %v3705_v29 = vld [vmem:[#allocation3 + $0x23] sm:$0xff]  ;;  %v3707_v0 = vld [vmem:[#allocation3 + $0x7b] sm:$0xff]  ;;  %v3723_v41 = vmul.f32 %v3669_v11, %v3709_v38 }
 0x184   : > { %5097 = vst [vmem:[#allocation51_spill] sm:$0xff] %v3691_v62  ;;  %5098 = vst [vmem:[#allocation52_spill] sm:$0xff] %v3693_v25  ;;  %v1586_v44 = vadd.f32 %v1570_v34, %v1533_v59  ;;  %v1101_v62 = vmul.f32 %v3500_v3, %v3675_v40  ;;  %v1153_v25 = vmul.f32 %v3503_v49, %v3677_v48 }
 0x185   : > { %5099 = vst [vmem:[#allocation53_spill] sm:$0xff] %v3697_v9  ;;  %5100 = vst [vmem:[#allocation54_spill] sm:$0xff] %v3701_v55  ;;  %v3719_v32 = vmul.f32 %v3666_v43, %v3707_v0  ;;  %v1323_v34 = vadd.f32 %v1307_v13, %v1270_v19  ;;  %v1411_v59 = vmul.f32 %v3539_v18, %v3489_v63 }
 0x186   : > { %5101 = vst [vmem:[#allocation55_spill] sm:$0xff] %v3707_v0  ;;  %5102 = vst [vmem:[#allocation56_spill] sm:$0xff] %v3709_v38  ;;  %v1638_v55 = vadd.f32 %v3589_v56, %v1586_v44  ;;  %v1463_v9 = vmul.f32 %v3542_v20, %v3508_v53  ;;  %v1117_v48 = vadd.f32 %v1101_v62, %v1049_v60 }
 0x187   : > { %5103 = vst [vmem:[#allocation57_spill] sm:$0xff] %v3719_v32  ;;  %5104 = vst [vmem:[#allocation58_spill] sm:$0xff] %v3723_v41  ;;  %v1205_v0 = vmul.f32 %v3506_v4, %v3705_v29  ;;  %v1375_v32 = vadd.f32 %v1359_v28, %v1323_v34  ;;  %v1515_v38 = vmul.f32 %v3545_v22, %v3519_v10  ;;  %v1027_v34 = vld [vmem:[#allocation3 + $0x8] sm:$0xff]  ;;  %v3812_v41 = vld [vmem:[#allocation3 + $0x3c] sm:$0xff] }
 0x188   : > { %v1568_v13 = vmul.f32 %v3548_v23, %v3526_v14  ;;  %v1620_v63 = vmul.f32 %v3551_v21, %v3556_v30  ;;  %v1690_v19 = vadd.f32 %v3598_v58, %v1638_v55  ;;  %v1672_v56 = vmul.f32 %v3563_v33, %v3558_v24  ;;  %v3757_v58 = vld [vmem:[#allocation3 + $0x38] sm:$0xff]  ;;  %v5107_v24 = vld [vmem:[#allocation36_spill] sm:$0xff] }
 0x189   : > { %v1169_v53 = vadd.f32 %v1153_v25, %v1117_v48  ;;  %v1257_v60 = vmul.f32 %v3517_v8, %v3727_v15  ;;  %v1427_v44 = vadd.f32 %v1411_v59, %v1375_v32  ;;  %v3747_v62 = vmul.f32 %v3578_v50, %v3560_v31  ;;  %v5109_v14 = vld [vmem:[#allocation39_spill] sm:$0xff] }
 0x18a   : > { %v3751_v10 = vmul.f32 %v3581_v51, %v3571_v46  ;;  %v3755_v28 = vmul.f32 %v3608_v6, %v3573_v47  ;;  %v1742_v48 = vadd.f32 %v3618_v1, %v1690_v19  ;;  %v3762_v25 = vmul.f32 %v3611_v7, %v3575_v27  ;;  %v3778_v19 = vld [vmem:[#allocation3 + $0x39] sm:$0xff] }
 0x18b   : > { %v1221_v55 = vadd.f32 %v1205_v0, %v1169_v53  ;;  %v1310_v32 = vmul.f32 %v3522_v61, %v3757_v58  ;;  %v1479_v59 = vadd.f32 %v1463_v9, %v1427_v44  ;;  %v3768_v46 = vmul.f32 %v3614_v57, %v3591_v12  ;;  %v1079_v0 = vld [vmem:[#allocation3 + $0x9] sm:$0xff] }
 0x18c   : > { %v3772_v47 = vmul.f32 %v3626_v17, %v3603_v54  ;;  %v3776_v1 = vmul.f32 %v3629_v26, %v3605_v45  ;;  %v1131_v53 = vld [vmem:[#allocation3 + $0xa] sm:$0xff]  ;;  %v1794_v27 = vadd.f32 %v3622_v5, %v1742_v48  ;;  %v3783_v9 = vmul.f32 %v3632_v35, %v3634_v36  ;;  %v3787_v54 = vld [vmem:[#allocation3 + $0x3a] sm:$0xff] }
 0x18d   : > { %v1273_v44 = vadd.f32 %v1257_v60, %v1221_v55  ;;  %v1362_v12 = vmul.f32 %v3534_v16, %v3778_v19  ;;  %v1531_v31 = vadd.f32 %v1515_v38, %v1479_v59  ;;  %v3791_v45 = vmul.f32 %v3641_v52, %v5107_v24  ;;  %v1183_v48 = vld [vmem:[#allocation3 + $0xb] sm:$0xff]  ;;  %v3797_v60 = vld [vmem:[#allocation3 + $0x3b] sm:$0xff] }
 0x18e   : > { %5105 = vst [vmem:[#allocation59_spill] sm:$0xff] %v3776_v1  ;;  %5106 = vst [vmem:[#allocation60_spill] sm:$0xff] %v3783_v9  ;;  %v1414_v30 = vmul.f32 %v3539_v18, %v3787_v54  ;;  %v1047_v5 = vmul.f32 %v3497_v2, %v1027_v34  ;;  %v1847_v36 = vadd.f32 %v5109_v14, %v1794_v27  ;;  %v5110_v59 = vld [vmem:[#allocation37_spill] sm:$0xff]  ;;  %v5113_v27 = vld [vmem:[#allocation40_spill] sm:$0xff] }
 0x18f   : > { %5108 = vst [vmem:[#allocation61_spill] sm:$0xff] %v3791_v45  ;;  %v1326_v9 = vadd.f32 %v1310_v32, %v1273_v44  ;;  %v1099_v55 = vmul.f32 %v3500_v3, %v1079_v0  ;;  %v1151_v1 = vmul.f32 %v3503_v49, %v1131_v53  ;;  %v1584_v38 = vadd.f32 %v1568_v13, %v1531_v31  ;;  %v1235_v14 = vld [vmem:[#allocation3 + $0xc] sm:$0xff] }
 0x190   : > { %v3803_v24 = vmul.f32 %v3644_v42, %v5110_v59  ;;  %v3807_v45 = vmul.f32 %v3666_v43, %v3659_v37  ;;  %v1466_v34 = vmul.f32 %v3542_v20, %v3797_v60  ;;  %v1899_v32 = vadd.f32 %v5113_v27, %v1847_v36  ;;  %v3814_v0 = vld [vmem:[#allocation3 + $0x50] sm:$0xff]  ;;  %v5114_v59 = vld [vmem:[#allocation43_spill] sm:$0xff]  ;;  %v5116_v36 = vld [vmem:[#allocation41_spill] sm:$0xff] }
 0x191   : > { %v1378_v44 = vadd.f32 %v1362_v12, %v1326_v9  ;;  %v1115_v31 = vadd.f32 %v1099_v55, %v1047_v5  ;;  %v1203_v13 = vmul.f32 %v3506_v4, %v1183_v48  ;;  %v1636_v53 = vadd.f32 %v1620_v63, %v1584_v38  ;;  %v3826_v27 = vld [vmem:[#allocation3 + $0x51] sm:$0xff] }
 0x192   : > { %5111 = vst [vmem:[#allocation39_spill] sm:$0xff] %v3803_v24  ;;  %5112 = vst [vmem:[#allocation62_spill] sm:$0xff] %v3807_v45  ;;  %v3819_v24 = vmul.f32 %v3669_v11, %v5114_v59  ;;  %v1518_v37 = vmul.f32 %v3545_v22, %v3812_v41  ;;  %v1571_v45 = vmul.f32 %v3548_v23, %v3814_v0  ;;  %v3828_v43 = vld [vmem:[#allocation3 + $0x52] sm:$0xff]  ;;  %v3842_v11 = vld [vmem:[#allocation3 + $0x68] sm:$0xff] }
 0x193   : > { %v1951_v12 = vadd.f32 %v5116_v36, %v1899_v32  ;;  %v1430_v9 = vadd.f32 %v1414_v30, %v1378_v44  ;;  %5117 = vst [vmem:[#allocation41_spill] sm:$0xff] %v3828_v43  ;;  %v3830_v5 = vld [vmem:[#allocation3 + $0x53] sm:$0xff]  ;;  %v1167_v63 = vadd.f32 %v1151_v1, %v1115_v31  ;;  %v1255_v48 = vmul.f32 %v3517_v8, %v1235_v14  ;;  %v5119_v30 = vld [vmem:[#allocation48_spill] sm:$0xff]  ;;  %v3844_v1 = vld [vmem:[#allocation3 + $0x69] sm:$0xff] }
 0x194   : > { %5115 = vst [vmem:[#allocation40_spill] sm:$0xff] %v3819_v24  ;;  %5118 = vst [vmem:[#allocation63_spill] sm:$0xff] %v3830_v5  ;;  %v1688_v55 = vadd.f32 %v1672_v56, %v1636_v53  ;;  %v1623_v38 = vmul.f32 %v3551_v21, %v3826_v27  ;;  %v1675_v59 = vmul.f32 %v3563_v33, %v3828_v43  ;;  %v3840_v24 = vld [vmem:[#allocation3 + $0x54] sm:$0xff]  ;;  %v3858_v43 = vld [vmem:[#allocation3 + $0x6a] sm:$0xff] }
 0x195   : > { %v1727_v32 = vmul.f32 %v3578_v50, %v3830_v5  ;;  %v2003_v44 = vadd.f32 %v5119_v30, %v1951_v12  ;;  %v1482_v36 = vadd.f32 %v1466_v34, %v1430_v9  ;;  %5120 = vst [vmem:[#allocation48_spill] sm:$0xff] %v3842_v11  ;;  %5121 = vst [vmem:[#allocation64_spill] sm:$0xff] %v3844_v1  ;;  %v5122_v12 = vld [vmem:[#allocation49_spill] sm:$0xff] }
 0x196   : > { %v1219_v14 = vadd.f32 %v1203_v13, %v1167_v63  ;;  %v1308_v56 = vmul.f32 %v3522_v61, %v3673_v39  ;;  %v1740_v31 = vadd.f32 %v3747_v62, %v1688_v55  ;;  %v1779_v53 = vmul.f32 %v3581_v51, %v3840_v24  ;;  %5123 = vst [vmem:[#allocation49_spill] sm:$0xff] %v3858_v43  ;;  %v3860_v13 = vld [vmem:[#allocation3 + $0x6b] sm:$0xff] }
 0x197   : > { %v1832_v5 = vmul.f32 %v3608_v6, %v3842_v11  ;;  %v3855_v34 = vmul.f32 %v3611_v7, %v3844_v1  ;;  %v2055_v9 = vadd.f32 %v5122_v12, %v2003_v44  ;;  %v1534_v30 = vadd.f32 %v1518_v37, %v1482_v36  ;;  %5124 = vst [vmem:[#allocation65_spill] sm:$0xff] %v3860_v13  ;;  %v3862_v39 = vld [vmem:[#allocation3 + $0x6c] sm:$0xff]  ;;  %v5128_v1 = vld [vmem:[#allocation47_spill] sm:$0xff] }
 0x198   : > { %5125 = vst [vmem:[#allocation66_spill] sm:$0xff] %v3862_v39  ;;  %v1271_v62 = vadd.f32 %v1255_v48, %v1219_v14  ;;  %v1360_v63 = vmul.f32 %v3534_v16, %v3675_v40  ;;  %v1792_v55 = vadd.f32 %v3751_v10, %v1740_v31  ;;  %v3869_v11 = vmul.f32 %v3614_v57, %v3858_v43  ;;  %v5126_v36 = vld [vmem:[#allocation50_spill] sm:$0xff]  ;;  %v3880_v14 = vld [vmem:[#allocation3 + $0x80] sm:$0xff] }
 0x199   : > { %v3873_v44 = vmul.f32 %v3626_v17, %v3860_v13  ;;  %v3877_v37 = vmul.f32 %v3629_v26, %v3862_v39  ;;  %v2108_v12 = vadd.f32 %v5126_v36, %v2055_v9  ;;  %v1587_v48 = vadd.f32 %v1571_v45, %v1534_v30  ;;  %5127 = vst [vmem:[#allocation50_spill] sm:$0xff] %v3880_v14  ;;  %v5129_v9 = vld [vmem:[#allocation53_spill] sm:$0xff] }
 0x19a   : > { %v1324_v40 = vadd.f32 %v1308_v56, %v1271_v62  ;;  %v1412_v10 = vmul.f32 %v3539_v18, %v5128_v1  ;;  %v1845_v31 = vadd.f32 %v3755_v28, %v1792_v55  ;;  %v3887_v43 = vmul.f32 %v3632_v35, %v3880_v14  ;;  %v5130_v55 = vld [vmem:[#allocation54_spill] sm:$0xff] }
 0x19b   : > { %v1464_v13 = vmul.f32 %v3542_v20, %v3705_v29  ;;  %v1051_v39 = vmul.f32 %v3757_v58, %v3497_v2  ;;  %v2160_v45 = vadd.f32 %v5129_v9, %v2108_v12  ;;  %v1639_v30 = vadd.f32 %v1623_v38, %v1587_v48  ;;  %v3904_v12 = vld [vmem:[#allocation3 + $0x81] sm:$0xff] }
 0x19c   : > { %v1376_v36 = vadd.f32 %v1360_v63, %v1324_v40  ;;  %v1103_v56 = vmul.f32 %v3778_v19, %v3500_v3  ;;  %v1897_v1 = vadd.f32 %v3762_v25, %v1845_v31  ;;  %v1516_v28 = vmul.f32 %v3545_v22, %v3727_v15  ;;  %5131 = vst [vmem:[#allocation47_spill] sm:$0xff] %v3904_v12  ;;  %v5132_v31 = vld [vmem:[#allocation57_spill] sm:$0xff] }
 0x19d   : > { %v1155_v62 = vmul.f32 %v3787_v54, %v3503_v49  ;;  %v1207_v29 = vmul.f32 %v3797_v60, %v3506_v4  ;;  %v2212_v14 = vadd.f32 %v5130_v55, %v2160_v45  ;;  %v1691_v35 = vadd.f32 %v1675_v59, %v1639_v30  ;;  %v3916_v59 = vld [vmem:[#allocation3 + $0x82] sm:$0xff]  ;;  %v5136_v55 = vld [vmem:[#allocation59_spill] sm:$0xff] }
 0x19e   : > { %v1428_v38 = vadd.f32 %v1412_v10, %v1376_v36  ;;  %v1119_v63 = vadd.f32 %v1103_v56, %v1051_v39  ;;  %v1949_v48 = vadd.f32 %v3768_v46, %v1897_v1  ;;  %v3909_v25 = vmul.f32 %v3641_v52, %v3904_v12  ;;  %5133 = vst [vmem:[#allocation53_spill] sm:$0xff] %v3916_v59  ;;  %v3921_v46 = vld [vmem:[%s4859_s5] ss:$0 sm:$0xff]  ;;  %v3933_v56 = vld [vmem:[#allocation3 + $0x83] sm:$0xff] }
 0x19f   : > { %v1569_v15 = vmul.f32 %v3548_v23, %v3757_v58  ;;  %v1259_v40 = vmul.f32 %v3812_v41, %v3517_v8  ;;  %v2264_v9 = vadd.f32 %v5132_v31, %v2212_v14  ;;  %v1743_v45 = vadd.f32 %v1727_v32, %v1691_v35  ;;  %v5134_v32 = vld [vmem:[#allocation58_spill] sm:$0xff]  ;;  %5135 = vst [vmem:[#allocation54_spill] sm:$0xff] %v3933_v56  ;;  %v3950_v31 = vld [vmem:[#allocation3 + $0x84] sm:$0xff] }
 0x1a0   : > { %v1480_v30 = vadd.f32 %v1464_v13, %v1428_v38  ;;  %v1171_v10 = vadd.f32 %v1155_v62, %v1119_v63  ;;  %v2001_v39 = vadd.f32 %v3772_v47, %v1949_v48  ;;  %v3926_v58 = vmul.f32 %v3644_v42, %v3916_v59  ;;  %v3938_v47 = vld [vmem:[%s4860_s6] ss:$0 sm:$0xff]  ;;  %v5137_v63 = vld [vmem:[#allocation45_spill] sm:$0xff]  ;;  %5138 = vst [vmem:[#allocation57_spill] sm:$0xff] %v3950_v31 }
 0x1a1   : > { %v1621_v36 = vmul.f32 %v3551_v21, %v3778_v19  ;;  %v1312_v35 = vmul.f32 %v3814_v0, %v3522_v61  ;;  %v2316_v13 = vadd.f32 %v5134_v32, %v2264_v9  ;;  %v1795_v14 = vadd.f32 %v1779_v53, %v1743_v45 }
 0x1a2   : > { %v1532_v1 = vadd.f32 %v1516_v28, %v1480_v30  ;;  %v1223_v62 = vadd.f32 %v1207_v29, %v1171_v10  ;;  %v2053_v38 = vadd.f32 %v5136_v55, %v2001_v39  ;;  %v3943_v19 = vmul.f32 %v5137_v63, %v3933_v56  ;;  %v5139_v30 = vld [vmem:[#allocation60_spill] sm:$0xff]  ;;  %v5140_v39 = vld [vmem:[#allocation46_spill] sm:$0xff] }
 0x1a3   : > { %v1673_v48 = vmul.f32 %v3563_v33, %v3787_v54  ;;  %v1364_v53 = vmul.f32 %v3826_v27, %v3534_v16  ;;  %v2339_v28 = vmul.f32 %v3921_v46, %v2316_v13  ;;  %v1848_v29 = vadd.f32 %v1832_v5, %v1795_v14  ;;  %v5141_v54 = vld [vmem:[#allocation41_spill] sm:$0xff] }
 0x1a4   : > { %v1585_v9 = vadd.f32 %v1569_v15, %v1532_v1  ;;  %v1275_v45 = vadd.f32 %v1259_v40, %v1223_v62  ;;  %v2106_v10 = vadd.f32 %v5139_v30, %v2053_v38  ;;  %v3955_v32 = vmul.f32 %v5140_v39, %v3950_v31  ;;  %v5143_v40 = vld [vmem:[#allocation61_spill] sm:$0xff] }
 0x1a5   : > { %v1725_v55 = vmul.f32 %v3578_v50, %v3797_v60  ;;  %v1416_v56 = vmul.f32 %v5141_v54, %v3539_v18  ;;  %v3962_v59 = vadd.f32 %v3938_v47, %v2339_v28  ;;  %v1900_v5 = vadd.f32 %v3855_v34, %v1848_v29  ;;  %v5144_v60 = vld [vmem:[#allocation63_spill] sm:$0xff] }
 0x1a6   : > { %v1637_v13 = vadd.f32 %v1621_v36, %v1585_v9  ;;  %v1328_v15 = vadd.f32 %v1312_v35, %v1275_v45  ;;  %v2158_v14 = vadd.f32 %v5143_v40, %v2106_v10  ;;  %v1777_v1 = vmul.f32 %v3581_v51, %v3812_v41  ;;  %v5145_v34 = vld [vmem:[#allocation39_spill] sm:$0xff]  ;;  %v5146_v40 = vld [vmem:[#allocation62_spill] sm:$0xff] }
 0x1a7   : > { %5142 = vst [vmem:[#allocation58_spill] sm:$0xff] %v3962_v59  ;;  %v1830_v62 = vmul.f32 %v3608_v6, %v3814_v0  ;;  %v1468_v38 = vmul.f32 %v5144_v60, %v3542_v20  ;;  %v2790_v30 = vmul.f32 -1.442695, %v3962_v59  ;;  %v1952_v28 = vadd.f32 %v3869_v11, %v1900_v5 }
 0x1a8   : > { %v1689_v31 = vadd.f32 %v1673_v48, %v1637_v13  ;;  %v1380_v18 = vadd.f32 %v1364_v53, %v1328_v15  ;;  %v2210_v36 = vadd.f32 %v5145_v34, %v2158_v14  ;;  %v1882_v35 = vmul.f32 %v3611_v7, %v3826_v27  ;;  %v5147_v53 = vld [vmem:[#allocation48_spill] sm:$0xff]  ;;  %v5148_v13 = vld [vmem:[#allocation15_spill] sm:$0xff] }
 0x1a9   : > { %v1934_v41 = vmul.f32 %v3614_v57, %v5141_v54  ;;  %v1520_v29 = vmul.f32 %v3840_v24, %v3545_v22  ;;  %3010 = vpow2.f32 %v2790_v30  ;;  %v2004_v9 = vadd.f32 %v3873_v44, %v1952_v28  ;;  %v5149_v30 = vld [vmem:[#allocation21_spill] sm:$0xff]  ;;  %v5152_v28 = vld [vmem:[#allocation22_spill] sm:$0xff] }
 0x1aa   : > { %v1741_v45 = vadd.f32 %v1725_v55, %v1689_v31  ;;  %v1432_v10 = vadd.f32 %v1416_v56, %v1380_v18  ;;  %v2262_v11 = vadd.f32 %v5146_v40, %v2210_v36  ;;  %v1986_v48 = vmul.f32 %v3626_v17, %v5144_v60  ;;  %v5150_v31 = vld [vmem:[#allocation40_spill] sm:$0xff]  ;;  %v5153_v40 = vld [vmem:[#allocation23_spill] sm:$0xff] }
 0x1ab   : > { %v1573_v5 = vmul.f32 %v5147_v53, %v3548_v23  ;;  %v1050_v15 = vmul.f32 %v5148_v13, %v3497_v2  ;;  %v2056_v14 = vadd.f32 %v3877_v37, %v2004_v9  ;;  %v1102_v44 = vmul.f32 %v5149_v30, %v3500_v3  ;;  %v5151_v56 = vld [vmem:[#allocation64_spill] sm:$0xff] }
 0x1ac   : > { %v1793_v34 = vadd.f32 %v1777_v1, %v1741_v45  ;;  %v1484_v59 = vadd.f32 %v1468_v38, %v1432_v10  ;;  %v2314_v18 = vadd.f32 %v5150_v31, %v2262_v11  ;;  %v1625_v55 = vmul.f32 %v5151_v56, %v3551_v21  ;;  %v5154_v45 = vld [vmem:[#allocation49_spill] sm:$0xff]  ;;  %v5155_v11 = vld [vmem:[#allocation24_spill] sm:$0xff] }
 0x1ad   : > { %v1154_v36 = vmul.f32 %v5152_v28, %v3503_v49  ;;  %v1206_v60 = vmul.f32 %v5153_v40, %v3506_v4  ;;  %v2109_v13 = vadd.f32 %v3887_v43, %v2056_v14  ;;  %v1118_v1 = vadd.f32 %v1102_v44, %v1050_v15  ;;  %v5159_v14 = vld [vmem:[#allocation25_spill] sm:$0xff] }
 0x1ae   : > { %v1846_v23 = vadd.f32 %v1830_v62, %v1793_v34  ;;  %v1536_v37 = vadd.f32 %v1520_v29, %v1484_v59  ;;  %v2337_v38 = vmul.f32 %v3921_v46, %v2314_v18  ;;  %v2038_v9 = vmul.f32 %v3629_v26, %v3840_v24  ;;  %v5157_v59 = vld [vmem:[#allocation34_spill] sm:$0xff]  ;;  %v5158_v29 = vld [vmem:[#allocation65_spill] sm:$0xff] }
 0x1af   : > { %v1677_v10 = vmul.f32 %v5154_v45, %v3563_v33  ;;  %v1258_v30 = vmul.f32 %v5155_v11, %v3517_v8  ;;  %v2161_v31 = vadd.f32 %v3909_v25, %v2109_v13  ;;  %v1170_v21 = vadd.f32 %v1154_v36, %v1118_v1  ;;  %v5160_v36 = vld [vmem:[#allocation66_spill] sm:$0xff] }
 0x1b0   : > { %v1898_v28 = vadd.f32 %v1882_v35, %v1846_v23  ;;  %v1589_v40 = vadd.f32 %v1573_v5, %v1536_v37  ;;  %v4009_v43 = vadd.f32 %v3938_v47, %v2337_v38  ;;  %v2091_v62 = vmul.f32 %v5157_v59, %v5147_v53 }
 0x1b1   : > { %v1729_v15 = vmul.f32 %v5158_v29, %v3578_v50  ;;  %v1311_v34 = vmul.f32 %v5159_v14, %v3522_v61  ;;  %v2213_v44 = vadd.f32 %v3926_v58, %v2161_v31  ;;  %v1222_v25 = vadd.f32 %v1206_v60, %v1170_v21  ;;  %v5161_v58 = vld [vmem:[#allocation50_spill] sm:$0xff] }
 0x1b2   : > { %5156 = vst [vmem:[#allocation59_spill] sm:$0xff] %v4009_v43  ;;  %v1950_v18 = vadd.f32 %v1934_v41, %v1898_v28  ;;  %v1641_v11 = vadd.f32 %v1625_v55, %v1589_v40  ;;  %v2788_v23 = vmul.f32 -1.442695, %v4009_v43  ;;  %v2143_v35 = vmul.f32 %v3641_v52, %v5151_v56  ;;  %v5162_v41 = vld [vmem:[#allocation26_spill] sm:$0xff] }
 0x1b3   : > { %v2195_v5 = vmul.f32 %v3644_v42, %v5154_v45  ;;  %v1781_v13 = vmul.f32 %v5160_v36, %v3581_v51  ;;  %v2265_v37 = vadd.f32 %v3943_v19, %v2213_v44  ;;  %v1274_v14 = vadd.f32 %v1258_v30, %v1222_v25  ;;  %v5164_v44 = vld [vmem:[#allocation16_spill] sm:$0xff] }
 0x1b4   : > { %v2002_v1 = vadd.f32 %v1986_v48, %v1950_v18  ;;  %v1693_v38 = vadd.f32 %v1677_v10, %v1641_v11  ;;  %3012 = vpow2.f32 %v2788_v23  ;;  %v2247_v21 = vmul.f32 %v5137_v63, %v5158_v29  ;;  %v5163_v10 = vld [vmem:[#allocation53_spill] sm:$0xff]  ;;  %v5165_v18 = vld [vmem:[#allocation27_spill] sm:$0xff] }
 0x1b5   : > { %v1834_v60 = vmul.f32 %v5161_v58, %v3608_v6  ;;  %v1363_v55 = vmul.f32 %v5162_v41, %v3534_v16  ;;  %v2317_v31 = vadd.f32 %v3955_v32, %v2265_v37  ;;  %v1327_v43 = vadd.f32 %v1311_v34, %v1274_v14  ;;  %v5167_v37 = vld [vmem:[#allocation57_spill] sm:$0xff]  ;;  %v5168_v14 = vld [vmem:[#allocation28_spill] sm:$0xff] }
 0x1b6   : > { %v2054_v28 = vadd.f32 %v2038_v9, %v2002_v1  ;;  %v1745_v40 = vadd.f32 %v1729_v15, %v1693_v38  ;;  %v3011_v45 = vpop.eup %3010  ;;  %v2299_v19 = vmul.f32 %v5140_v39, %v5160_v36  ;;  %v1886_v48 = vmul.f32 %v3904_v12, %v3611_v7  ;;  %v5166_v15 = vld [vmem:[#allocation54_spill] sm:$0xff] }
 0x1b7   : > { %v1938_v30 = vmul.f32 %v5163_v10, %v3614_v57  ;;  %v1415_v11 = vmul.f32 %v5165_v18, %v5164_v44  ;;  %v2426_v25 = vadd.f32 1.0, %v3011_v45  ;;  %v2340_v23 = vmul.f32 %v3921_v46, %v2317_v31 }
 0x1b8   : > { %v2107_v32 = vadd.f32 %v2091_v62, %v2054_v28  ;;  %v1797_v9 = vadd.f32 %v1781_v13, %v1745_v40  ;;  %v1990_v34 = vmul.f32 %v5166_v15, %v3626_v17  ;;  %v2042_v1 = vmul.f32 %v5167_v37, %v3629_v26  ;;  %v5170_v62 = vld [vmem:[#allocation29_spill] sm:$0xff] }
 0x1b9   : > { %v1379_v38 = vadd.f32 %v1363_v55, %v1327_v43  ;;  %v1467_v41 = vmul.f32 %v5168_v14, %v3542_v20  ;;  %3014 = vrcp.f32 %v2426_v25  ;;  %v4049_v10 = vadd.f32 %v3938_v47, %v2340_v23  ;;  %v4060_v23 = vld [vmem:[#allocation3 + $0x98] sm:$0xff] }
 0x1ba   : > { %v2159_v18 = vadd.f32 %v2143_v35, %v2107_v32  ;;  %v1850_v45 = vadd.f32 %v1834_v60, %v1797_v9  ;;  %v1519_v13 = vmul.f32 %v5170_v62, %v3545_v22  ;;  %v1053_v31 = vmul.f32 %v3814_v0, %v3497_v2  ;;  %v5171_v60 = vld [vmem:[#allocation19_spill] sm:$0xff] }
 0x1bb   : > { %5169 = vst [vmem:[#allocation45_spill] sm:$0xff] %v4049_v10  ;;  %v1431_v12 = vadd.f32 %v1415_v11, %v1379_v38  ;;  %v1105_v28 = vmul.f32 %v3826_v27, %v3500_v3  ;;  %v2791_v43 = vmul.f32 -1.442695, %v4049_v10  ;;  %v1157_v25 = vmul.f32 %v5141_v54, %v3503_v49  ;;  %v5172_v11 = vld [vmem:[#allocation35_spill] sm:$0xff]  ;;  %v5184_v10 = vld [vmem:[#allocation49_spill] sm:$0xff] }
 0x1bc   : > { %v2211_v55 = vadd.f32 %v2195_v5, %v2159_v18  ;;  %v1902_v40 = vadd.f32 %v1886_v48, %v1850_v45  ;;  %v1572_v32 = vmul.f32 %v5172_v11, %v5171_v60  ;;  %v5173_v38 = vld [vmem:[#allocation63_spill] sm:$0xff]  ;;  %v2095_v5 = vmul.f32 %v5157_v59, %v4060_v23  ;;  %v5176_v45 = vld [vmem:[#allocation20_spill] sm:$0xff] }
 0x1bd   : > { %v1483_v35 = vadd.f32 %v1467_v41, %v1431_v12  ;;  %v1121_v9 = vadd.f32 %v1105_v28, %v1053_v31  ;;  %v1209_v0 = vmul.f32 %v5173_v38, %v3506_v4  ;;  %3016 = vpow2.f32 %v2791_v43  ;;  %v4068_v48 = vld [vmem:[#allocation3 + $0x99] sm:$0xff]  ;;  %v5180_v38 = vld [vmem:[#allocation42_spill] sm:$0xff] }
 0x1be   : > { %v2263_v14 = vadd.f32 %v2247_v21, %v2211_v55  ;;  %v1954_v27 = vadd.f32 %v1938_v30, %v1902_v40  ;;  %5174 = vst [vmem:[#allocation60_spill] sm:$0xff] %v4068_v48  ;;  %v4070_v18 = vld [vmem:[#allocation3 + $0x9a] sm:$0xff]  ;;  %v1261_v31 = vmul.f32 %v3840_v24, %v3517_v8  ;;  %v2147_v21 = vmul.f32 %v3641_v52, %v4068_v48 }
 0x1bf   : > { %5175 = vst [vmem:[#allocation41_spill] sm:$0xff] %v4070_v18  ;;  %v1535_v54 = vadd.f32 %v1519_v13, %v1483_v35  ;;  %v5177_v12 = vld [vmem:[#allocation36_spill] sm:$0xff]  ;;  %v1173_v62 = vadd.f32 %v1157_v25, %v1121_v9  ;;  %v2199_v30 = vmul.f32 %v3644_v42, %v4070_v18  ;;  %v5179_v13 = vld [vmem:[#allocation37_spill] sm:$0xff]  ;;  %v1314_v25 = vmul.f32 %v5147_v53, %v3522_v61 }
 0x1c0   : > { %v1624_v41 = vmul.f32 %v5177_v12, %v5176_v45  ;;  %v2315_v28 = vadd.f32 %v2299_v19, %v2263_v14  ;;  %v2006_v11 = vadd.f32 %v1990_v34, %v1954_v27  ;;  %v4080_v43 = vld [vmem:[#allocation3 + $0x9b] sm:$0xff]  ;;  %v1676_v40 = vmul.f32 %v5179_v13, %v3563_v33 }
 0x1c1   : > { %5178 = vst [vmem:[#allocation61_spill] sm:$0xff] %v4080_v43  ;;  %v1588_v55 = vadd.f32 %v1572_v32, %v1535_v54  ;;  %v1225_v35 = vadd.f32 %v1209_v0, %v1173_v62  ;;  %v3013_v9 = vpop.eup %3012  ;;  %v2251_v34 = vmul.f32 %v5137_v63, %v4080_v43  ;;  %v1728_v14 = vmul.f32 %v5180_v38, %v3578_v50  ;;  %v4091_v12 = vld [vmem:[#allocation3 + $0x9c] sm:$0xff] }
 0x1c2   : > { %v2338_v24 = vmul.f32 %v3921_v46, %v2315_v28  ;;  %v2058_v19 = vadd.f32 %v2042_v1, %v2006_v11  ;;  %v2424_v27 = vadd.f32 1.0, %v3013_v9  ;;  %5181 = vst [vmem:[#allocation39_spill] sm:$0xff] %v4091_v12  ;;  %v1366_v0 = vmul.f32 %v5151_v56, %v3534_v16  ;;  %v5183_v28 = vld [vmem:[#allocation43_spill] sm:$0xff] }
 0x1c3   : > { %v1640_v32 = vadd.f32 %v1624_v41, %v1588_v55  ;;  %v1277_v54 = vadd.f32 %v1261_v31, %v1225_v35  ;;  %v2303_v1 = vmul.f32 %v5140_v39, %v4091_v12  ;;  %v1780_v11 = vmul.f32 %v5183_v28, %v3581_v51  ;;  %v5185_v35 = vld [vmem:[#allocation44_spill] sm:$0xff] }
 0x1c4   : > { %v4096_v62 = vadd.f32 %v3938_v47, %v2338_v24  ;;  %v2111_v13 = vadd.f32 %v2095_v5, %v2058_v19  ;;  %3018 = vrcp.f32 %v2424_v27  ;;  %v1418_v41 = vmul.f32 %v5184_v10, %v5164_v44  ;;  %v5186_v5 = vld [vmem:[#allocation51_spill] sm:$0xff]  ;;  %v5187_v12 = vld [vmem:[#allocation52_spill] sm:$0xff] }
 0x1c5   : > { %v1692_v38 = vadd.f32 %v1676_v40, %v1640_v32  ;;  %v1330_v9 = vadd.f32 %v1314_v25, %v1277_v54  ;;  %v1833_v24 = vmul.f32 %v5185_v35, %v3608_v6  ;;  %v1885_v19 = vmul.f32 %v5186_v5, %v3611_v7  ;;  %v1032_v25 = vld [vmem:[#allocation3 + $0x48] sm:$0xff]  ;;  %v5189_v35 = vld [vmem:[#allocation55_spill] sm:$0xff] }
 0x1c6   : > { %5182 = vst [vmem:[#allocation62_spill] sm:$0xff] %v4096_v62  ;;  %v2789_v31 = vmul.f32 -1.442695, %v4096_v62  ;;  %v2163_v55 = vadd.f32 %v2147_v21, %v2111_v13  ;;  %v3015_v56 = vpop.eup %3014  ;;  %v1937_v28 = vmul.f32 %v5187_v12, %v3614_v57  ;;  %v1470_v40 = vmul.f32 %v5158_v29, %v3542_v20  ;;  %v1084_v32 = vld [vmem:[#allocation3 + $0x49] sm:$0xff] }
 0x1c7   : > { %v1744_v53 = vadd.f32 %v1728_v14, %v1692_v38  ;;  %v1382_v27 = vadd.f32 %v1366_v0, %v1330_v9  ;;  %v1136_v54 = vld [vmem:[#allocation3 + $0x4a] sm:$0xff]  ;;  %v1989_v10 = vmul.f32 %v5189_v35, %v3626_v17  ;;  %v5190_v14 = vld [vmem:[#allocation56_spill] sm:$0xff]  ;;  %v1522_v12 = vmul.f32 %v5160_v36, %v3545_v22 }
 0x1c8   : > { %v5188_v62 = vld [vmem:[#allocation58_spill] sm:$0xff]  ;;  %3020 = vpow2.f32 %v2789_v31  ;;  %v2215_v13 = vadd.f32 %v2199_v30, %v2163_v55  ;;  %v2041_v38 = vmul.f32 %v5190_v14, %v3629_v26  ;;  %v1104_v30 = vmul.f32 %v3500_v3, %v1084_v32 }
 0x1c9   : > { %v2474_v21 = vmul.f32 %v3015_v56, %v5188_v62  ;;  %v1796_v5 = vadd.f32 %v1780_v11, %v1744_v53  ;;  %v1434_v43 = vadd.f32 %v1418_v41, %v1382_v27  ;;  %v1188_v0 = vld [vmem:[#allocation3 + $0x4b] sm:$0xff]  ;;  %v1052_v56 = vmul.f32 %v3497_v2, %v1032_v25 }
 0x1ca   : > { %v2267_v9 = vadd.f32 %v2251_v34, %v2215_v13  ;;  %v4121_v29 = vld [vmem:[#allocation3 + $0x90] sm:$0xff]  ;;  %v1156_v53 = vmul.f32 %v3503_v49, %v1136_v54  ;;  %v3017_v62 = vpop.eup %3016  ;;  %v1575_v55 = vmul.f32 %v5161_v58, %v5171_v60  ;;  %v1208_v25 = vmul.f32 %v3506_v4, %v1188_v0 }
 0x1cb   : > { %2508 = vrot.lane.b32.xlu1 %v2474_v21, %s3142_s11  ;;  %5191 = vst [vmem:[#allocation15_spill] sm:$0xff] %v4121_v29  ;;  %v1849_v11 = vadd.f32 %v1833_v24, %v1796_v5  ;;  %v2094_v41 = vmul.f32 %v5157_v59, %v4121_v29  ;;  %v1486_v31 = vadd.f32 %v1470_v40, %v1434_v43  ;;  %v1240_v27 = vld [vmem:[#allocation3 + $0x4c] sm:$0xff]  ;;  %v2427_v21 = vadd.f32 1.0, %v3017_v62  ;;  %v5193_v5 = vld [vmem:[#allocation47_spill] sm:$0xff] }
 0x1cc   : > { %v2319_v34 = vadd.f32 %v2303_v1, %v2267_v9  ;;  %v4130_v13 = vld [vmem:[#allocation3 + $0x91] sm:$0xff]  ;;  %v1120_v35 = vadd.f32 %v1104_v30, %v1052_v56  ;;  %v1627_v14 = vmul.f32 %v5193_v5, %v5176_v45  ;;  %v1260_v1 = vmul.f32 %v3517_v8, %v1240_v27 }
 0x1cd   : > { %5192 = vst [vmem:[#allocation21_spill] sm:$0xff] %v4130_v13  ;;  %v1901_v32 = vadd.f32 %v1885_v19, %v1849_v11  ;;  %v2146_v54 = vmul.f32 %v3641_v52, %v4130_v13  ;;  %v1538_v24 = vadd.f32 %v1522_v12, %v1486_v31  ;;  %3022 = vrcp.f32 %v2427_v21  ;;  %v4138_v40 = vld [vmem:[#allocation3 + $0x92] sm:$0xff]  ;;  %v5196_v12 = vld [vmem:[#allocation53_spill] sm:$0xff]  ;;  %v4147_v11 = vld [vmem:[#allocation3 + $0x60] sm:$0xff] }
 0x1ce   : > { %v2342_v43 = vmul.f32 %v3921_v46, %v2319_v34  ;;  %5194 = vst [vmem:[#allocation40_spill] sm:$0xff] %v4138_v40  ;;  %v1172_v62 = vadd.f32 %v1156_v53, %v1120_v35  ;;  %v2198_v0 = vmul.f32 %v3644_v42, %v4138_v40  ;;  %v4143_v19 = vld [vmem:[#allocation3 + $0x93] sm:$0xff]  ;;  %v1679_v30 = vmul.f32 %v5196_v12, %v3563_v33 }
 0x1cf   : > { %v1953_v9 = vadd.f32 %v1937_v28, %v1901_v32  ;;  %5195 = vst [vmem:[#allocation22_spill] sm:$0xff] %v4143_v19  ;;  %v1591_v56 = vadd.f32 %v1575_v55, %v1538_v24  ;;  %5197 = vst [vmem:[#allocation23_spill] sm:$0xff] %v4147_v11  ;;  %v2250_v53 = vmul.f32 %v5137_v63, %v4143_v19  ;;  %v4154_v21 = vld [vmem:[#allocation3 + $0x94] sm:$0xff]  ;;  %v4162_v24 = vld [vmem:[#allocation3 + $0x61] sm:$0xff] }
 0x1d0   : > { %v4150_v31 = vadd.f32 %v3938_v47, %v2342_v43  ;;  %5199 = vst [vmem:[#allocation34_spill] sm:$0xff] %v4154_v21  ;;  %v1224_v28 = vadd.f32 %v1208_v25, %v1172_v62  ;;  %v1313_v27 = vmul.f32 %v3522_v61, %v4147_v11  ;;  %v2302_v55 = vmul.f32 %v5140_v39, %v4154_v21 }
 0x1d1   : > { %v2005_v34 = vadd.f32 %v1989_v10, %v1953_v9  ;;  %v1643_v35 = vadd.f32 %v1627_v14, %v1591_v56  ;;  %v1731_v32 = vmul.f32 %v5166_v15, %v3578_v50  ;;  %5200 = vst [vmem:[#allocation25_spill] sm:$0xff] %v4162_v24  ;;  %v3019_v43 = vpop.eup %3018  ;;  %v1783_v19 = vmul.f32 %v5167_v37, %v3581_v51  ;;  %v5201_v10 = vld [vmem:[#allocation59_spill] sm:$0xff]  ;;  %v4172_v56 = vld [vmem:[#allocation3 + $0x62] sm:$0xff] }
 0x1d2   : > { %5198 = vst [vmem:[#allocation24_spill] sm:$0xff] %v4150_v31  ;;  %v2793_v12 = vmul.f32 -1.442695, %v4150_v31  ;;  %v1276_v25 = vadd.f32 %v1260_v1, %v1224_v28  ;;  %v1365_v62 = vmul.f32 %v3534_v16, %v4162_v24  ;;  %v2472_v9 = vmul.f32 %v3019_v43, %v5201_v10  ;;  %5202 = vst [vmem:[#allocation66_spill] sm:$0xff] %v4172_v56  ;;  %v5205_v10 = vld [vmem:[#allocation39_spill] sm:$0xff] }
 0x1d3   : > { %v2057_v11 = vadd.f32 %v2041_v38, %v2005_v34  ;;  %v1695_v21 = vadd.f32 %v1679_v30, %v1643_v35  ;;  %v1836_v14 = vmul.f32 %v4060_v23, %v3608_v6  ;;  %v1888_v31 = vmul.f32 %v4068_v48, %v3611_v7  ;;  %v5203_v30 = vld [vmem:[#allocation61_spill] sm:$0xff] }
 0x1d4   : > { %3024 = vpow2.f32 %v2793_v12  ;;  %v1329_v15 = vadd.f32 %v1313_v27, %v1276_v25  ;;  %v1417_v1 = vmul.f32 %v5164_v44, %v4172_v56  ;;  %2504 = vrot.lane.b32.xlu0 %v2472_v9, %s3142_s11  ;;  %v1940_v38 = vmul.f32 %v4070_v18, %v3614_v57  ;;  %v4183_v35 = vld [vmem:[#allocation3 + $0x63] sm:$0xff] }
 0x1d5   : > { %v3021_v28 = vpop.eup %3020  ;;  %v2110_v24 = vadd.f32 %v2094_v41, %v2057_v11  ;;  %v1747_v43 = vadd.f32 %v1731_v32, %v1695_v21  ;;  %v1992_v34 = vmul.f32 %v5203_v30, %v3626_v17  ;;  %5204 = vst [vmem:[#allocation50_spill] sm:$0xff] %v4183_v35  ;;  %v2044_v27 = vmul.f32 %v5205_v10, %v3629_v26  ;;  %v4189_v56 = vld [vmem:[#allocation3 + $0x64] sm:$0xff]  ;;  %v4195_v30 = vld [vmem:[#allocation3 + $0xb0] sm:$0xff] }
 0x1d6   : > { %v2425_v12 = vadd.f32 1.0, %v3021_v28  ;;  %v1381_v25 = vadd.f32 %v1365_v62, %v1329_v15  ;;  %v1469_v48 = vmul.f32 %v3542_v20, %v4183_v35  ;;  %5206 = vst [vmem:[#allocation26_spill] sm:$0xff] %v4189_v56  ;;  %v1521_v21 = vmul.f32 %v3545_v22, %v4189_v56  ;;  %v5207_v32 = vld [vmem:[#allocation48_spill] sm:$0xff]  ;;  %5208 = vst [vmem:[#allocation16_spill] sm:$0xff] %v4195_v30  ;;  %v4197_v28 = vld [vmem:[#allocation3 + $0xb1] sm:$0xff] }
 0x1d7   : > { %v2162_v41 = vadd.f32 %v2146_v54, %v2110_v24  ;;  %v1799_v11 = vadd.f32 %v1783_v19, %v1747_v43  ;;  %v1055_v9 = vmul.f32 %v5207_v32, %v3497_v2  ;;  %5209 = vst [vmem:[#allocation27_spill] sm:$0xff] %v4197_v28  ;;  %v5210_v15 = vld [vmem:[#allocation64_spill] sm:$0xff]  ;;  %v5211_v18 = vld [vmem:[#allocation49_spill] sm:$0xff]  ;;  %v2097_v24 = vmul.f32 %v5157_v59, %v4195_v30  ;;  %v4209_v32 = vld [vmem:[#allocation3 + $0xb2] sm:$0xff] }
 0x1d8   : > { %3026 = vrcp.f32 %v2425_v12  ;;  %v1433_v10 = vadd.f32 %v1417_v1, %v1381_v25  ;;  %v1107_v62 = vmul.f32 %v5210_v15, %v3500_v3  ;;  %v1159_v35 = vmul.f32 %v5211_v18, %v3503_v49  ;;  %v4207_v12 = vld [vmem:[#allocation3 + $0x78] sm:$0xff]  ;;  %5213 = vst [vmem:[#allocation28_spill] sm:$0xff] %v4209_v32  ;;  %v5215_v18 = vld [vmem:[#allocation65_spill] sm:$0xff] }
 0x1d9   : > { %v2214_v54 = vadd.f32 %v2198_v0, %v2162_v41  ;;  %v1852_v19 = vadd.f32 %v1836_v14, %v1799_v11  ;;  %v2149_v43 = vmul.f32 %v3641_v52, %v4197_v28  ;;  %5212 = vst [vmem:[#allocation57_spill] sm:$0xff] %v4207_v12  ;;  %v1574_v1 = vmul.f32 %v5171_v60, %v4207_v12  ;;  %v4213_v25 = vld [vmem:[#allocation3 + $0x79] sm:$0xff]  ;;  %v5216_v52 = vld [vmem:[#allocation45_spill] sm:$0xff] }
 0x1da   : > { %v1485_v56 = vadd.f32 %v1469_v48, %v1433_v10  ;;  %5214 = vst [vmem:[#allocation29_spill] sm:$0xff] %v4213_v25  ;;  %v1123_v15 = vadd.f32 %v1107_v62, %v1055_v9  ;;  %v1211_v0 = vmul.f32 %v5215_v18, %v3506_v4  ;;  %v3023_v14 = vpop.eup %3022  ;;  %v2201_v28 = vmul.f32 %v3644_v42, %v4209_v32  ;;  %v4222_v10 = vld [vmem:[#allocation3 + $0xb3] sm:$0xff] }
 0x1db   : > { %v2266_v41 = vadd.f32 %v2250_v53, %v2214_v54  ;;  %v1904_v11 = vadd.f32 %v1888_v31, %v1852_v19  ;;  %v1626_v30 = vmul.f32 %v5176_v45, %v4213_v25  ;;  %v2475_v48 = vmul.f32 %v3023_v14, %v5216_v52  ;;  %5217 = vst [vmem:[#allocation35_spill] sm:$0xff] %v4222_v10  ;;  %v4224_v12 = vld [vmem:[#allocation3 + $0xb4] sm:$0xff] }
 0x1dc   : > { %5218 = vst [vmem:[#allocation63_spill] sm:$0xff] %v4224_v12  ;;  %v1537_v49 = vadd.f32 %v1521_v21, %v1485_v56  ;;  %v1175_v9 = vadd.f32 %v1159_v35, %v1123_v15  ;;  %v1263_v62 = vmul.f32 %v5160_v36, %v3517_v8  ;;  %v2253_v31 = vmul.f32 %v5137_v63, %v4222_v10  ;;  %v4234_v19 = vld [vmem:[#allocation3 + $0x7a] sm:$0xff] }
 0x1dd   : > { %v2318_v18 = vadd.f32 %v2302_v55, %v2266_v41  ;;  %v1956_v53 = vadd.f32 %v1940_v38, %v1904_v11  ;;  %v4232_v54 = vmul.f32 %v5140_v39, %v4224_v12  ;;  %5219 = vst [vmem:[#allocation20_spill] sm:$0xff] %v4234_v19  ;;  %2510 = vrot.lane.b32.xlu1 %v2475_v48, %s3142_s11  ;;  %v4239_v35 = vld [vmem:[#allocation3 + $0x7b] sm:$0xff] }
 0x1de   : > { %v1590_v52 = vadd.f32 %v1574_v1, %v1537_v49  ;;  %v1678_v56 = vmul.f32 %v3563_v33, %v4234_v19  ;;  %5220 = vst [vmem:[#allocation36_spill] sm:$0xff] %v4239_v35  ;;  %v4241_v36 = vld [vmem:[#allocation3 + $0x7c] sm:$0xff]  ;;  %v1227_v55 = vadd.f32 %v1211_v0, %v1175_v9  ;;  %v1316_v38 = vmul.f32 %v5161_v58, %v3522_v61 }
 0x1df   : > { %5221 = vst [vmem:[#allocation37_spill] sm:$0xff] %v4241_v36  ;;  %v2341_v21 = vmul.f32 %v3921_v46, %v2318_v18  ;;  %v2008_v15 = vadd.f32 %v1992_v34, %v1956_v53  ;;  %v1730_v14 = vmul.f32 %v3578_v50, %v4239_v35  ;;  %v1782_v49 = vmul.f32 %v3581_v51, %v4241_v36  ;;  %v5224_v36 = vld [vmem:[#allocation22_spill] sm:$0xff] }
 0x1e0   : > { %v1642_v1 = vadd.f32 %v1626_v30, %v1590_v52  ;;  %v1835_v41 = vmul.f32 %v4121_v29, %v3608_v6  ;;  %v1279_v11 = vadd.f32 %v1263_v62, %v1227_v55  ;;  %v1368_v0 = vmul.f32 %v5193_v5, %v3534_v16  ;;  %v5223_v29 = vld [vmem:[#allocation53_spill] sm:$0xff] }
 0x1e1   : > { %v3025_v48 = vpop.eup %3024  ;;  %v4255_v58 = vadd.f32 %v3938_v47, %v2341_v21  ;;  %v2060_v9 = vadd.f32 %v2044_v27, %v2008_v15  ;;  %v1887_v34 = vmul.f32 %v4130_v13, %v3611_v7  ;;  %v1939_v18 = vmul.f32 %v4138_v40, %v3614_v57  ;;  %v5225_v27 = vld [vmem:[#allocation34_spill] sm:$0xff] }
 0x1e2   : > { %v2429_v53 = vadd.f32 1.0, %v3025_v48  ;;  %v1694_v30 = vadd.f32 %v1678_v56, %v1642_v1  ;;  %v1332_v52 = vadd.f32 %v1316_v38, %v1279_v11  ;;  %v1420_v62 = vmul.f32 %v5223_v29, %v5164_v44  ;;  %v5226_v40 = vld [vmem:[#allocation54_spill] sm:$0xff] }
 0x1e3   : > { %5222 = vst [vmem:[#allocation42_spill] sm:$0xff] %v4255_v58  ;;  %v2792_v55 = vmul.f32 -1.442695, %v4255_v58  ;;  %v2113_v5 = vadd.f32 %v2097_v24, %v2060_v9  ;;  %v1991_v21 = vmul.f32 %v5224_v36, %v3626_v17  ;;  %v2043_v15 = vmul.f32 %v5225_v27, %v3629_v26  ;;  %v5227_v24 = vld [vmem:[#allocation23_spill] sm:$0xff]  ;;  %v5228_v11 = vld [vmem:[#allocation62_spill] sm:$0xff]  ;;  %v4275_v36 = vld [vmem:[#allocation3 + $0xa8] sm:$0xff] }
 0x1e4   : > { %3028 = vrcp.f32 %v2429_v53  ;;  %v1746_v13 = vadd.f32 %v1730_v14, %v1694_v30  ;;  %v1384_v35 = vadd.f32 %v1368_v0, %v1332_v52  ;;  %v1472_v48 = vmul.f32 %v5226_v40, %v3542_v20  ;;  %5229 = vst [vmem:[#allocation43_spill] sm:$0xff] %v4275_v36  ;;  %v5230_v14 = vld [vmem:[#allocation25_spill] sm:$0xff]  ;;  %v5232_v52 = vld [vmem:[#allocation66_spill] sm:$0xff] }
 0x1e5   : > { %v3027_v56 = vpop.eup %3026  ;;  %3030 = vpow2.f32 %v2792_v55  ;;  %v2165_v38 = vadd.f32 %v2149_v43, %v2113_v5  ;;  %v1524_v29 = vmul.f32 %v5167_v37, %v3545_v22  ;;  %v1054_v1 = vmul.f32 %v5227_v24, %v3497_v2  ;;  %v5231_v37 = vld [vmem:[#allocation14_spill] sm:$0xff] }
 0x1e6   : > { %v2473_v9 = vmul.f32 %v3027_v56, %v5228_v11  ;;  %v1798_v58 = vadd.f32 %v1782_v49, %v1746_v13  ;;  %v1436_v53 = vadd.f32 %v1420_v62, %v1384_v35  ;;  %v1106_v0 = vmul.f32 %v5230_v14, %v3500_v3  ;;  %v4286_v13 = vld [vmem:[#allocation3 + $0xa9] sm:$0xff] }
 0x1e7   : > { %v2217_v30 = vadd.f32 %v2201_v28, %v2165_v38  ;;  %v2096_v40 = vmul.f32 %v5157_v59, %v4275_v36  ;;  %v1577_v43 = vmul.f32 %v4060_v23, %v5171_v60  ;;  %v1158_v55 = vmul.f32 %v5232_v52, %v5231_v37  ;;  %5233 = vst [vmem:[#allocation44_spill] sm:$0xff] %v4286_v13  ;;  %v4288_v49 = vld [vmem:[#allocation3 + $0xaa] sm:$0xff]  ;;  %v5237_v52 = vld [vmem:[#allocation60_spill] sm:$0xff] }
 0x1e8   : > { %2506 = vrot.lane.b32.xlu0 %v2473_v9, %s3142_s11  ;;  %v1851_v5 = vadd.f32 %v1835_v41, %v1798_v58  ;;  %5234 = vst [vmem:[#allocation51_spill] sm:$0xff] %v4288_v49  ;;  %v1488_v35 = vadd.f32 %v1472_v48, %v1436_v53  ;;  %v1122_v62 = vadd.f32 %v1106_v0, %v1054_v1  ;;  %v5235_v28 = vld [vmem:[#allocation50_spill] sm:$0xff] }
 0x1e9   : > { %v1210_v56 = vmul.f32 %v5235_v28, %v3506_v4  ;;  %v2269_v38 = vadd.f32 %v2253_v31, %v2217_v30  ;;  %v5236_v24 = vld [vmem:[#allocation38_spill] sm:$0xff]  ;;  %v2200_v14 = vmul.f32 %v3644_v42, %v4288_v49  ;;  %v1629_v9 = vmul.f32 %v5237_v52, %v5176_v45 }
 0x1ea   : > { %v2148_v11 = vmul.f32 %v5236_v24, %v4286_v13  ;;  %v1903_v41 = vadd.f32 %v1887_v34, %v1851_v5  ;;  %v4298_v58 = vld [vmem:[#allocation3 + $0xab] sm:$0xff]  ;;  %v1540_v48 = vadd.f32 %v1524_v29, %v1488_v35  ;;  %v1174_v1 = vadd.f32 %v1158_v55, %v1122_v62 }
 0x1eb   : > { %5238 = vst [vmem:[#allocation52_spill] sm:$0xff] %v4298_v58  ;;  %v4300_v36 = vld [vmem:[#allocation3 + $0xac] sm:$0xff]  ;;  %v2321_v31 = vadd.f32 %v4232_v54, %v2269_v38  ;;  %v2252_v30 = vmul.f32 %v5137_v63, %v4298_v58  ;;  %v5245_v38 = vld [vmem:[#allocation39_spill] sm:$0xff] }
 0x1ec   : > { %5239 = vst [vmem:[#allocation58_spill] sm:$0xff] %v4300_v36  ;;  %v5240_v53 = vld [vmem:[#allocation26_spill] sm:$0xff]  ;;  %v4309_v28 = vmul.f32 %v5140_v39, %v4300_v36  ;;  %v5242_v34 = vld [vmem:[#allocation41_spill] sm:$0xff]  ;;  %v1955_v49 = vadd.f32 %v1939_v18, %v1903_v41  ;;  %v1593_v13 = vadd.f32 %v1577_v43, %v1540_v48  ;;  %v1226_v52 = vadd.f32 %v1210_v56, %v1174_v1  ;;  %v5246_v36 = vld [vmem:[#allocation16_spill] sm:$0xff] }
 0x1ed   : > { %v1262_v0 = vmul.f32 %v5240_v53, %v3517_v8  ;;  %v1681_v5 = vmul.f32 %v5242_v34, %v3563_v33  ;;  %v5243_v29 = vld [vmem:[#allocation57_spill] sm:$0xff]  ;;  %v2344_v35 = vmul.f32 %v3921_v46, %v2321_v31  ;;  %v1785_v53 = vmul.f32 %v5245_v38, %v3581_v51  ;;  %v5248_v56 = vld [vmem:[#allocation27_spill] sm:$0xff] }
 0x1ee   : > { %5241 = vst [vmem:[#allocation55_spill] sm:$0xff] %v4309_v28  ;;  %v1315_v55 = vmul.f32 %v5243_v29, %v3522_v61  ;;  %v5244_v54 = vld [vmem:[#allocation61_spill] sm:$0xff]  ;;  %v1838_v58 = vmul.f32 %v5246_v36, %v3608_v6  ;;  %v2007_v27 = vadd.f32 %v1991_v21, %v1955_v49  ;;  %v1645_v28 = vadd.f32 %v1629_v9, %v1593_v13 }
 0x1ef   : > { %v1733_v62 = vmul.f32 %v5244_v54, %v3578_v50  ;;  %v1278_v34 = vadd.f32 %v1262_v0, %v1226_v52  ;;  %v1367_v18 = vmul.f32 %v4213_v25, %v3534_v16  ;;  %v4325_v43 = vadd.f32 %v3938_v47, %v2344_v35  ;;  %v1037_v52 = vld [vmem:[#allocation3 + $0x80] sm:$0xff]  ;;  %v4348_v54 = vld [vmem:[#allocation3 + $0xc8] sm:$0xff] }
 0x1f0   : > { %v1890_v41 = vmul.f32 %v5248_v56, %v3611_v7  ;;  %v1942_v48 = vmul.f32 %v4209_v32, %v3614_v57  ;;  %v4333_v1 = vmul.f32 %v4222_v10, %v3626_v17  ;;  %v2059_v31 = vadd.f32 %v2043_v15, %v2007_v27  ;;  %v1089_v9 = vld [vmem:[#allocation3 + $0x81] sm:$0xff]  ;;  %5252 = vst [vmem:[#allocation47_spill] sm:$0xff] %v4348_v54 }
 0x1f1   : > { %5247 = vst [vmem:[#allocation56_spill] sm:$0xff] %v4325_v43  ;;  %v1697_v21 = vadd.f32 %v1681_v5, %v1645_v28  ;;  %v1331_v13 = vadd.f32 %v1315_v55, %v1278_v34  ;;  %v1419_v49 = vmul.f32 %v4234_v19, %v5164_v44  ;;  %v3029_v0 = vpop.eup %3028  ;;  %v2795_v35 = vmul.f32 -1.442695, %v4325_v43  ;;  %v5249_v32 = vld [vmem:[#allocation36_spill] sm:$0xff]  ;;  %v5250_v10 = vld [vmem:[#allocation37_spill] sm:$0xff] }
 0x1f2   : > { %v2046_v56 = vmul.f32 %v4224_v12, %v3629_v26  ;;  %v1471_v25 = vmul.f32 %v5249_v32, %v3542_v20  ;;  %v1523_v29 = vmul.f32 %v5250_v10, %v3545_v22  ;;  %v1141_v27 = vld [vmem:[#allocation3 + $0x82] sm:$0xff]  ;;  %v3031_v15 = vpop.eup %3030  ;;  %v2112_v5 = vadd.f32 %v2096_v40, %v2059_v31 }
 0x1f3   : > { %v5251_v28 = vld [vmem:[#allocation24_spill] sm:$0xff]  ;;  %v1749_v55 = vadd.f32 %v1733_v62, %v1697_v21  ;;  %v1383_v19 = vadd.f32 %v1367_v18, %v1331_v13  ;;  %v2428_v38 = vadd.f32 1.0, %v3031_v15  ;;  %3032 = vpow2.f32 %v2795_v35  ;;  %v4354_v13 = vld [vmem:[#allocation3 + $0xc9] sm:$0xff] }
 0x1f4   : > { %v2477_v34 = vmul.f32 %v3029_v0, %v5251_v28  ;;  %v1193_v36 = vld [vmem:[#allocation3 + $0x83] sm:$0xff]  ;;  %v1057_v43 = vmul.f32 %v3497_v2, %v1037_v52  ;;  %v1109_v12 = vmul.f32 %v3500_v3, %v1089_v9  ;;  %v2164_v26 = vadd.f32 %v2148_v11, %v2112_v5  ;;  %5253 = vst [vmem:[#allocation59_spill] sm:$0xff] %v4354_v13  ;;  %v5261_v5 = vld [vmem:[#allocation22_spill] sm:$0xff] }
 0x1f5   : > { %v1801_v32 = vadd.f32 %v1785_v53, %v1749_v55  ;;  %v1435_v10 = vadd.f32 %v1419_v49, %v1383_v19  ;;  %v1161_v22 = vmul.f32 %v5231_v37, %v1141_v27  ;;  %v1245_v0 = vld [vmem:[#allocation3 + $0x84] sm:$0xff]  ;;  %3034 = vrcp.f32 %v2428_v38  ;;  %v5255_v53 = vld [vmem:[#allocation15_spill] sm:$0xff] }
 0x1f6   : > { %2514 = vrot.lane.b32.xlu1 %v2477_v34, %s3142_s11  ;;  %v2099_v40 = vmul.f32 %v5157_v59, %v4348_v54  ;;  %v1125_v62 = vadd.f32 %v1109_v12, %v1057_v43  ;;  %v1213_v18 = vmul.f32 %v3506_v4, %v1193_v36  ;;  %v2216_v31 = vadd.f32 %v2200_v14, %v2164_v26  ;;  %v4356_v52 = vld [vmem:[#allocation3 + $0xca] sm:$0xff] }
 0x1f7   : > { %v1854_v21 = vadd.f32 %v1838_v58, %v1801_v32  ;;  %5254 = vst [vmem:[#allocation48_spill] sm:$0xff] %v4356_v52  ;;  %v1487_v11 = vadd.f32 %v1471_v25, %v1435_v10  ;;  %v1576_v19 = vmul.f32 %v5255_v53, %v5171_v60  ;;  %v2151_v49 = vmul.f32 %v5236_v24, %v4354_v13  ;;  %v4365_v32 = vld [vmem:[#allocation3 + $0xcb] sm:$0xff] }
 0x1f8   : > { %v2203_v38 = vmul.f32 %v3644_v42, %v4356_v52  ;;  %v1177_v9 = vadd.f32 %v1161_v22, %v1125_v62  ;;  %v1265_v12 = vmul.f32 %v3517_v8, %v1245_v0  ;;  %v2268_v36 = vadd.f32 %v2252_v30, %v2216_v31  ;;  %5256 = vst [vmem:[#allocation64_spill] sm:$0xff] %v4365_v32  ;;  %v4367_v14 = vld [vmem:[#allocation3 + $0xcc] sm:$0xff] }
 0x1f9   : > { %v1906_v26 = vadd.f32 %v1890_v41, %v1854_v21  ;;  %5257 = vst [vmem:[#allocation49_spill] sm:$0xff] %v4367_v14  ;;  %v1539_v58 = vadd.f32 %v1523_v29, %v1487_v11  ;;  %v5258_v25 = vld [vmem:[#allocation21_spill] sm:$0xff]  ;;  %v2255_v43 = vmul.f32 %v5137_v63, %v4365_v32  ;;  %v4375_v35 = vmul.f32 %v5140_v39, %v4367_v14  ;;  %v5259_v41 = vld [vmem:[#allocation55_spill] sm:$0xff]  ;;  %v5260_v29 = vld [vmem:[#allocation40_spill] sm:$0xff] }
 0x1fa   : > { %v1628_v10 = vmul.f32 %v5258_v25, %v5176_v45  ;;  %v1229_v22 = vadd.f32 %v1213_v18, %v1177_v9  ;;  %v1318_v30 = vmul.f32 %v4060_v23, %v3522_v61  ;;  %v2320_v27 = vadd.f32 %v5259_v41, %v2268_v36  ;;  %v5262_v0 = vld [vmem:[#allocation34_spill] sm:$0xff]  ;;  %v5263_v21 = vld [vmem:[#allocation60_spill] sm:$0xff] }
 0x1fb   : > { %v1958_v15 = vadd.f32 %v1942_v48, %v1906_v26  ;;  %v1592_v28 = vadd.f32 %v1576_v19, %v1539_v58  ;;  %v1680_v34 = vmul.f32 %v5260_v29, %v3563_v33  ;;  %v1732_v55 = vmul.f32 %v5261_v5, %v3578_v50  ;;  %v5264_v48 = vld [vmem:[#allocation43_spill] sm:$0xff]  ;;  %v5265_v36 = vld [vmem:[#allocation44_spill] sm:$0xff] }
 0x1fc   : > { %v1784_v62 = vmul.f32 %v5262_v0, %v3581_v51  ;;  %v1281_v31 = vadd.f32 %v1265_v12, %v1229_v22  ;;  %v1370_v18 = vmul.f32 %v5263_v21, %v3534_v16  ;;  %v2343_v11 = vmul.f32 %v3921_v46, %v2320_v27  ;;  %v5266_v58 = vld [vmem:[#allocation51_spill] sm:$0xff]  ;;  %v5267_v12 = vld [vmem:[#allocation41_spill] sm:$0xff] }
 0x1fd   : > { %v2010_v23 = vadd.f32 %v4333_v1, %v1958_v15  ;;  %v1644_v9 = vadd.f32 %v1628_v10, %v1592_v28  ;;  %v1837_v19 = vmul.f32 %v5264_v48, %v3608_v6  ;;  %v1889_v26 = vmul.f32 %v5265_v36, %v3611_v7  ;;  %v5269_v1 = vld [vmem:[#allocation52_spill] sm:$0xff]  ;;  %v5270_v28 = vld [vmem:[#allocation61_spill] sm:$0xff]  ;;  %v5271_v36 = vld [vmem:[#allocation18_spill] sm:$0xff] }
 0x1fe   : > { %v1941_v41 = vmul.f32 %v5266_v58, %v3614_v57  ;;  %v1334_v14 = vadd.f32 %v1318_v30, %v1281_v31  ;;  %v1422_v22 = vmul.f32 %v5267_v12, %v5164_v44  ;;  %v4399_v21 = vadd.f32 %v3938_v47, %v2343_v11  ;;  %v5272_v5 = vld [vmem:[#allocation39_spill] sm:$0xff]  ;;  %v5273_v30 = vld [vmem:[#allocation16_spill] sm:$0xff] }
 0x1ff   : > { %v2062_v27 = vadd.f32 %v2046_v56, %v2010_v23  ;;  %v1696_v0 = vadd.f32 %v1680_v34, %v1644_v9  ;;  %v1993_v10 = vmul.f32 %v5269_v1, %v3626_v17  ;;  %v1474_v48 = vmul.f32 %v5270_v28, %v3542_v20  ;;  %v5274_v56 = vld [vmem:[#allocation57_spill] sm:$0xff]  ;;  %v5276_v28 = vld [vmem:[#allocation20_spill] sm:$0xff] }
 0x200   : > { %5268 = vst [vmem:[#allocation65_spill] sm:$0xff] %v4399_v21  ;;  %v1386_v15 = vadd.f32 %v1370_v18, %v1334_v14  ;;  %v1526_v32 = vmul.f32 %v5272_v5, %v5271_v36  ;;  %v1579_v31 = vmul.f32 %v5273_v30, %v5171_v60  ;;  %v3033_v58 = vpop.eup %3032  ;;  %v2794_v12 = vmul.f32 -1.442695, %v4399_v21  ;;  %v5275_v14 = vld [vmem:[#allocation29_spill] sm:$0xff]  ;;  %v5277_v60 = vld [vmem:[#allocation36_spill] sm:$0xff] }
 0x201   : > { %v2115_v11 = vadd.f32 %v2099_v40, %v2062_v27  ;;  %v1748_v52 = vadd.f32 %v1732_v55, %v1696_v0  ;;  %v1056_v34 = vmul.f32 %v5274_v56, %v3497_v2  ;;  %v2431_v23 = vadd.f32 1.0, %v3033_v58  ;;  %v5278_v40 = vld [vmem:[#allocation42_spill] sm:$0xff]  ;;  %v4419_v0 = vld [vmem:[#allocation3 + $0xc0] sm:$0xff]  ;;  %v5280_v56 = vld [vmem:[#allocation33_spill] sm:$0xff] }
 0x202   : > { %v1438_v9 = vadd.f32 %v1422_v22, %v1386_v15  ;;  %v1108_v18 = vmul.f32 %v5275_v14, %v3500_v3  ;;  %v1160_v1 = vmul.f32 %v5276_v28, %v5231_v37  ;;  %v3035_v5 = vpop.eup %3034  ;;  %3036 = vpow2.f32 %v2794_v12  ;;  %5279 = vst [vmem:[#allocation45_spill] sm:$0xff] %v4419_v0  ;;  %v5281_v14 = vld [vmem:[#allocation58_spill] sm:$0xff]  ;;  %v5288_v28 = vld [vmem:[#allocation28_spill] sm:$0xff] }
 0x203   : > { %v2167_v36 = vadd.f32 %v2151_v49, %v2115_v11  ;;  %v1800_v30 = vadd.f32 %v1784_v62, %v1748_v52  ;;  %v1212_v21 = vmul.f32 %v5277_v60, %v3506_v4  ;;  %v2476_v55 = vmul.f32 %v3035_v5, %v5278_v40  ;;  %v4426_v52 = vld [vmem:[#allocation3 + $0xc1] sm:$0xff]  ;;  %v5284_v62 = vld [vmem:[#allocation27_spill] sm:$0xff] }
 0x204   : > { %3038 = vrcp.f32 %v2431_v23  ;;  %v1490_v58 = vadd.f32 %v1474_v48, %v1438_v9  ;;  %v1124_v22 = vadd.f32 %v1108_v18, %v1056_v34  ;;  %v2045_v3 = vmul.f32 %v5281_v14, %v5280_v56  ;;  %5282 = vst [vmem:[#allocation53_spill] sm:$0xff] %v4426_v52  ;;  %v4428_v60 = vld [vmem:[#allocation3 + $0xc2] sm:$0xff] }
 0x205   : > { %v2219_v27 = vadd.f32 %v2203_v38, %v2167_v36  ;;  %v1853_v15 = vadd.f32 %v1837_v19, %v1800_v30  ;;  %v2098_v12 = vmul.f32 %v5157_v59, %v4419_v0  ;;  %2512 = vrot.lane.b32.xlu0 %v2476_v55, %s3142_s11  ;;  %5283 = vst [vmem:[#allocation54_spill] sm:$0xff] %v4428_v60  ;;  %v5285_v38 = vld [vmem:[#allocation37_spill] sm:$0xff] }
 0x206   : > { %v1542_v49 = vadd.f32 %v1526_v32, %v1490_v58  ;;  %v1631_v11 = vmul.f32 %v5284_v62, %v5176_v45  ;;  %v1176_v48 = vadd.f32 %v1160_v1, %v1124_v22  ;;  %v1264_v19 = vmul.f32 %v5285_v38, %v3517_v8  ;;  %v4438_v9 = vld [vmem:[#allocation3 + $0xc3] sm:$0xff] }
 0x207   : > { %v2271_v36 = vadd.f32 %v2255_v43, %v2219_v27  ;;  %v1905_v30 = vadd.f32 %v1889_v26, %v1853_v15  ;;  %v2150_v34 = vmul.f32 %v5236_v24, %v4426_v52  ;;  %v2202_v23 = vmul.f32 %v3644_v42, %v4428_v60  ;;  %5286 = vst [vmem:[#allocation23_spill] sm:$0xff] %v4438_v9  ;;  %v4440_v18 = vld [vmem:[#allocation3 + $0xc4] sm:$0xff] }
 0x208   : > { %5287 = vst [vmem:[#allocation62_spill] sm:$0xff] %v4440_v18  ;;  %v1595_v32 = vadd.f32 %v1579_v31, %v1542_v49  ;;  %v1683_v5 = vmul.f32 %v5288_v28, %v3563_v33  ;;  %v1228_v1 = vadd.f32 %v1212_v21, %v1176_v48  ;;  %v1317_v40 = vmul.f32 %v5255_v53, %v3522_v61  ;;  %v5289_v31 = vld [vmem:[#allocation35_spill] sm:$0xff] }
 0x209   : > { %v2323_v43 = vadd.f32 %v4375_v35, %v2271_v36  ;;  %v1957_v26 = vadd.f32 %v1941_v41, %v1905_v30  ;;  %v2254_v55 = vmul.f32 %v5137_v63, %v4438_v9  ;;  %v4451_v58 = vmul.f32 %v5140_v39, %v4440_v18  ;;  %v5290_v35 = vld [vmem:[#allocation63_spill] sm:$0xff] }
 0x20a   : > { %v1647_v22 = vadd.f32 %v1631_v11, %v1595_v32  ;;  %v1735_v27 = vmul.f32 %v5289_v31, %v3578_v50  ;;  %v1280_v15 = vadd.f32 %v1264_v19, %v1228_v1  ;;  %v1369_v21 = vmul.f32 %v5258_v25, %v3534_v16  ;;  %v1039_v30 = vld [vmem:[#allocation3 + $0x98] sm:$0xff]  ;;  %v5293_v1 = vld [vmem:[#allocation64_spill] sm:$0xff] }
 0x20b   : > { %v2346_v53 = vmul.f32 %v3921_v46, %v2323_v43  ;;  %v2009_v49 = vadd.f32 %v1993_v10, %v1957_v26  ;;  %v1787_v41 = vmul.f32 %v5290_v35, %v3581_v51  ;;  %v1840_v48 = vmul.f32 %v4348_v54, %v3608_v6  ;;  %v5292_v10 = vld [vmem:[#allocation48_spill] sm:$0xff] }
 0x20c   : > { %v1699_v38 = vadd.f32 %v1683_v5, %v1647_v22  ;;  %v1892_v11 = vmul.f32 %v4354_v13, %v3611_v7  ;;  %v1333_v36 = vadd.f32 %v1317_v40, %v1280_v15  ;;  %v1421_v19 = vmul.f32 %v5260_v29, %v5164_v44  ;;  %v1091_v26 = vld [vmem:[#allocation3 + $0x99] sm:$0xff]  ;;  %v5294_v40 = vld [vmem:[#allocation22_spill] sm:$0xff] }
 0x20d   : > { %v4467_v25 = vadd.f32 %v3938_v47, %v2346_v53  ;;  %v2061_v46 = vadd.f32 %v2045_v3, %v2009_v49  ;;  %v1944_v32 = vmul.f32 %v5292_v10, %v3614_v57  ;;  %v1996_v43 = vmul.f32 %v5293_v1, %v3626_v17  ;;  %v1143_v5 = vld [vmem:[#allocation3 + $0x9a] sm:$0xff]  ;;  %v5295_v13 = vld [vmem:[#allocation18_spill] sm:$0xff] }
 0x20e   : > { %v1751_v22 = vadd.f32 %v1735_v27, %v1699_v38  ;;  %v1385_v18 = vadd.f32 %v1369_v21, %v1333_v36  ;;  %v1473_v15 = vmul.f32 %v5294_v40, %v3542_v20  ;;  %v5296_v29 = vld [vmem:[#allocation34_spill] sm:$0xff]  ;;  %v1195_v35 = vld [vmem:[#allocation3 + $0x9b] sm:$0xff]  ;;  %v1059_v31 = vmul.f32 %v3497_v2, %v1039_v30  ;;  %v5299_v27 = vld [vmem:[#allocation13_spill] sm:$0xff] }
 0x20f   : > { %5291 = vst [vmem:[#allocation25_spill] sm:$0xff] %v4467_v25  ;;  %v1525_v54 = vmul.f32 %v5296_v29, %v5295_v13  ;;  %v2797_v47 = vmul.f32 -1.442695, %v4467_v25  ;;  %v2114_v3 = vadd.f32 %v2098_v12, %v2061_v46  ;;  %v5297_v53 = vld [vmem:[#allocation19_spill] sm:$0xff]  ;;  %v3037_v1 = vpop.eup %3036  ;;  %v1111_v21 = vmul.f32 %v5299_v27, %v1091_v26  ;;  %v5300_v12 = vld [vmem:[#allocation56_spill] sm:$0xff] }
 0x210   : > { %v5298_v49 = vld [vmem:[#allocation43_spill] sm:$0xff]  ;;  %v1803_v9 = vadd.f32 %v1787_v41, %v1751_v22  ;;  %v1437_v17 = vadd.f32 %v1421_v19, %v1385_v18  ;;  %v1163_v38 = vmul.f32 %v5231_v37, %v1143_v5  ;;  %v2430_v40 = vadd.f32 1.0, %v3037_v1  ;;  %v5301_v18 = vld [vmem:[#allocation49_spill] sm:$0xff]  ;;  %v5302_v19 = vld [vmem:[#allocation44_spill] sm:$0xff] }
 0x211   : > { %v1578_v10 = vmul.f32 %v5298_v49, %v5297_v53  ;;  %v3039_v36 = vpop.eup %3038  ;;  %3040 = vpow2.f32 %v2797_v47  ;;  %v2166_v29 = vadd.f32 %v2150_v34, %v2114_v3  ;;  %v1215_v13 = vmul.f32 %v3506_v4, %v1195_v35  ;;  %v1247_v25 = vld [vmem:[#allocation3 + $0x9c] sm:$0xff] }
 0x212   : > { %v2479_v46 = vmul.f32 %v3039_v36, %v5300_v12  ;;  %v1856_v20 = vadd.f32 %v1840_v48, %v1803_v9  ;;  %v1489_v49 = vadd.f32 %v1473_v15, %v1437_v17  ;;  %v1127_v53 = vadd.f32 %v1111_v21, %v1059_v31  ;;  %v4490_v34 = vld [vmem:[#allocation3 + $0xe0] sm:$0xff]  ;;  %v5305_v48 = vld [vmem:[#allocation51_spill] sm:$0xff] }
 0x213   : > { %3042 = vrcp.f32 %v2430_v40  ;;  %v2218_v30 = vadd.f32 %v2202_v23, %v2166_v29  ;;  %v2048_v41 = vmul.f32 %v5301_v18, %v5280_v56  ;;  %v1630_v26 = vmul.f32 %v5302_v19, %v5176_v45  ;;  %5303 = vst [vmem:[#allocation14_spill] sm:$0xff] %v4490_v34  ;;  %v4492_v35 = vld [vmem:[#allocation3 + $0xe1] sm:$0xff] }
 0x214   : > { %2518 = vrot.lane.b32.xlu1 %v2479_v46, %s3142_s11  ;;  %v1908_v1 = vadd.f32 %v1892_v11, %v1856_v20  ;;  %5304 = vst [vmem:[#allocation66_spill] sm:$0xff] %v4492_v35  ;;  %v1541_v5 = vadd.f32 %v1525_v54, %v1489_v49  ;;  %v1179_v22 = vadd.f32 %v1163_v38, %v1127_v53  ;;  %v4501_v20 = vld [vmem:[#allocation3 + $0xe2] sm:$0xff] }
 0x215   : > { %v1267_v17 = vmul.f32 %v3517_v8, %v1247_v25  ;;  %v2270_v9 = vadd.f32 %v2254_v55, %v2218_v30  ;;  %v2101_v23 = vmul.f32 %v5157_v59, %v4490_v34  ;;  %v2153_v31 = vmul.f32 %v5236_v24, %v4492_v35  ;;  %5306 = vst [vmem:[#allocation50_spill] sm:$0xff] %v4501_v20  ;;  %v4503_v11 = vld [vmem:[#allocation3 + $0xe3] sm:$0xff]  ;;  %v5319_v35 = vld [vmem:[#allocation47_spill] sm:$0xff] }
 0x216   : > { %v1682_v15 = vmul.f32 %v5305_v48, %v3563_v33  ;;  %v1960_v47 = vadd.f32 %v1944_v32, %v1908_v1  ;;  %5307 = vst [vmem:[#allocation38_spill] sm:$0xff] %v4503_v11  ;;  %v1594_v3 = vadd.f32 %v1578_v10, %v1541_v5  ;;  %v1231_v54 = vadd.f32 %v1215_v13, %v1179_v22  ;;  %v5308_v53 = vld [vmem:[#allocation16_spill] sm:$0xff]  ;;  %v1038_v22 = vld [vmem:[#allocation3 + $0x90] sm:$0xff] }
 0x217   : > { %v1320_v25 = vmul.f32 %v5308_v53, %v3522_v61  ;;  %v2322_v55 = vadd.f32 %v4451_v58, %v2270_v9  ;;  %v2205_v49 = vmul.f32 %v3644_v42, %v4501_v20  ;;  %v2257_v21 = vmul.f32 %v5137_v63, %v4503_v11  ;;  %v5309_v38 = vld [vmem:[#allocation52_spill] sm:$0xff]  ;;  %v1090_v53 = vld [vmem:[#allocation3 + $0x91] sm:$0xff] }
 0x218   : > { %v1734_v32 = vmul.f32 %v5309_v38, %v3578_v50  ;;  %v2012_v36 = vadd.f32 %v1996_v43, %v1960_v47  ;;  %v4514_v40 = vld [vmem:[#allocation3 + $0xe4] sm:$0xff]  ;;  %v1646_v29 = vadd.f32 %v1630_v26, %v1594_v3  ;;  %v1283_v10 = vadd.f32 %v1267_v17, %v1231_v54  ;;  %v4521_v58 = vld [vmem:[%s4859_s5] ss:$0 sm:$0xff]  ;;  %v5313_v3 = vld [vmem:[#allocation23_spill] sm:$0xff] }
 0x219   : > { %5310 = vst [vmem:[#allocation26_spill] sm:$0xff] %v4514_v40  ;;  %v1372_v13 = vmul.f32 %v5284_v62, %v3534_v16  ;;  %v2345_v12 = vmul.f32 %v4521_v58, %v2322_v55  ;;  %v2309_v46 = vmul.f32 %v5140_v39, %v4514_v40  ;;  %v1786_v43 = vmul.f32 %v5281_v14, %v3581_v51  ;;  %v4535_v17 = vld [vmem:[%s4860_s6] ss:$0 sm:$0xff]  ;;  %v1142_v40 = vld [vmem:[#allocation3 + $0x92] sm:$0xff] }
 0x21a   : > { %v1839_v30 = vmul.f32 %v4419_v0, %v3608_v6  ;;  %v2064_v26 = vadd.f32 %v2048_v41, %v2012_v36  ;;  %v1698_v1 = vadd.f32 %v1682_v15, %v1646_v29  ;;  %v1336_v5 = vadd.f32 %v1320_v25, %v1283_v10  ;;  %v5312_v15 = vld [vmem:[#allocation32_spill] sm:$0xff]  ;;  %v5314_v36 = vld [vmem:[#allocation17_spill] sm:$0xff]  ;;  %v5315_v29 = vld [vmem:[#allocation35_spill] sm:$0xff] }
 0x21b   : > { %v1424_v62 = vmul.f32 %v5288_v28, %v5164_v44  ;;  %v4538_v9 = vadd.f32 %v4535_v17, %v2345_v12  ;;  %v1891_v47 = vmul.f32 %v4426_v52, %v3611_v7  ;;  %v1943_v41 = vmul.f32 %v4428_v60, %v3614_v57  ;;  %v1194_v0 = vld [vmem:[#allocation3 + $0x93] sm:$0xff] }
 0x21c   : > { %v1995_v54 = vmul.f32 %v5313_v3, %v5312_v15  ;;  %v2117_v28 = vadd.f32 %v2101_v23, %v2064_v26  ;;  %v1750_v25 = vadd.f32 %v1734_v32, %v1698_v1  ;;  %v1388_v55 = vadd.f32 %v1372_v13, %v1336_v5  ;;  %v5316_v11 = vld [vmem:[#allocation18_spill] sm:$0xff]  ;;  %v5317_v14 = vld [vmem:[#allocation63_spill] sm:$0xff] }
 0x21d   : > { %5311 = vst [vmem:[#allocation24_spill] sm:$0xff] %v4538_v9  ;;  %v1476_v10 = vmul.f32 %v5315_v29, %v5314_v36  ;;  %v2796_v12 = vmul.f32 -1.442695, %v4538_v9  ;;  %v1528_v52 = vmul.f32 %v5317_v14, %v5316_v11  ;;  %v5318_v20 = vld [vmem:[#allocation19_spill] sm:$0xff]  ;;  %v1058_v57 = vmul.f32 %v3497_v2, %v1038_v22 }
 0x21e   : > { %v1581_v60 = vmul.f32 %v5319_v35, %v5318_v20  ;;  %v3041_v3 = vpop.eup %3040  ;;  %v2169_v15 = vadd.f32 %v2153_v31, %v2117_v28  ;;  %v1802_v23 = vadd.f32 %v1786_v43, %v1750_v25  ;;  %v1440_v32 = vadd.f32 %v1424_v62, %v1388_v55  ;;  %v1246_v26 = vld [vmem:[#allocation3 + $0x94] sm:$0xff]  ;;  %v5320_v20 = vld [vmem:[#allocation65_spill] sm:$0xff] }
 0x21f   : > { %v1110_v13 = vmul.f32 %v5299_v27, %v1090_v53  ;;  %v2433_v1 = vadd.f32 1.0, %v3041_v3  ;;  %3044 = vpow2.f32 %v2796_v12  ;;  %v1162_v5 = vmul.f32 %v5231_v37, %v1142_v40  ;;  %v5321_v31 = vld [vmem:[#allocation59_spill] sm:$0xff]  ;;  %v5323_v40 = vld [vmem:[#allocation48_spill] sm:$0xff] }
 0x220   : > { %v1214_v29 = vmul.f32 %v3506_v4, %v1194_v0  ;;  %v3043_v9 = vpop.eup %3042  ;;  %v2221_v14 = vadd.f32 %v2205_v49, %v2169_v15  ;;  %v1855_v11 = vadd.f32 %v1839_v30, %v1802_v23  ;;  %v1492_v7 = vadd.f32 %v1476_v10, %v1440_v32  ;;  %v5322_v0 = vld [vmem:[#allocation62_spill] sm:$0xff]  ;;  %v4568_v55 = vld [vmem:[#allocation3 + $0xd8] sm:$0xff] }
 0x221   : > { %v1126_v35 = vadd.f32 %v1110_v13, %v1058_v57  ;;  %v2478_v22 = vmul.f32 %v3043_v9, %v5320_v20  ;;  %3046 = vrcp.f32 %v2433_v1  ;;  %v1633_v43 = vmul.f32 %v5321_v31, %v5176_v45  ;;  %v5324_v20 = vld [vmem:[#allocation43_spill] sm:$0xff]  ;;  %5325 = vst [vmem:[#allocation15_spill] sm:$0xff] %v4568_v55 }
 0x222   : > { %v1266_v62 = vmul.f32 %v3517_v8, %v1246_v26  ;;  %v2273_v53 = vadd.f32 %v2257_v21, %v2221_v14  ;;  %v1907_v3 = vadd.f32 %v1891_v47, %v1855_v11  ;;  %v1544_v28 = vadd.f32 %v1528_v52, %v1492_v7  ;;  %v5326_v52 = vld [vmem:[#allocation64_spill] sm:$0xff] }
 0x223   : > { %v1178_v25 = vadd.f32 %v1162_v5, %v1126_v35  ;;  %2516 = vrot.lane.b32.xlu0 %v2478_v22, %s3142_s11  ;;  %v2047_v49 = vmul.f32 %v5322_v0, %v5280_v56  ;;  %v1685_v57 = vmul.f32 %v5323_v40, %v3563_v33  ;;  %v1319_v30 = vmul.f32 %v5324_v20, %v3522_v61  ;;  %v4577_v23 = vld [vmem:[#allocation3 + $0xd9] sm:$0xff] }
 0x224   : > { %v2325_v9 = vadd.f32 %v2309_v46, %v2273_v53  ;;  %v1959_v15 = vadd.f32 %v1943_v41, %v1907_v3  ;;  %v1597_v10 = vadd.f32 %v1581_v60, %v1544_v28  ;;  %v2100_v7 = vmul.f32 %v5157_v59, %v4568_v55  ;;  %5327 = vst [vmem:[#allocation21_spill] sm:$0xff] %v4577_v23  ;;  %v4579_v46 = vld [vmem:[#allocation3 + $0xda] sm:$0xff] }
 0x225   : > { %v1230_v21 = vadd.f32 %v1214_v29, %v1178_v25  ;;  %v1737_v35 = vmul.f32 %v5326_v52, %v3578_v50  ;;  %v1371_v11 = vmul.f32 %v5302_v19, %v3534_v16  ;;  %5328 = vst [vmem:[#allocation55_spill] sm:$0xff] %v4579_v46  ;;  %v2152_v60 = vmul.f32 %v5236_v24, %v4577_v23  ;;  %v4592_v5 = vld [vmem:[#allocation3 + $0xdb] sm:$0xff] }
 0x226   : > { %v2348_v47 = vmul.f32 %v4521_v58, %v2325_v9  ;;  %v2011_v12 = vadd.f32 %v1995_v54, %v1959_v15  ;;  %v1649_v41 = vadd.f32 %v1633_v43, %v1597_v10  ;;  %v2204_v13 = vmul.f32 %v3644_v42, %v4579_v46  ;;  %5330 = vst [vmem:[#allocation60_spill] sm:$0xff] %v4592_v5  ;;  %v4594_v29 = vld [vmem:[#allocation3 + $0xdc] sm:$0xff]  ;;  %v1041_v43 = vld [vmem:[#allocation3 + $0xb0] sm:$0xff] }
 0x227   : > { %v1282_v32 = vadd.f32 %v1266_v62, %v1230_v21  ;;  %v1789_v26 = vmul.f32 %v5301_v18, %v3581_v51  ;;  %v1423_v19 = vmul.f32 %v5305_v48, %v5164_v44  ;;  %5331 = vst [vmem:[#allocation41_spill] sm:$0xff] %v4594_v29  ;;  %v2256_v62 = vmul.f32 %v5137_v63, %v4592_v5  ;;  %v5332_v9 = vld [vmem:[#allocation30_spill] sm:$0xff]  ;;  %v5334_v21 = vld [vmem:[#allocation31_spill] sm:$0xff] }
 0x228   : > { %v4590_v54 = vadd.f32 %v4535_v17, %v2348_v47  ;;  %v2063_v1 = vadd.f32 %v2047_v49, %v2011_v12  ;;  %v1701_v14 = vadd.f32 %v1685_v57, %v1649_v41  ;;  %v2308_v53 = vmul.f32 %v5140_v39, %v4594_v29  ;;  %v1093_v57 = vld [vmem:[#allocation3 + $0xb1] sm:$0xff] }
 0x229   : > { %v1335_v22 = vadd.f32 %v1319_v30, %v1282_v32  ;;  %v1842_v48 = vmul.f32 %v4490_v34, %v3608_v6  ;;  %v1475_v3 = vmul.f32 %v5309_v38, %v5314_v36  ;;  %v1145_v30 = vld [vmem:[#allocation3 + $0xb2] sm:$0xff]  ;;  %v1061_v5 = vmul.f32 %v3497_v2, %v1041_v43  ;;  %v5341_v43 = vld [vmem:[#allocation45_spill] sm:$0xff] }
 0x22a   : > { %5329 = vst [vmem:[#allocation40_spill] sm:$0xff] %v4590_v54  ;;  %v2799_v28 = vmul.f32 -1.442695, %v4590_v54  ;;  %v2116_v25 = vadd.f32 %v2100_v7, %v2063_v1  ;;  %v1753_v49 = vadd.f32 %v1737_v35, %v1701_v14  ;;  %v5333_v15 = vld [vmem:[#allocation66_spill] sm:$0xff]  ;;  %v5338_v1 = vld [vmem:[#allocation32_spill] sm:$0xff]  ;;  %v1165_v18 = vmul.f32 %v5231_v37, %v1145_v30 }
 0x22b   : > { %v1387_v20 = vadd.f32 %v1371_v11, %v1335_v22  ;;  %v1894_v10 = vmul.f32 %v5333_v15, %v5332_v9  ;;  %v5335_v47 = vld [vmem:[#allocation50_spill] sm:$0xff]  ;;  %v1113_v15 = vmul.f32 %v5299_v27, %v1093_v57  ;;  %v5343_v57 = vld [vmem:[#allocation53_spill] sm:$0xff] }
 0x22c   : > { %v1946_v12 = vmul.f32 %v5335_v47, %v5334_v21  ;;  %v5336_v41 = vld [vmem:[#allocation18_spill] sm:$0xff]  ;;  %v3045_v34 = vpop.eup %3044  ;;  %3048 = vpow2.f32 %v2799_v28  ;;  %v2168_v38 = vadd.f32 %v2152_v60, %v2116_v25  ;;  %v1805_v54 = vadd.f32 %v1789_v26, %v1753_v49  ;;  %v5342_v60 = vld [vmem:[#allocation25_spill] sm:$0xff] }
 0x22d   : > { %v5337_v32 = vld [vmem:[#allocation58_spill] sm:$0xff]  ;;  %v1439_v7 = vadd.f32 %v1423_v19, %v1387_v20  ;;  %v2432_v11 = vadd.f32 1.0, %v3045_v34  ;;  %v1129_v19 = vadd.f32 %v1113_v15, %v1061_v5  ;;  %v1632_v30 = vmul.f32 %v5343_v57, %v5176_v45  ;;  %v4628_v5 = vld [vmem:[#allocation3 + $0xf9] sm:$0xff] }
 0x22e   : > { %v1527_v29 = vmul.f32 %v5337_v32, %v5336_v41  ;;  %v1197_v35 = vld [vmem:[#allocation3 + $0xb3] sm:$0xff]  ;;  %v3047_v47 = vpop.eup %3046  ;;  %v2220_v52 = vadd.f32 %v2204_v13, %v2168_v38  ;;  %v1858_v36 = vadd.f32 %v1842_v48, %v1805_v54  ;;  %5345 = vst [vmem:[#allocation61_spill] sm:$0xff] %v4628_v5  ;;  %v2155_v15 = vmul.f32 %v5236_v24, %v4628_v5 }
 0x22f   : > { %v5339_v14 = vld [vmem:[#allocation38_spill] sm:$0xff]  ;;  %v1491_v32 = vadd.f32 %v1475_v3, %v1439_v7  ;;  %v5340_v41 = vld [vmem:[#allocation19_spill] sm:$0xff]  ;;  %v2481_v26 = vmul.f32 %v3047_v47, %v5342_v60  ;;  %3050 = vrcp.f32 %v2432_v11  ;;  %v1217_v34 = vmul.f32 %v3506_v4, %v1197_v35 }
 0x230   : > { %v1998_v22 = vmul.f32 %v5339_v14, %v5338_v1  ;;  %v1580_v2 = vmul.f32 %v5341_v43, %v5340_v41  ;;  %v1249_v28 = vld [vmem:[#allocation3 + $0xb4] sm:$0xff]  ;;  %v2272_v25 = vadd.f32 %v2256_v62, %v2220_v52  ;;  %v1910_v49 = vadd.f32 %v1894_v10, %v1858_v36 }
 0x231   : > { %v1543_v20 = vadd.f32 %v1527_v29, %v1491_v32  ;;  %2522 = vrot.lane.b32.xlu1 %v2481_v26, %s3142_s11  ;;  %v5344_v13 = vld [vmem:[#allocation26_spill] sm:$0xff]  ;;  %v1181_v48 = vadd.f32 %v1165_v18, %v1129_v19  ;;  %v1269_v3 = vmul.f32 %v3517_v8, %v1249_v28  ;;  %v4626_v7 = vld [vmem:[#allocation3 + $0xf8] sm:$0xff] }
 0x232   : > { %v2050_v54 = vmul.f32 %v5344_v13, %v5280_v56  ;;  %v2324_v38 = vadd.f32 %v2308_v53, %v2272_v25  ;;  %v1962_v47 = vadd.f32 %v1946_v12, %v1910_v49  ;;  %v5346_v36 = vld [vmem:[#allocation54_spill] sm:$0xff]  ;;  %v2103_v62 = vmul.f32 %v5157_v59, %v4626_v7  ;;  %v5347_v18 = vld [vmem:[#allocation47_spill] sm:$0xff] }
 0x233   : > { %v1596_v52 = vadd.f32 %v1580_v2, %v1543_v20  ;;  %v1684_v29 = vmul.f32 %v5346_v36, %v3563_v33  ;;  %v1233_v10 = vadd.f32 %v1217_v34, %v1181_v48  ;;  %v1322_v35 = vmul.f32 %v5347_v18, %v3522_v61  ;;  %v4639_v11 = vld [vmem:[#allocation3 + $0xfa] sm:$0xff] }
 0x234   : > { %v2347_v53 = vmul.f32 %v4521_v58, %v2324_v38  ;;  %v2014_v12 = vadd.f32 %v1998_v22, %v1962_v47  ;;  %5348 = vst [vmem:[#allocation39_spill] sm:$0xff] %v4639_v11  ;;  %v4641_v32 = vld [vmem:[#allocation3 + $0xfb] sm:$0xff]  ;;  %v2207_v26 = vmul.f32 %v3644_v42, %v4639_v11  ;;  %v1374_v25 = vmul.f32 %v5321_v31, %v3534_v16  ;;  %v1040_v38 = vld [vmem:[#allocation3 + $0xa8] sm:$0xff] }
 0x235   : > { %5349 = vst [vmem:[#allocation57_spill] sm:$0xff] %v4641_v32  ;;  %v1648_v2 = vadd.f32 %v1632_v30, %v1596_v52  ;;  %v5350_v28 = vld [vmem:[#allocation23_spill] sm:$0xff]  ;;  %v2259_v19 = vmul.f32 %v5137_v63, %v4641_v32  ;;  %v1285_v34 = vadd.f32 %v1269_v3, %v1233_v10  ;;  %v1788_v48 = vmul.f32 %v5322_v0, %v3581_v51  ;;  %v5353_v11 = vld [vmem:[#allocation17_spill] sm:$0xff] }
 0x236   : > { %v1736_v60 = vmul.f32 %v5350_v28, %v3578_v50  ;;  %v4652_v22 = vadd.f32 %v4535_v17, %v2347_v53  ;;  %v2066_v49 = vadd.f32 %v2050_v54, %v2014_v12  ;;  %v4654_v20 = vld [vmem:[#allocation3 + $0xfc] sm:$0xff]  ;;  %v1841_v3 = vmul.f32 %v4568_v55, %v3608_v6  ;;  %v1092_v53 = vld [vmem:[#allocation3 + $0xa9] sm:$0xff] }
 0x237   : > { %5352 = vst [vmem:[#allocation20_spill] sm:$0xff] %v4654_v20  ;;  %v1700_v30 = vadd.f32 %v1684_v29, %v1648_v2  ;;  %v2311_v47 = vmul.f32 %v5140_v39, %v4654_v20  ;;  %v1338_v52 = vadd.f32 %v1322_v35, %v1285_v34  ;;  %v1426_v31 = vmul.f32 %v5323_v40, %v5164_v44  ;;  %v1144_v12 = vld [vmem:[#allocation3 + $0xaa] sm:$0xff]  ;;  %v5354_v55 = vld [vmem:[#allocation64_spill] sm:$0xff] }
 0x238   : > { %5351 = vst [vmem:[#allocation29_spill] sm:$0xff] %v4652_v22  ;;  %v2798_v10 = vmul.f32 -1.442695, %v4652_v22  ;;  %v2119_v54 = vadd.f32 %v2103_v62, %v2066_v49  ;;  %v1893_v29 = vmul.f32 %v4577_v23, %v5332_v9  ;;  %v1945_v20 = vmul.f32 %v4579_v46, %v5334_v21  ;;  %v5355_v34 = vld [vmem:[#allocation12_spill] sm:$0xff]  ;;  %v5357_v23 = vld [vmem:[#allocation49_spill] sm:$0xff] }
 0x239   : > { %v1752_v18 = vadd.f32 %v1736_v60, %v1700_v30  ;;  %v3049_v2 = vpop.eup %3048  ;;  %v1390_v32 = vadd.f32 %v1374_v25, %v1338_v52  ;;  %v1478_v35 = vmul.f32 %v5354_v55, %v5353_v11  ;;  %v1060_v39 = vmul.f32 %v5355_v34, %v1040_v38  ;;  %v1196_v60 = vld [vmem:[#allocation3 + $0xab] sm:$0xff] }
 0x23a   : > { %v2435_v40 = vadd.f32 1.0, %v3049_v2  ;;  %3052 = vpow2.f32 %v2798_v10  ;;  %v2171_v22 = vadd.f32 %v2155_v15, %v2119_v54  ;;  %v5356_v30 = vld [vmem:[#allocation18_spill] sm:$0xff]  ;;  %v1112_v28 = vmul.f32 %v5299_v27, %v1092_v53  ;;  %v5359_v10 = vld [vmem:[#allocation24_spill] sm:$0xff] }
 0x23b   : > { %v1804_v62 = vadd.f32 %v1788_v48, %v1752_v18  ;;  %v1442_v49 = vadd.f32 %v1426_v31, %v1390_v32  ;;  %v1530_v0 = vmul.f32 %v5357_v23, %v5356_v30  ;;  %v1164_v5 = vmul.f32 %v5231_v37, %v1144_v12  ;;  %v5358_v55 = vld [vmem:[#allocation14_spill] sm:$0xff]  ;;  %v5360_v27 = vld [vmem:[#allocation60_spill] sm:$0xff] }
 0x23c   : > { %v3051_v46 = vpop.eup %3050  ;;  %3054 = vrcp.f32 %v2435_v40  ;;  %v2223_v25 = vadd.f32 %v2207_v26, %v2171_v22  ;;  %v1583_v38 = vmul.f32 %v5358_v55, %v5340_v41  ;;  %v1248_v2 = vld [vmem:[#allocation3 + $0xac] sm:$0xff]  ;;  %v1128_v54 = vadd.f32 %v1112_v28, %v1060_v39 }
 0x23d   : > { %v1857_v52 = vadd.f32 %v1841_v3, %v1804_v62  ;;  %v2480_v15 = vmul.f32 %v3051_v46, %v5359_v10  ;;  %v1494_v48 = vadd.f32 %v1478_v35, %v1442_v49  ;;  %v1216_v32 = vmul.f32 %v3506_v4, %v1196_v60  ;;  %v5361_v26 = vld [vmem:[#allocation66_spill] sm:$0xff]  ;;  %v5362_v39 = vld [vmem:[#allocation41_spill] sm:$0xff] }
 0x23e   : > { %v2275_v31 = vadd.f32 %v2259_v19, %v2223_v25  ;;  %v1997_v18 = vmul.f32 %v5360_v27, %v5338_v1  ;;  %v1635_v22 = vmul.f32 %v5361_v26, %v5176_v45  ;;  %v1180_v3 = vadd.f32 %v1164_v5, %v1128_v54  ;;  %v4688_v4 = vld [vmem:[#allocation3 + $0xf0] sm:$0xff]  ;;  %v2509_v54 = vpop.permute.xlu1 %2508 }
 0x23f   : > { %v1909_v23 = vadd.f32 %v1893_v29, %v1857_v52  ;;  %2520 = vrot.lane.b32.xlu0 %v2480_v15, %s3142_s11  ;;  %v1546_v37 = vadd.f32 %v1530_v0, %v1494_v48  ;;  %v1268_v53 = vmul.f32 %v3517_v8, %v1248_v2  ;;  %v2049_v28 = vmul.f32 %v5362_v39, %v5280_v56  ;;  %v4690_v19 = vld [vmem:[#allocation3 + $0xf1] sm:$0xff] }
 0x240   : > { %v2327_v12 = vadd.f32 %v2311_v47, %v2275_v31  ;;  %v5363_v35 = vld [vmem:[#allocation50_spill] sm:$0xff]  ;;  %v1232_v0 = vadd.f32 %v1216_v32, %v1180_v3  ;;  %v1321_v40 = vmul.f32 %v5341_v43, %v3522_v61  ;;  %v2154_v47 = vmul.f32 %v5236_v24, %v4690_v19  ;;  %v5364_v31 = vld [vmem:[#allocation61_spill] sm:$0xff] }
 0x241   : > { %v1961_v46 = vadd.f32 %v1945_v20, %v1909_v23  ;;  %v1599_v29 = vadd.f32 %v1583_v38, %v1546_v37  ;;  %v1687_v34 = vmul.f32 %v5363_v35, %v3563_v33  ;;  %v2102_v20 = vmul.f32 %v5157_v59, %v4688_v4  ;;  %v4701_v62 = vld [vmem:[#allocation3 + $0xf2] sm:$0xff] }
 0x242   : > { %v2350_v5 = vmul.f32 %v4521_v58, %v2327_v12  ;;  %v4703_v60 = vld [vmem:[#allocation3 + $0xf3] sm:$0xff]  ;;  %v1739_v25 = vmul.f32 %v5339_v14, %v3578_v50  ;;  %v1284_v52 = vadd.f32 %v1268_v53, %v1232_v0  ;;  %v1373_v61 = vmul.f32 %v5343_v57, %v3534_v16  ;;  %v3076_v53 = vld [vmem:[#allocation3 + $0x4a] sm:$0xff] }
 0x243   : > { %v2013_v8 = vadd.f32 %v1997_v18, %v1961_v46  ;;  %v1651_v49 = vadd.f32 %v1635_v22, %v1599_v29  ;;  %v2206_v38 = vmul.f32 %v3644_v42, %v4701_v62  ;;  %v2258_v2 = vmul.f32 %v5137_v63, %v4703_v60  ;;  %v5366_v0 = vld [vmem:[#allocation62_spill] sm:$0xff] }
 0x244   : > { %v4710_v43 = vadd.f32 %v4535_v17, %v2350_v5  ;;  %v1791_v15 = vmul.f32 %v5344_v13, %v3581_v51  ;;  %v1337_v48 = vadd.f32 %v1321_v40, %v1284_v52  ;;  %v1425_v14 = vmul.f32 %v5346_v36, %v5164_v44  ;;  %v5365_v13 = vld [vmem:[#allocation23_spill] sm:$0xff] }
 0x245   : > { %v2065_v55 = vadd.f32 %v2049_v28, %v2013_v8  ;;  %v1703_v10 = vadd.f32 %v1687_v34, %v1651_v49  ;;  %v1844_v32 = vmul.f32 %v4626_v7, %v3608_v6  ;;  %v1896_v23 = vmul.f32 %v5364_v31, %v5332_v9  ;;  %v4728_v28 = vld [vmem:[#allocation3 + $0xf4] sm:$0xff]  ;;  %v5367_v8 = vld [vmem:[#allocation40_spill] sm:$0xff] }
 0x246   : > { %v2801_v16 = vmul.f32 -1.442695, %v4710_v43  ;;  %v1389_v26 = vadd.f32 %v1373_v61, %v1337_v48  ;;  %v1477_v22 = vmul.f32 %v5365_v13, %v5353_v11  ;;  %v2554_v12 = vsel %vm549_vm2, %v3076_v53, %v2509_v54  ;;  %v2505_v46 = vpop.permute.xlu0 %2504  ;;  %v3077_v11 = vld [vmem:[#allocation3 + $0x32] sm:$0xff]  ;;  %v5371_v54 = vld [vmem:[#allocation57_spill] sm:$0xff] }
 0x247   : > { %v2118_v57 = vadd.f32 %v2102_v20, %v2065_v55  ;;  %v3053_v18 = vpop.eup %3052  ;;  %v1755_v37 = vadd.f32 %v1739_v25, %v1703_v10  ;;  %v1529_v40 = vmul.f32 %v5366_v0, %v5356_v30  ;;  %2571 = vst.msk [vmem:[%s3227_s21 + $0x10] sm:$0xff] %vm2568_vm5, %v2554_v12  ;;  %v2552_v5 = vsel %vm549_vm2, %v3077_v11, %v2505_v46  ;;  %v5368_v49 = vld [vmem:[#allocation46_spill] sm:$0xff]  ;;  %v5369_v61 = vld [vmem:[#allocation39_spill] sm:$0xff] }
 0x248   : > { %v2434_v3 = vadd.f32 1.0, %v3053_v18  ;;  %3056 = vpow2.f32 %v2801_v16  ;;  %v1441_v34 = vadd.f32 %v1425_v14, %v1389_v26  ;;  %v2310_v25 = vmul.f32 %v5368_v49, %v4728_v28  ;;  %2569 = vst.msk [vmem:[%s3227_s21] sm:$0xff] %vm2568_vm5, %v2552_v5  ;;  %v5370_v30 = vld [vmem:[#allocation15_spill] sm:$0xff]  ;;  %v5373_v26 = vld [vmem:[#allocation20_spill] sm:$0xff] }
 0x249   : > { %v2170_v44 = vadd.f32 %v2154_v47, %v2118_v57  ;;  %v3055_v7 = vpop.eup %3054  ;;  %v1807_v29 = vadd.f32 %v1791_v15, %v1755_v37  ;;  %v1948_v55 = vmul.f32 %v5369_v61, %v5334_v21  ;;  %v1582_v15 = vmul.f32 %v5370_v30, %v5340_v41  ;;  %v5372_v57 = vld [vmem:[#allocation21_spill] sm:$0xff]  ;;  %v5374_v41 = vld [vmem:[#allocation55_spill] sm:$0xff] }
 0x24a   : > { %v2483_v20 = vmul.f32 %v3055_v7, %v5367_v8  ;;  %3058 = vrcp.f32 %v2434_v3  ;;  %v1493_v10 = vadd.f32 %v1477_v22, %v1441_v34  ;;  %v1634_v31 = vmul.f32 %v5372_v57, %v5176_v45  ;;  %v3078_v34 = vld [vmem:[#allocation3 + $0x52] sm:$0xff] }
 0x24b   : > { %v2222_v47 = vadd.f32 %v2206_v38, %v2170_v44  ;;  %v1860_v52 = vadd.f32 %v1844_v32, %v1807_v29  ;;  %v2000_v38 = vmul.f32 %v5371_v54, %v5338_v1  ;;  %v2085_v32 = vld [vmem:[#allocation3 + $0x110] sm:$0xff]  ;;  %v2052_v13 = vmul.f32 %v5373_v26, %v5280_v56 }
 0x24c   : > { %2526 = vrot.lane.b32.xlu1 %v2483_v20, %s3142_s11  ;;  %v1545_v16 = vadd.f32 %v1529_v40, %v1493_v10  ;;  %v1686_v3 = vmul.f32 %v5374_v41, %v3563_v33  ;;  %v2105_v53 = vmul.f32 %v5157_v59, %v2085_v32  ;;  %v1738_v45 = vmul.f32 %v5360_v27, %v3578_v50  ;;  %v2189_v29 = vld [vmem:[#allocation3 + $0x112] sm:$0xff] }
 0x24d   : > { %v2274_v48 = vadd.f32 %v2258_v2, %v2222_v47  ;;  %v1912_v14 = vadd.f32 %v1896_v23, %v1860_v52  ;;  %v2137_v23 = vld [vmem:[#allocation3 + $0x111] sm:$0xff]  ;;  %v1790_v5 = vmul.f32 %v5362_v39, %v3581_v51  ;;  %v2209_v47 = vmul.f32 %v3644_v42, %v2189_v29 }
 0x24e   : > { %v1598_v22 = vadd.f32 %v1582_v15, %v1545_v16  ;;  %v2157_v40 = vmul.f32 %v5236_v24, %v2137_v23  ;;  %v2241_v50 = vld [vmem:[#allocation3 + $0x113] sm:$0xff]  ;;  %v1843_v52 = vmul.f32 %v4688_v4, %v3608_v6  ;;  %v1895_v15 = vmul.f32 %v4690_v19, %v5332_v9  ;;  %v2084_v9 = vld [vmem:[#allocation3 + $0x108] sm:$0xff] }
 0x24f   : > { %v2326_v18 = vadd.f32 %v2310_v25, %v2274_v48  ;;  %v1964_v37 = vadd.f32 %v1948_v55, %v1912_v14  ;;  %v2511_v46 = vpop.permute.xlu1 %2510  ;;  %v2293_v55 = vld [vmem:[#allocation3 + $0x114] sm:$0xff]  ;;  %v2261_v51 = vmul.f32 %v5137_v63, %v2241_v50  ;;  %v5375_v48 = vld [vmem:[#allocation29_spill] sm:$0xff]  ;;  %v1947_v6 = vmul.f32 %v4701_v62, %v5334_v21 }
 0x250   : > { %v1650_v12 = vadd.f32 %v1634_v31, %v1598_v22  ;;  %v2555_v0 = vsel %vm549_vm2, %v3078_v34, %v2511_v46  ;;  %v1999_v31 = vmul.f32 %v4703_v60, %v5338_v1  ;;  %v3079_v19 = vld [vmem:[#allocation3 + $0x3a] sm:$0xff]  ;;  %v2136_v21 = vld [vmem:[#allocation3 + $0x109] sm:$0xff] }
 0x251   : > { %v2349_v2 = vmul.f32 %v4521_v58, %v2326_v18  ;;  %v2016_v44 = vadd.f32 %v2000_v38, %v1964_v37  ;;  %2572 = vst.msk [vmem:[%s3227_s21 + $0x18] sm:$0xff] %vm2568_vm5, %v2555_v0  ;;  %v2313_v38 = vmul.f32 %v5368_v49, %v2293_v55  ;;  %v2156_v23 = vmul.f32 %v5236_v24, %v2136_v21  ;;  %v2292_v46 = vld [vmem:[#allocation3 + $0x10c] sm:$0xff] }
 0x252   : > { %v1702_v11 = vadd.f32 %v1686_v3, %v1650_v12  ;;  %v2104_v3 = vmul.f32 %v5157_v59, %v2084_v9  ;;  %v2312_v24 = vmul.f32 %v5368_v49, %v2292_v46  ;;  %v3086_v9 = vld [vmem:[#allocation3 + $0xb2] sm:$0xff]  ;;  %v3088_v21 = vld [vmem:[#allocation3 + $0xca] sm:$0xff] }
 0x253   : > { %v4758_v7 = vadd.f32 %v4535_v17, %v2349_v2  ;;  %v2068_v33 = vadd.f32 %v2052_v13, %v2016_v44  ;;  %v2051_v13 = vmul.f32 %v4728_v28, %v5280_v56  ;;  %v2188_v2 = vld [vmem:[#allocation3 + $0x10a] sm:$0xff] }
 0x254   : > { %v1754_v25 = vadd.f32 %v1738_v45, %v1702_v11  ;;  %v2240_v44 = vld [vmem:[#allocation3 + $0x10b] sm:$0xff]  ;;  %v2208_v56 = vmul.f32 %v3644_v42, %v2188_v2 }
 0x255   : > { %v2800_v8 = vmul.f32 -1.442695, %v4758_v7  ;;  %v3057_v27 = vpop.eup %3056  ;;  %v2121_v20 = vadd.f32 %v2105_v53, %v2068_v33  ;;  %v2260_v59 = vmul.f32 %v5137_v63, %v2240_v44  ;;  %v3080_v11 = vld [vmem:[#allocation3 + $0x6a] sm:$0xff] }
 0x256   : > { %v2437_v61 = vadd.f32 1.0, %v3057_v27  ;;  %v1806_v39 = vadd.f32 %v1790_v5, %v1754_v25 }
 0x257   : > { %3060 = vpow2.f32 %v2800_v8  ;;  %v3059_v10 = vpop.eup %3058  ;;  %v2173_v30 = vadd.f32 %v2157_v40, %v2121_v20 }
 0x258   : > { %v2482_v14 = vmul.f32 %v3059_v10, %v5375_v48  ;;  %3062 = vrcp.f32 %v2437_v61  ;;  %v1859_v16 = vadd.f32 %v1843_v52, %v1806_v39  ;;  %v3081_v52 = vld [vmem:[#allocation3 + $0x62] sm:$0xff] }
 0x259   : > { %v2225_v54 = vadd.f32 %v2209_v47, %v2173_v30  ;;  %v3082_v30 = vld [vmem:[#allocation3 + $0x82] sm:$0xff] }
 0x25a   : > { %2524 = vrot.lane.b32.xlu0 %v2482_v14, %s3142_s11  ;;  %v1911_v57 = vadd.f32 %v1895_v15, %v1859_v16  ;;  %v2507_v18 = vpop.permute.xlu0 %2506  ;;  %v3083_v14 = vld [vmem:[#allocation3 + $0x7a] sm:$0xff] }
 0x25b   : > { %v2277_v4 = vadd.f32 %v2261_v51, %v2225_v54  ;;  %v2553_v32 = vsel %vm549_vm2, %v3079_v19, %v2507_v18  ;;  %v3084_v16 = vld [vmem:[#allocation3 + $0x9a] sm:$0xff] }
 0x25c   : > { %v1963_v26 = vadd.f32 %v1947_v6, %v1911_v57  ;;  %2570 = vst.msk [vmem:[%s3227_s21 + $0x8] sm:$0xff] %vm2568_vm5, %v2553_v32  ;;  %v3085_v57 = vld [vmem:[#allocation3 + $0x92] sm:$0xff] }
 0x25d   : > { %v2329_v37 = vadd.f32 %v2313_v38, %v2277_v4 }
 0x25e   : > { %v2015_v22 = vadd.f32 %v1999_v31, %v1963_v26 }
 0x25f   : > { %v2352_v62 = vmul.f32 %v4521_v58, %v2329_v37  ;;  %v3087_v37 = vld [vmem:[#allocation3 + $0xaa] sm:$0xff] }
 0x260   : > { %v2067_v60 = vadd.f32 %v2051_v13, %v2015_v22 }
 0x261   : > { %v2375_v1 = vadd.f32 %v4535_v17, %v2352_v62 }
 0x262   : > { %v2120_v45 = vadd.f32 %v2104_v3, %v2067_v60 }
 0x263   : > { %v2803_v12 = vmul.f32 -1.442695, %v2375_v1 }
 0x264   : > { %v3061_v53 = vpop.eup %3060  ;;  %v2172_v34 = vadd.f32 %v2156_v23, %v2120_v45 }
 0x265   : > { %v2436_v28 = vadd.f32 1.0, %v3061_v53  ;;  %v3063_v29 = vpop.eup %3062  ;;  %3064 = vpow2.f32 %v2803_v12 }
 0x266   : > { %v2485_v0 = vmul.f32 %v3063_v29, %v4710_v43  ;;  %v2224_v33 = vadd.f32 %v2208_v56, %v2172_v34 }
 0x267   : > { %3066 = vrcp.f32 %v2436_v28 }
 0x268   : > { %v2515_v40 = vpop.permute.xlu1 %2514  ;;  %2530 = vrot.lane.b32.xlu1 %v2485_v0, %s3142_s11  ;;  %v2276_v5 = vadd.f32 %v2260_v59, %v2224_v33 }
 0x269   : > { %v2557_v42 = vsel %vm549_vm2, %v3080_v11, %v2515_v40 }
 0x26a   : > { %2574 = vst.msk [vmem:[%s3227_s21 + $0x28] sm:$0xff] %vm2568_vm5, %v2557_v42  ;;  %v2328_v8 = vadd.f32 %v2312_v24, %v2276_v5 }
 0x26c   : > { %v2351_v50 = vmul.f32 %v4521_v58, %v2328_v8 }
 0x26e   : > { %v2374_v63 = vadd.f32 %v4535_v17, %v2351_v50 }
 0x270   : > { %v2802_v43 = vmul.f32 -1.442695, %v2374_v63 }
 0x272   : > { %v3065_v27 = vpop.eup %3064  ;;  %3068 = vpow2.f32 %v2802_v43 }
 0x273   : > { %v2439_v47 = vadd.f32 1.0, %v3065_v27 }
 0x274   : > { %v3067_v20 = vpop.eup %3066 }
 0x275   : > { %v2484_v49 = vmul.f32 %v3067_v20, %v4758_v7  ;;  %3070 = vrcp.f32 %v2439_v47 }
 0x277   : > { %2528 = vrot.lane.b32.xlu0 %v2484_v49, %s3142_s11  ;;  %v2513_v25 = vpop.permute.xlu0 %2512 }
 0x278   : > { %v2556_v61 = vsel %vm549_vm2, %v3081_v52, %v2513_v25 }
 0x279   : > { %2573 = vst.msk [vmem:[%s3227_s21 + $0x20] sm:$0xff] %vm2568_vm5, %v2556_v61 }
 0x27f   : > { %v3069_v58 = vpop.eup %3068 }
 0x280   : > { %v2438_v17 = vadd.f32 1.0, %v3069_v58 }
 0x282   : > { %v3071_v55 = vpop.eup %3070  ;;  %3072 = vrcp.f32 %v2438_v17 }
 0x283   : > { %v2487_v10 = vmul.f32 %v3071_v55, %v2375_v1 }
 0x285   : > { %2534 = vrot.lane.b32.xlu1 %v2487_v10, %s3142_s11 }
 0x286   : > { %v2519_v7 = vpop.permute.xlu1 %2518 }
 0x287   : > { %v2559_v51 = vsel %vm549_vm2, %v3082_v30, %v2519_v7 }
 0x288   : > { %2576 = vst.msk [vmem:[%s3227_s21 + $0x38] sm:$0xff] %vm2568_vm5, %v2559_v51 }
 0x28f   : > { %v3073_v39 = vpop.eup %3072 }
 0x290   : > { %v2486_v15 = vmul.f32 %v3073_v39, %v2374_v63 }
 0x292   : > { %2532 = vrot.lane.b32.xlu0 %v2486_v15, %s3142_s11 }
 0x295   : > { %v2517_v48 = vpop.permute.xlu0 %2516 }
 0x296   : > { %v2558_v54 = vsel %vm549_vm2, %v3083_v14, %v2517_v48 }
 0x297   : > { %2575 = vst.msk [vmem:[%s3227_s21 + $0x30] sm:$0xff] %vm2568_vm5, %v2558_v54 }
 0x2a3   : > { %v2523_v38 = vpop.permute.xlu1 %2522 }
 0x2a4   : > { %v2561_v6 = vsel %vm549_vm2, %v3084_v16, %v2523_v38 }
 0x2a5   : > { %2578 = vst.msk [vmem:[%s3227_s21 + $0x48] sm:$0xff] %vm2568_vm5, %v2561_v6 }
 0x2b1   : > { %v2521_v4 = vpop.permute.xlu0 %2520 }
 0x2b2   : > { %v2560_v31 = vsel %vm549_vm2, %v3085_v57, %v2521_v4 }
 0x2b3   : > { %2577 = vst.msk [vmem:[%s3227_s21 + $0x40] sm:$0xff] %vm2568_vm5, %v2560_v31 }
 0x2be   : > { %v2527_v18 = vpop.permute.xlu1 %2526 }
 0x2bf   : > { %v2563_v19 = vsel %vm549_vm2, %v3086_v9, %v2527_v18 }
 0x2c0   : > { %2580 = vst.msk [vmem:[%s3227_s21 + $0x58] sm:$0xff] %vm2568_vm5, %v2563_v19 }
 0x2cc   : > { %v2525_v32 = vpop.permute.xlu0 %2524 }
 0x2cd   : > { %v2562_v26 = vsel %vm549_vm2, %v3087_v37, %v2525_v32 }
 0x2ce   : > { %2579 = vst.msk [vmem:[%s3227_s21 + $0x50] sm:$0xff] %vm2568_vm5, %v2562_v26 }
 0x2da   : > { %v2531_v13 = vpop.permute.xlu1 %2530 }
 0x2db   : > { %v2565_v62 = vsel %vm549_vm2, %v3088_v21, %v2531_v13 }
 0x2dc   : > { %2582 = vst.msk [vmem:[%s3227_s21 + $0x68] sm:$0xff] %vm2568_vm5, %v2565_v62 }
 0x2e9   : > { %v2529_v22 = vpop.permute.xlu0 %2528 }
 0x2ea   : > { %v2564_v3 = vsel %vm549_vm2, %v5346_v36, %v2529_v22 }
 0x2eb   : > { %2581 = vst.msk [vmem:[%s3227_s21 + $0x60] sm:$0xff] %vm2568_vm5, %v2564_v3 }
 0x2f7   : > { %v2535_v2 = vpop.permute.xlu1 %2534 }
 0x2f8   : > { %v2567_v1 = vsel %vm549_vm2, %v5363_v35, %v2535_v2 }
 0x2f9   : > { %2584 = vst.msk [vmem:[%s3227_s21 + $0x78] sm:$0xff] %vm2568_vm5, %v2567_v1 }
 0x304   : > { %v2533_v60 = vpop.permute.xlu0 %2532 }
 0x305   : > { %v2566_v23 = vsel %vm549_vm2, %v5374_v41, %v2533_v60 }
 0x306   : > { %2583 = vst.msk [vmem:[%s3227_s21 + $0x70] sm:$0xff] %vm2568_vm5, %v2566_v23 }
 0x307 PF: > { %s17_s28 = sadd.s32 1, %s3137_s28   ;;  %s5376_s16 = sld [smem:[#allocation11_spill]] }
 0x308   : > { %p14_p1 = scmp.ge.s32.totalorder %s17_s28, 6   ;;  %s5377_s24 = smov %s3129_s26 }
 0x309   : > { %s5378_s25 = smov %s3133_s27  ;;  %s5379_s26 = smov %s5382_s29 }
 0x30a   :  { %16 = sbr.rel (!%p14_p1) target bundleno = 3 (0x3), region = 237 }
 0x30d   : > { %s5380_s27 = smov %s5376_s16 }
 0x30f   :  { %2617 = vsyncmov [#allocation4] }
 0x312   :  { %s2618_s21 = vpop.sfrf %2617 }
 0x313   :  { %p2806_p2 = scmp.ne.s32.totalorder %s2618_s21, 0 }
 0x315   :  { %2622 = shalt.err (%p2806_p2)  }
 0x316   :  { %2624 = vsyncmov [#allocation4 + $0x1] }
 0x319   :  { %s2625_s30 = vpop.sfrf %2624 }
 0x31a   :  { %p2807_p3 = scmp.ne.s32.totalorder %s2625_s30, 0 }
 0x31c   :  { %2629 = shalt.err (%p2807_p3)  }
 0x31d   :  { %2631 = vsyncmov [#allocation4 + $0x2] }
 0x320   :  { %s2632_s17 = vpop.sfrf %2631 }
 0x321   :  { %p2808_p4 = scmp.ne.s32.totalorder %s2632_s17, 0 }
 0x323   :  { %2636 = shalt.err (%p2808_p4)  }

</bundles_post_ra>
